<compile_context>
chip_gen: v5e
topology: v5e:2x2
jax: 0.10.0
libtpu: 0.0.40
codegen_flags: <defaults>
</compile_context>

<pallas_src>
import numpy as np
import jax
import jax.numpy as jnp
from jax.experimental import pallas as pl
from jax.experimental.pallas import tpu as pltpu


# ----------------------------------------------------------------------------
# Fused kernel: one batch block (BB images) per grid step.
# ----------------------------------------------------------------------------
def qnet_fused_kernel(p_ref, w1_ref, b1_ref, w2_ref, b2_ref,
                      wfc1_ref, fb1_ref, wfc2_ref, fb2_ref,
                      o_ref, p1_ref):
    f32, bf16 = jnp.float32, jnp.bfloat16
    BB = o_ref.shape[1]
    H2 = p1_ref.shape[1] - 4          # pooled1 rows
    H4 = H2 // 2                      # pooled2 rows
    N1 = p1_ref.shape[2]              # W2 * 32 (pooled1 (w, c) merged lanes)
    KH = w2_ref.shape[0] // N1        # 5 kernel rows stacked along K
    N2h = b2_ref.shape[1]             # W4 * 32

    # ---- conv1 (+bias+relu) and 2x2 maxpool: ONE lane-dense bf16 MXU dot ----
    # Rows = (b, pool-phase, pooled-row); cols = (pooled-col, channel).
    y1 = jnp.dot(p_ref[0], w1_ref[...], preferred_element_type=f32)   # (BB*4*H2, N1)
    y1 = y1.reshape(BB, 4, H2, N1)
    m1 = jnp.maximum(jnp.maximum(y1[:, 0], y1[:, 1]),
                     jnp.maximum(y1[:, 2], y1[:, 3]))                 # pool over 4 phases
    pooled1 = jnp.maximum(m1 + b1_ref[...], 0.0)                      # bias+relu commute with max

    # ---- row-padded conv2 input scratch (zero only the halo rows) -----------
    zhalo = jnp.zeros((BB, 2, N1), f32)
    p1_ref[:, 0:2, :] = zhalo
    p1_ref[:, H2 + 2:H2 + 4, :] = zhalo
    p1_ref[:, 2:H2 + 2, :] = pooled1

    # ---- conv2: 5 kernel-row taps stacked along K -> ONE dot (K = 5*N1) -----
    lhs2 = jnp.concatenate([p1_ref[:, dy:dy + H2, :] for dy in range(KH)],
                           axis=-1)                                   # 128-aligned concat
    lhs2 = lhs2.reshape(BB * H2, KH * N1).astype(bf16)
    y2 = jnp.dot(lhs2, w2_ref[...], preferred_element_type=f32)       # (BB*H2, 2*N2h)

    # ---- bias + relu + 2x2 maxpool (row pairs + lane-half column parity) ----
    y2r = y2.reshape(BB, H4, 2, 2 * N2h)
    ph = jnp.max(y2r, axis=2)                                         # pool over row pairs
    pw = jnp.maximum(ph[..., :N2h], ph[..., N2h:])                    # pool over col parity
    pooled2 = jnp.maximum(pw + b2_ref[...], 0.0)                      # (BB, H4, N2h)

    # ---- fc1 (+relu) and fc2 as single dots (NCHW flatten folded in wfc1) ---
    flat = pooled2.reshape(BB, H4 * N2h).astype(bf16)
    h = jnp.maximum(jnp.dot(flat, wfc1_ref[...], preferred_element_type=f32)
                    + fb1_ref[...], 0.0)
    out = jnp.dot(h.astype(bf16), wfc2_ref[...], preferred_element_type=f32) \
        + fb2_ref[...]
    o_ref[0] = out                                                    # lane-dense (BB, OUTP)


# ----------------------------------------------------------------------------
# Wrapper: single pallas_call for the whole forward, batch-blocked grid.
# ----------------------------------------------------------------------------
def q_net_image_forward(x_nchw, params, out_dim, block_b=None):
    B, C, H, W = x_nchw.shape
    assert H % 4 == 0 and W % 4 == 0, "only the even-H/W MaxPool2d path is built"
    H2, W2 = H // 2, W // 2
    H4, W4 = H // 4, W // 4
    K1 = W2 * 25 * C
    N1 = W2 * 32
    K2 = 5 * N1
    N2h = W4 * 32
    NFC = params["fb1"].shape[1]
    OUTP = params["fb2"].shape[1]

    # Batch block: big enough to fill the MXU M dim, small enough for the
    # default VMEM budget, and (when possible) >= 2 grid steps so both v7x
    # TensorCores get work via the "parallel" grid axis.
    if block_b is None:
        block_b = min(B, 32)
        if B > 1 and -(-B // block_b) < 2:
            block_b = -(-B // 2)
    BB = int(block_b)
    nb = -(-B // BB)
    Bp = nb * BB

    # conv1 im2col (pure layout plumbing in XLA): rows = (b, pool-phase, pooled
    # row), features = (pooled col, dy, dx, cin) -> lane-dense K for the MXU.
    x = jnp.transpose(x_nchw, (0, 2, 3, 1)).astype(jnp.float32)
    xpad = jnp.pad(x, ((0, 0), (2, 2), (2, 2), (0, 0)))
    taps = jnp.stack([xpad[:, dy:dy + H, dx:dx + W, :]
                      for dy in range(5) for dx in range(5)], axis=3)  # (B,H,W,25,C)
    pat = taps.reshape(B, H2, 2, W2, 2, 25 * C)
    pat = pat.transpose(0, 2, 4, 1, 3, 5).reshape(B, 4, H2, K1)
    if Bp != B:
        pat = jnp.pad(pat, ((0, Bp - B), (0, 0), (0, 0), (0, 0)))
    pat = pat.reshape(nb, BB * 4 * H2, K1).astype(jnp.bfloat16)

    def _full(a):
        nd = a.ndim
        return pl.BlockSpec(a.shape, lambda i, nd=nd: (0,) * nd)

    out = pl.pallas_call(
        qnet_fused_kernel,
        out_shape=jax.ShapeDtypeStruct((nb, BB, OUTP), jnp.float32),
        grid=(nb,),
        in_specs=[
            pl.BlockSpec((1, BB * 4 * H2, K1), lambda i: (i, 0, 0)),  # im2col patches
            _full(params["w1"]),     # (K1, N1)  conv1 block-diag weight (bf16)
            _full(params["b1"]),     # (1, N1)   conv1 bias, tiled over pooled cols
            _full(params["w2"]),     # (K2, 2*N2h) conv2 banded weight (bf16)
            _full(params["b2"]),     # (1, N2h)  conv2 bias, tiled
            _full(params["wfc1"]),   # (H4*N2h, 256) fc1 (flatten folded in)
            _full(params["fb1"]),    # (1, 256)
            _full(params["wfc2"]),   # (256, OUTP) fc2, N padded to 128 lanes
            _full(params["fb2"]),    # (1, OUTP)
        ],
        out_specs=pl.BlockSpec((1, BB, OUTP), lambda i: (i, 0, 0)),
        scratch_shapes=[pltpu.VMEM((BB, H2 + 4, N1), jnp.float32)],
        compiler_params=pltpu.CompilerParams(
            dimension_semantics=("parallel",)),
    )(pat, params["w1"], params["b1"], params["w2"], params["b2"],
      params["wfc1"], params["fb1"], params["wfc2"], params["fb2"])

    del NFC, K2  # shapes carried by the param arrays themselves
    return out.reshape(Bp, OUTP)[:B, :out_dim]


# ----------------------------------------------------------------------------
# Parameter preparation (torch layout -> kernel layout)
# ----------------------------------------------------------------------------
def prepare_params(conv1_w, conv1_b, conv2_w, conv2_b,
                   fc1_w, fc1_b, fc2_w, fc2_b, H, W):
    bf16 = jnp.bfloat16
    C = conv1_w.shape[1]
    H2, W2, H4, W4 = H // 2, W // 2, H // 4, W // 4
    out_dim = fc2_w.shape[0]
    nfc = fc1_w.shape[0]
    OUTP = ((out_dim + 127) // 128) * 128

    c1 = np.asarray(conv1_w, np.float32)          # (32, C, 5, 5)
    c2 = np.asarray(conv2_w, np.float32)          # (32, 32, 5, 5)

    # conv1: block-diagonal "full pooled-row" weight so the single conv1 dot
    # emits output cols ordered (pooled col, channel) = exactly what conv2 eats.
    w1flat = np.transpose(c1, (2, 3, 1, 0)).reshape(25 * C, 32)     # [(dy,dx,cin), cout]
    K1, N1 = W2 * 25 * C, W2 * 32
    w1big = np.zeros((K1, N1), np.float32)
    for wo in range(W2):
        w1big[wo * 25 * C:(wo + 1) * 25 * C, wo * 32:(wo + 1) * 32] = w1flat
    b1t = np.tile(np.asarray(conv1_b, np.float32), W2).reshape(1, N1)

    # conv2: banded weight, 5 kernel rows stacked along K, output column parity
    # split along N so 2x2 pooling is a lane-half max + one row-pair max.
    K2, N2h = 5 * N1, W4 * 32
    w2big = np.zeros((K2, 2 * N2h), np.float32)
    for dy in range(5):
        for w2c in range(W2):
            par, j = w2c % 2, w2c // 2
            col = par * N2h + j * 32
            for dx in range(5):
                win = w2c + dx - 2
                if 0 <= win < W2:
                    w2big[dy * N1 + win * 32: dy * N1 + (win + 1) * 32,
                          col:col + 32] = c2[:, :, dy, dx].T
    b2t = np.tile(np.asarray(conv2_b, np.float32), W4).reshape(1, N2h)

    # fc1: fold torch's NCHW flatten and the pooled2 (i, j, c) lane layout.
    f1 = np.asarray(fc1_w, np.float32).reshape(nfc, 32, H4, W4)
    wfc1 = np.transpose(f1, (2, 3, 1, 0)).reshape(H4 * W4 * 32, nfc)

    # fc2: pad the output dim to a full 128-lane slab for unmasked stores.
    wfc2 = np.zeros((nfc, OUTP), np.float32)
    wfc2[:, :out_dim] = np.asarray(fc2_w, np.float32).T
    fb2 = np.zeros((1, OUTP), np.float32)
    fb2[0, :out_dim] = np.asarray(fc2_b, np.float32)

    return {
        "w1": jnp.asarray(w1big, bf16),
        "b1": jnp.asarray(b1t, jnp.float32),
        "w2": jnp.asarray(w2big, bf16),
        "b2": jnp.asarray(b2t, jnp.float32),
        "wfc1": jnp.asarray(wfc1, bf16),
        "fb1": jnp.asarray(np.asarray(fc1_b, np.float32).reshape(1, nfc), jnp.float32),
        "wfc2": jnp.asarray(wfc2, bf16),
        "fb2": jnp.asarray(fb2, jnp.float32),
    }


# ----------------------------------------------------------------------------
# Pure-JAX reference (f32, highest precision) for correctness check
# ----------------------------------------------------------------------------
def reference_forward(x_nchw, raw):
    hp = jax.lax.Precision.HIGHEST
    x = jnp.transpose(x_nchw, (0, 2, 3, 1))

    def conv(z, w_oihw, b):
        w_hwio = jnp.transpose(w_oihw, (2, 3, 1, 0))
        y = jax.lax.conv_general_dilated(
            z, w_hwio, (1, 1), "SAME",
            dimension_numbers=("NHWC", "HWIO", "NHWC"), precision=hp)
        return jnp.maximum(y + b, 0.0)

    def pool(z):
        return jax.lax.reduce_window(z, -jnp.inf, jax.lax.max,
                                     (1, 2, 2, 1), (1, 2, 2, 1), "VALID")

    y = pool(conv(x, raw["conv1_w"], raw["conv1_b"]))
    y = pool(conv(y, raw["conv2_w"], raw["conv2_b"]))
    B = y.shape[0]
    flat = jnp.transpose(y, (0, 3, 1, 2)).reshape(B, -1)
    h = jnp.maximum(jnp.dot(flat, raw["fc1_w"].T, precision=hp) + raw["fc1_b"], 0.0)
    return jnp.dot(h, raw["fc2_w"].T, precision=hp) + raw["fc2_b"]


# ----------------------------------------------------------------------------
# main
# ----------------------------------------------------------------------------
if __name__ == "__main__":
    key = jax.random.PRNGKey(0)
    B, C, H, W = 2, 4, 16, 16
    OUT_DIM = 10
    ks = jax.random.split(key, 10)

    x = jax.random.normal(ks[0], (B, C, H, W), jnp.float32)

    # deterministic synthetic parameters (torch shape conventions)
    conv1_w = 0.05 * jax.random.normal(ks[1], (32, C, 5, 5), jnp.float32)
    conv1_b = 0.05 * jax.random.normal(ks[2], (32,), jnp.float32)
    conv2_w = 0.05 * jax.random.normal(ks[3], (32, 32, 5, 5), jnp.float32)
    conv2_b = 0.05 * jax.random.normal(ks[4], (32,), jnp.float32)
    feat = 32 * (H // 4) * (W // 4)            # lazily-sized fc1 input in torch
    fc1_w = 0.05 * jax.random.normal(ks[5], (256, feat), jnp.float32)
    fc1_b = 0.05 * jax.random.normal(ks[6], (256,), jnp.float32)
    fc2_w = 0.05 * jax.random.normal(ks[7], (OUT_DIM, 256), jnp.float32)
    fc2_b = 0.05 * jax.random.normal(ks[8], (OUT_DIM,), jnp.float32)

    params = prepare_params(conv1_w, conv1_b, conv2_w, conv2_b,
                            fc1_w, fc1_b, fc2_w, fc2_b, H, W)
    raw = {"conv1_w": conv1_w, "conv1_b": conv1_b,
           "conv2_w": conv2_w, "conv2_b": conv2_b,
           "fc1_w": fc1_w, "fc1_b": fc1_b, "fc2_w": fc2_w, "fc2_b": fc2_b}

    fwd = jax.jit(q_net_image_forward, static_argnames=("out_dim", "block_b"))
    out = jax.block_until_ready(fwd(x, params, out_dim=OUT_DIM))
    assert out.shape == (B, OUT_DIM), out.shape

    ref = jax.block_until_ready(reference_forward(x, raw))
    # bf16 matmul operands (all layers) with f32 accumulation -> looser
    # tolerance than a pure-f32 comparison.
    max_err = float(jnp.max(jnp.abs(out - ref)))
    assert jnp.allclose(out, ref, rtol=5e-2, atol=5e-2), max_err

    print("KERNEL_OK")
</pallas_src>

<mosaic_0001>
module attributes {stable_mosaic.version = 11 : i64} {
  func.func @qnet_fused_kernel(%arg0: i32, %arg1: memref<1x32x800xbf16, #tpu.memory_space<vmem>>, %arg2: memref<800x256xbf16, #tpu.memory_space<vmem>>, %arg3: memref<1x256xf32, #tpu.memory_space<vmem>>, %arg4: memref<1280x256xbf16, #tpu.memory_space<vmem>>, %arg5: memref<1x128xf32, #tpu.memory_space<vmem>>, %arg6: memref<512x256xbf16, #tpu.memory_space<vmem>>, %arg7: memref<1x256xf32, #tpu.memory_space<vmem>>, %arg8: memref<256x128xbf16, #tpu.memory_space<vmem>>, %arg9: memref<1x128xf32, #tpu.memory_space<vmem>>, %arg10: memref<1x1x128xf32, #tpu.memory_space<vmem>>, %arg11: memref<1x12x256xf32, #tpu.memory_space<vmem>>) attributes {dimension_semantics = [#tpu.dimension_semantics<parallel>], iteration_bounds = array<i64: 2>, scalar_prefetch = 0 : i64, scratch_operands = 1 : i64, tpu.core_type = #tpu.core_type<tc>, window_params = [{transform_indices = @transform_0, window_bounds = array<i64: 1, 32, 800>}, {pipeline_mode = #tpu.pipeline_mode<synchronous>, transform_indices = @transform_1, window_bounds = array<i64: 800, 256>}, {pipeline_mode = #tpu.pipeline_mode<synchronous>, transform_indices = @transform_2, window_bounds = array<i64: 1, 256>}, {pipeline_mode = #tpu.pipeline_mode<synchronous>, transform_indices = @transform_3, window_bounds = array<i64: 1280, 256>}, {pipeline_mode = #tpu.pipeline_mode<synchronous>, transform_indices = @transform_4, window_bounds = array<i64: 1, 128>}, {pipeline_mode = #tpu.pipeline_mode<synchronous>, transform_indices = @transform_5, window_bounds = array<i64: 512, 256>}, {pipeline_mode = #tpu.pipeline_mode<synchronous>, transform_indices = @transform_6, window_bounds = array<i64: 1, 256>}, {pipeline_mode = #tpu.pipeline_mode<synchronous>, transform_indices = @transform_7, window_bounds = array<i64: 256, 128>}, {pipeline_mode = #tpu.pipeline_mode<synchronous>, transform_indices = @transform_8, window_bounds = array<i64: 1, 128>}, {transform_indices = @transform_9, window_bounds = array<i64: 1, 1, 128>}]} {
    %c0 = arith.constant 0 : index
    %c0_0 = arith.constant 0 : index
    %c0_1 = arith.constant 0 : index
    %0 = vector.load %arg1[%c0, %c0_0, %c0_1] : memref<1x32x800xbf16, #tpu.memory_space<vmem>>, vector<1x32x800xbf16>
    %1 = vector.shape_cast %0 : vector<1x32x800xbf16> to vector<32x800xbf16>
    %c0_2 = arith.constant 0 : index
    %c0_3 = arith.constant 0 : index
    %2 = vector.load %arg2[%c0_2, %c0_3] : memref<800x256xbf16, #tpu.memory_space<vmem>>, vector<800x256xbf16>
    %cst = arith.constant dense<0.000000e+00> : vector<32x256xf32>
    %3 = tpu.matmul %1, %2, %cst {dimension_numbers = #tpu.dot_dimension_numbers<[1], [0], [0], [1], [0, 0, 1, 1], [], []>} : vector<32x800xbf16>, vector<800x256xbf16>, vector<32x256xf32> -> vector<32x256xf32>
    %4 = vector.shape_cast %3 : vector<32x256xf32> to vector<1x4x8x256xf32>
    %5 = vector.extract_strided_slice %4 {offsets = [0, 0, 0, 0], sizes = [1, 1, 8, 256], strides = [1, 1, 1, 1]} : vector<1x4x8x256xf32> to vector<1x1x8x256xf32>
    %6 = vector.shape_cast %5 : vector<1x1x8x256xf32> to vector<1x8x256xf32>
    %7 = vector.extract_strided_slice %4 {offsets = [0, 1, 0, 0], sizes = [1, 1, 8, 256], strides = [1, 1, 1, 1]} : vector<1x4x8x256xf32> to vector<1x1x8x256xf32>
    %8 = vector.shape_cast %7 : vector<1x1x8x256xf32> to vector<1x8x256xf32>
    %9 = arith.maximumf %6, %8 : vector<1x8x256xf32>
    %10 = vector.extract_strided_slice %4 {offsets = [0, 2, 0, 0], sizes = [1, 1, 8, 256], strides = [1, 1, 1, 1]} : vector<1x4x8x256xf32> to vector<1x1x8x256xf32>
    %11 = vector.shape_cast %10 : vector<1x1x8x256xf32> to vector<1x8x256xf32>
    %12 = vector.extract_strided_slice %4 {offsets = [0, 3, 0, 0], sizes = [1, 1, 8, 256], strides = [1, 1, 1, 1]} : vector<1x4x8x256xf32> to vector<1x1x8x256xf32>
    %13 = vector.shape_cast %12 : vector<1x1x8x256xf32> to vector<1x8x256xf32>
    %14 = arith.maximumf %11, %13 : vector<1x8x256xf32>
    %15 = arith.maximumf %9, %14 : vector<1x8x256xf32>
    %c0_4 = arith.constant 0 : index
    %c0_5 = arith.constant 0 : index
    %16 = vector.load %arg3[%c0_4, %c0_5] : memref<1x256xf32, #tpu.memory_space<vmem>>, vector<1x256xf32>
    %17 = vector.shape_cast %16 : vector<1x256xf32> to vector<1x1x256xf32>
    %18 = vector.broadcast %17 : vector<1x1x256xf32> to vector<1x8x256xf32>
    %19 = arith.addf %15, %18 : vector<1x8x256xf32>
    %cst_6 = arith.constant 0.000000e+00 : f32
    %20 = vector.broadcast %cst_6 : f32 to vector<1x8x256xf32>
    %21 = arith.maximumf %19, %20 : vector<1x8x256xf32>
    %cst_7 = arith.constant 0.000000e+00 : f32
    %22 = vector.broadcast %cst_7 : f32 to vector<1x2x256xf32>
    %c0_8 = arith.constant 0 : index
    %c0_9 = arith.constant 0 : index
    %c0_10 = arith.constant 0 : index
    %23 = vector.load %arg11[%c0_8, %c0_9, %c0_10] : memref<1x12x256xf32, #tpu.memory_space<vmem>>, vector<1x2x256xf32>
    tpu.vector_store %arg11[%c0_8, %c0_9, %c0_10], %22 {strides = array<i32>} : memref<1x12x256xf32, #tpu.memory_space<vmem>>, vector<1x2x256xf32>,
    %c0_11 = arith.constant 0 : index
    %c10 = arith.constant 10 : index
    %c0_12 = arith.constant 0 : index
    %24 = vector.load %arg11[%c0_11, %c10, %c0_12] : memref<1x12x256xf32, #tpu.memory_space<vmem>>, vector<1x2x256xf32>
    tpu.vector_store %arg11[%c0_11, %c10, %c0_12], %22 {strides = array<i32>} : memref<1x12x256xf32, #tpu.memory_space<vmem>>, vector<1x2x256xf32>,
    %c0_13 = arith.constant 0 : index
    %c2 = arith.constant 2 : index
    %c0_14 = arith.constant 0 : index
    %25 = vector.load %arg11[%c0_13, %c2, %c0_14] : memref<1x12x256xf32, #tpu.memory_space<vmem>>, vector<1x8x256xf32>
    tpu.vector_store %arg11[%c0_13, %c2, %c0_14], %21 {strides = array<i32>} : memref<1x12x256xf32, #tpu.memory_space<vmem>>, vector<1x8x256xf32>,
    %c0_15 = arith.constant 0 : index
    %c0_16 = arith.constant 0 : index
    %c0_17 = arith.constant 0 : index
    %26 = vector.load %arg11[%c0_15, %c0_16, %c0_17] : memref<1x12x256xf32, #tpu.memory_space<vmem>>, vector<1x8x256xf32>
    %c0_18 = arith.constant 0 : index
    %c1 = arith.constant 1 : index
    %c0_19 = arith.constant 0 : index
    %27 = vector.load %arg11[%c0_18, %c1, %c0_19] : memref<1x12x256xf32, #tpu.memory_space<vmem>>, vector<1x8x256xf32>
    %c0_20 = arith.constant 0 : index
    %c2_21 = arith.constant 2 : index
    %c0_22 = arith.constant 0 : index
    %28 = vector.load %arg11[%c0_20, %c2_21, %c0_22] : memref<1x12x256xf32, #tpu.memory_space<vmem>>, vector<1x8x256xf32>
    %c0_23 = arith.constant 0 : index
    %c3 = arith.constant 3 : index
    %c0_24 = arith.constant 0 : index
    %29 = vector.load %arg11[%c0_23, %c3, %c0_24] : memref<1x12x256xf32, #tpu.memory_space<vmem>>, vector<1x8x256xf32>
    %c0_25 = arith.constant 0 : index
    %c4 = arith.constant 4 : index
    %c0_26 = arith.constant 0 : index
    %30 = vector.load %arg11[%c0_25, %c4, %c0_26] : memref<1x12x256xf32, #tpu.memory_space<vmem>>, vector<1x8x256xf32>
    %31 = tpu.concatenate %26, %27, %28, %29, %30 in 2 : vector<1x8x256xf32>, vector<1x8x256xf32>, vector<1x8x256xf32>, vector<1x8x256xf32>, vector<1x8x256xf32> -> vector<1x8x1280xf32>
    %32 = vector.shape_cast %31 : vector<1x8x1280xf32> to vector<8x1280xf32>
    %33 = arith.truncf %32 : vector<8x1280xf32> to vector<8x1280xbf16>
    %c0_27 = arith.constant 0 : index
    %c0_28 = arith.constant 0 : index
    %34 = vector.load %arg4[%c0_27, %c0_28] : memref<1280x256xbf16, #tpu.memory_space<vmem>>, vector<1280x256xbf16>
    %cst_29 = arith.constant dense<0.000000e+00> : vector<8x256xf32>
    %35 = tpu.matmul %33, %34, %cst_29 {dimension_numbers = #tpu.dot_dimension_numbers<[1], [0], [0], [1], [0, 0, 1, 1], [], []>} : vector<8x1280xbf16>, vector<1280x256xbf16>, vector<8x256xf32> -> vector<8x256xf32>
    %36 = vector.shape_cast %35 : vector<8x256xf32> to vector<1x4x2x256xf32>
    %cst_30 = arith.constant dense<0xFF800000> : vector<1x4x256xf32>
    %37 = vector.multi_reduction <maximumf>, %36, %cst_30 [2] : vector<1x4x2x256xf32> to vector<1x4x256xf32>
    %38 = vector.extract_strided_slice %37 {offsets = [0, 0, 0], sizes = [1, 4, 128], strides = [1, 1, 1]} : vector<1x4x256xf32> to vector<1x4x128xf32>
    %39 = vector.extract_strided_slice %37 {offsets = [0, 0, 128], sizes = [1, 4, 128], strides = [1, 1, 1]} : vector<1x4x256xf32> to vector<1x4x128xf32>
    %40 = arith.maximumf %38, %39 : vector<1x4x128xf32>
    %c0_31 = arith.constant 0 : index
    %c0_32 = arith.constant 0 : index
    %41 = vector.load %arg5[%c0_31, %c0_32] : memref<1x128xf32, #tpu.memory_space<vmem>>, vector<1x128xf32>
    %42 = vector.shape_cast %41 : vector<1x128xf32> to vector<1x1x128xf32>
    %43 = vector.broadcast %42 : vector<1x1x128xf32> to vector<1x4x128xf32>
    %44 = arith.addf %40, %43 : vector<1x4x128xf32>
    %cst_33 = arith.constant 0.000000e+00 : f32
    %45 = vector.broadcast %cst_33 : f32 to vector<1x4x128xf32>
    %46 = arith.maximumf %44, %45 : vector<1x4x128xf32>
    %47 = vector.shape_cast %46 : vector<1x4x128xf32> to vector<1x512xf32>
    %48 = arith.truncf %47 : vector<1x512xf32> to vector<1x512xbf16>
    %c0_34 = arith.constant 0 : index
    %c0_35 = arith.constant 0 : index
    %49 = vector.load %arg6[%c0_34, %c0_35] : memref<512x256xbf16, #tpu.memory_space<vmem>>, vector<512x256xbf16>
    %cst_36 = arith.constant dense<0.000000e+00> : vector<1x256xf32>
    %50 = tpu.matmul %48, %49, %cst_36 {dimension_numbers = #tpu.dot_dimension_numbers<[1], [0], [0], [1], [0, 0, 1, 1], [], []>} : vector<1x512xbf16>, vector<512x256xbf16>, vector<1x256xf32> -> vector<1x256xf32>
    %c0_37 = arith.constant 0 : index
    %c0_38 = arith.constant 0 : index
    %51 = vector.load %arg7[%c0_37, %c0_38] : memref<1x256xf32, #tpu.memory_space<vmem>>, vector<1x256xf32>
    %52 = arith.addf %50, %51 : vector<1x256xf32>
    %cst_39 = arith.constant 0.000000e+00 : f32
    %53 = vector.broadcast %cst_39 : f32 to vector<1x256xf32>
    %54 = arith.maximumf %52, %53 : vector<1x256xf32>
    %55 = arith.truncf %54 : vector<1x256xf32> to vector<1x256xbf16>
    %c0_40 = arith.constant 0 : index
    %c0_41 = arith.constant 0 : index
    %56 = vector.load %arg8[%c0_40, %c0_41] : memref<256x128xbf16, #tpu.memory_space<vmem>>, vector<256x128xbf16>
    %cst_42 = arith.constant dense<0.000000e+00> : vector<1x128xf32>
    %57 = tpu.matmul %55, %56, %cst_42 {dimension_numbers = #tpu.dot_dimension_numbers<[1], [0], [0], [1], [0, 0, 1, 1], [], []>} : vector<1x256xbf16>, vector<256x128xbf16>, vector<1x128xf32> -> vector<1x128xf32>
    %c0_43 = arith.constant 0 : index
    %c0_44 = arith.constant 0 : index
    %58 = vector.load %arg9[%c0_43, %c0_44] : memref<1x128xf32, #tpu.memory_space<vmem>>, vector<1x128xf32>
    %59 = arith.addf %57, %58 : vector<1x128xf32>
    %c0_45 = arith.constant 0 : index
    %c0_46 = arith.constant 0 : index
    %c0_47 = arith.constant 0 : index
    %60 = vector.load %arg10[%c0_45, %c0_46, %c0_47] : memref<1x1x128xf32, #tpu.memory_space<vmem>>, vector<1x1x128xf32>
    %61 = vector.shape_cast %60 : vector<1x1x128xf32> to vector<1x128xf32>
    %62 = vector.shape_cast %59 : vector<1x128xf32> to vector<1x1x128xf32>
    tpu.vector_store %arg10[%c0_45, %c0_46, %c0_47], %62 {strides = array<i32>} : memref<1x1x128xf32, #tpu.memory_space<vmem>>, vector<1x1x128xf32>,
    return
  }
  func.func @transform_0(%arg0: i32) -> (i32, i32, i32) {
    %c0_i32 = arith.constant 0 : i32
    %c0_i32_0 = arith.constant 0 : i32
    %c0_i32_1 = arith.constant 0 : i32
    return %arg0, %c0_i32, %c0_i32_0 : i32, i32, i32
  }
  func.func @transform_1(%arg0: i32) -> (i32, i32) {
    %c0_i32 = arith.constant 0 : i32
    %c0_i32_0 = arith.constant 0 : i32
    %c0_i32_1 = arith.constant 0 : i32
    return %c0_i32, %c0_i32_0 : i32, i32
  }
  func.func @transform_2(%arg0: i32) -> (i32, i32) {
    %c0_i32 = arith.constant 0 : i32
    %c0_i32_0 = arith.constant 0 : i32
    %c0_i32_1 = arith.constant 0 : i32
    return %c0_i32, %c0_i32_0 : i32, i32
  }
  func.func @transform_3(%arg0: i32) -> (i32, i32) {
    %c0_i32 = arith.constant 0 : i32
    %c0_i32_0 = arith.constant 0 : i32
    %c0_i32_1 = arith.constant 0 : i32
    return %c0_i32, %c0_i32_0 : i32, i32
  }
  func.func @transform_4(%arg0: i32) -> (i32, i32) {
    %c0_i32 = arith.constant 0 : i32
    %c0_i32_0 = arith.constant 0 : i32
    %c0_i32_1 = arith.constant 0 : i32
    return %c0_i32, %c0_i32_0 : i32, i32
  }
  func.func @transform_5(%arg0: i32) -> (i32, i32) {
    %c0_i32 = arith.constant 0 : i32
    %c0_i32_0 = arith.constant 0 : i32
    %c0_i32_1 = arith.constant 0 : i32
    return %c0_i32, %c0_i32_0 : i32, i32
  }
  func.func @transform_6(%arg0: i32) -> (i32, i32) {
    %c0_i32 = arith.constant 0 : i32
    %c0_i32_0 = arith.constant 0 : i32
    %c0_i32_1 = arith.constant 0 : i32
    return %c0_i32, %c0_i32_0 : i32, i32
  }
  func.func @transform_7(%arg0: i32) -> (i32, i32) {
    %c0_i32 = arith.constant 0 : i32
    %c0_i32_0 = arith.constant 0 : i32
    %c0_i32_1 = arith.constant 0 : i32
    return %c0_i32, %c0_i32_0 : i32, i32
  }
  func.func @transform_8(%arg0: i32) -> (i32, i32) {
    %c0_i32 = arith.constant 0 : i32
    %c0_i32_0 = arith.constant 0 : i32
    %c0_i32_1 = arith.constant 0 : i32
    return %c0_i32, %c0_i32_0 : i32, i32
  }
  func.func @transform_9(%arg0: i32) -> (i32, i32, i32) {
    %c0_i32 = arith.constant 0 : i32
    %c0_i32_0 = arith.constant 0 : i32
    %c0_i32_1 = arith.constant 0 : i32
    return %arg0, %c0_i32, %c0_i32_0 : i32, i32, i32
  }
}

</mosaic_0001>

<bundles_post_ra>
// kernel: q_net_image_forward.1
= control target key start
LH: loop header
LB: loop body
LE: loop exit
PB: predicated region body
PF: predicated region fallthrough
CT: control target
= control target key end

     0   :  { %s7848_s0 = inlined_call_operand.vmem [shape: bf16[2,32,800], index: 0, kind: input, shape index: {}]   ;;  %s7849_s1 = inlined_call_operand.vmem [shape: bf16[800,256], index: 1, kind: input, shape index: {}]   ;;  %s7850_s2 = inlined_call_operand.vmem [shape: f32[1,256], index: 2, kind: input, shape index: {}]   ;;  %s7851_s3 = inlined_call_operand.vmem [shape: bf16[1280,256], index: 3, kind: input, shape index: {}]   ;;  %s7852_s4 = inlined_call_operand.vmem [shape: f32[1,128], index: 4, kind: input, shape index: {}]   ;;  %s7853_s5 = inlined_call_operand.vmem [shape: bf16[512,256], index: 5, kind: input, shape index: {}]   ;;  %s7854_s6 = inlined_call_operand.vmem [shape: f32[1,256], index: 6, kind: input, shape index: {}]   ;;  %s7855_s7 = inlined_call_operand.vmem [shape: bf16[256,128], index: 7, kind: input, shape index: {}]   ;;  %s7856_s8 = inlined_call_operand.vmem [shape: f32[1,128], index: 8, kind: input, shape index: {}]   ;;  %s7857_s9 = inlined_call_operand.hbm [shape: f32[2,1,128], index: 9, kind: output, shape index: {}]  }
   0x1   :  { %7858 = sst [smem:[#allocation6_spill]] %s7848_s0 }
   0x2   :  { %14 = vsyncpa [#allocation4], 0 }
   0x3   :  { %16 = vsyncpa [#allocation4 + $0x1], 0  ;;  %s5447_s30 = smov 0   ;;  %s5449_s10 = smov 0  }
   0x4   :  { %s5451_s11 = smov 0   ;;  %s5453_s12 = smov 0  }
   0x5 LB: > { %s5468_s13 = sadd.s32 4294967295, %s5392_s12   ;;  %s3485_s14 = sadd.s32 4294967294, %s5392_s12   ;;  %s5392_s12 = sphi %s5453_s12, %s7867_s12   ;;  %s5388_s11 = sphi %s5451_s11, %s7866_s11   ;;  %s5384_s10 = sphi %s5449_s10, %s7865_s10   ;;  %s5380_s30 = sphi %s5447_s30, %s7864_s30  }
   0x6   : > { %s5472_s15 = sadd.s32 1, %s5392_s12   ;;  %s223_s16 = sadd.s32 1, %s5388_s11 }
   0x7   : > { %s220_s17 = ssub.s32 %s5392_s12, %s5472_s15  ;;  %p233_p0 = scmp.ne.s32.totalorder %s5388_s11, %s5384_s10 }
   0x8   : > { %p221_p1 = scmp.eq.s32.totalorder %s220_s17, 0  ;;  %p234_p2 = scmp.eq.s32.totalorder %s5468_s13, 1 }
   0x9   : > { %p239_p3 = scmp.ne.s32.totalorder %s5384_s10, %s5380_s30  ;;  %p240_p4 = scmp.eq.s32.totalorder %s3485_s14, 1 }
   0xa   : > { %s5483_s18 = scalar_select %p221_p1, %s5388_s11, %s223_s16  }
   0xb   : > { %p5485_p5 = por %p234_p2, %p233_p0  ;;  %p5489_p6 = por %p240_p4, %p239_p3 }
   0xc   : > { %p3488_p7 = scmp.ge.s32.totalorder %s5392_s12, 1  ;;  %p290_p8 = scmp.lt.s32.totalorder %s5392_s12, 3 }
   0xe   : > { %p291_p9 = pnand %p3488_p7, %p290_p8 }
   0xf   : > { %p325_p10 = scmp.lt.s32.totalorder (!%p291_p9), %s5468_s13, 1  ;;  %s7861_s0 = sld [smem:[#allocation6_spill]] (!%p291_p9) }
  0x10   : > { %294 = sbr.rel (%p291_p9) target bundleno = 910 (0x38e), region = 56  ;;  %s3426_s22 = scalar_lea.hbm (!%p291_p9), %s7857_s9, %s5468_s13 }
  0x11   : > { %s3430_s27 = sshll.u32 (!%p291_p9), %s3426_s22, 4  ;;  %s5350_s17 = scalar_lea.hbm (!%p291_p9), %s7857_s9, 2  ;;  %s3431_s27 = int_to_ptr.hbm [resolvable:$true] %s3430_s27 }
  0x15   : > { %v3604_v0 = vld [vmem:[%s7849_s1 + $0x70] sm:$0xf]  ;;  %v4961_v1 = vld [vmem:[%s7849_s1 + $0x74] sm:$0xf0]  ;;  %v3596_v11 = vld [vmem:[%s7849_s1 + $0x60] sm:$0xf] }
  0x16   : > { %v3668_v2 = vld [vmem:[%s7849_s1 + $0xf0] sm:$0xf]  ;;  %v3605_v3 = vor.u32 %v4961_v1, %v3604_v0  ;;  %v4977_v4 = vld [vmem:[%s7849_s1 + $0xf4] sm:$0xf0]  ;;  %v4959_v13 = vld [vmem:[%s7849_s1 + $0x64] sm:$0xf0] }
  0x17   : > { %v3732_v5 = vld [vmem:[%s7849_s1 + $0x170] sm:$0xf]  ;;  %v4993_v6 = vld [vmem:[%s7849_s1 + $0x174] sm:$0xf0]  ;;  %v3669_v7 = vor.u32 %v4977_v4, %v3668_v2  ;;  %v3660_v14 = vld [vmem:[%s7849_s1 + $0xe0] sm:$0xf]  ;;  %v3597_v16 = vor.u32 %v4959_v13, %v3596_v11 }
  0x18   : > { %v3733_v8 = vor.u32 %v4993_v6, %v3732_v5  ;;  %v3796_v9 = vld [vmem:[%s7849_s1 + $0x1f0] sm:$0xf]  ;;  %v5009_v10 = vld [vmem:[%s7849_s1 + $0x1f4] sm:$0xf0]  ;;  %1024 = vmatpush.bf16.msra.mxu0 %v3605_v3  ;;  %v4975_v15 = vld [vmem:[%s7849_s1 + $0xe4] sm:$0xf0] }
  0x19   : > { %v3797_v12 = vor.u32 %v5009_v10, %v3796_v9  ;;  %1043 = vmatpush.bf16.msra.mxu1 %v3669_v7  ;;  %v3661_v17 = vor.u32 %v4975_v15, %v3660_v14  ;;  %v3724_v18 = vld [vmem:[%s7849_s1 + $0x160] sm:$0xf]  ;;  %v4991_v19 = vld [vmem:[%s7849_s1 + $0x164] sm:$0xf0]  ;;  %v3588_v23 = vld [vmem:[%s7849_s1 + $0x50] sm:$0xf] }
  0x1a   : > { %1062 = vmatpush.bf16.msra.mxu2 %v3733_v8  ;;  %v3788_v20 = vld [vmem:[%s7849_s1 + $0x1e0] sm:$0xf]  ;;  %v3725_v21 = vor.u32 %v4991_v19, %v3724_v18  ;;  %v5007_v22 = vld [vmem:[%s7849_s1 + $0x1e4] sm:$0xf0]  ;;  %v4957_v24 = vld [vmem:[%s7849_s1 + $0x54] sm:$0xf0] }
  0x1b   : > { %1081 = vmatpush.bf16.msra.mxu3 %v3797_v12  ;;  %v3789_v25 = vor.u32 %v5007_v22, %v3788_v20  ;;  %v3652_v26 = vld [vmem:[%s7849_s1 + $0xd0] sm:$0xf]  ;;  %v4973_v27 = vld [vmem:[%s7849_s1 + $0xd4] sm:$0xf0]  ;;  %v3589_v29 = vor.u32 %v4957_v24, %v3588_v23  ;;  %v3580_v35 = vld [vmem:[%s7849_s1 + $0x40] sm:$0xf] }
  0x1c   : > { %v3716_v28 = vld [vmem:[%s7849_s1 + $0x150] sm:$0xf]  ;;  %1025 = vmatpush.bf16.msra.mxu0 %v3597_v16  ;;  %v4989_v30 = vld [vmem:[%s7849_s1 + $0x154] sm:$0xf0]  ;;  %v3653_v33 = vor.u32 %v4973_v27, %v3652_v26  ;;  %v4955_v36 = vld [vmem:[%s7849_s1 + $0x44] sm:$0xf0] }
  0x1d   : > { %v3780_v31 = vld [vmem:[%s7849_s1 + $0x1d0] sm:$0xf]  ;;  %v5005_v32 = vld [vmem:[%s7849_s1 + $0x1d4] sm:$0xf0]  ;;  %1044 = vmatpush.bf16.msra.mxu1 %v3661_v17  ;;  %v3717_v34 = vor.u32 %v4989_v30, %v3716_v28  ;;  %v3644_v37 = vld [vmem:[%s7849_s1 + $0xc0] sm:$0xf]  ;;  %v3581_v44 = vor.u32 %v4955_v36, %v3580_v35 }
  0x1e   : > { %1063 = vmatpush.bf16.msra.mxu2 %v3725_v21  ;;  %v3781_v38 = vor.u32 %v5005_v32, %v3780_v31  ;;  %v4971_v39 = vld [vmem:[%s7849_s1 + $0xc4] sm:$0xf0]  ;;  %v3708_v40 = vld [vmem:[%s7849_s1 + $0x140] sm:$0xf]  ;;  %v3572_v47 = vld [vmem:[%s7849_s1 + $0x30] sm:$0xf] }
  0x1f   : > { %1082 = vmatpush.bf16.msra.mxu3 %v3789_v25  ;;  %v4987_v41 = vld [vmem:[%s7849_s1 + $0x144] sm:$0xf0]  ;;  %v3772_v42 = vld [vmem:[%s7849_s1 + $0x1c0] sm:$0xf]  ;;  %v3645_v45 = vor.u32 %v4971_v39, %v3644_v37  ;;  %v4953_v48 = vld [vmem:[%s7849_s1 + $0x34] sm:$0xf0] }
  0x20   : > { %v5003_v43 = vld [vmem:[%s7849_s1 + $0x1c4] sm:$0xf0]  ;;  %1026 = vmatpush.bf16.msra.mxu0 %v3589_v29  ;;  %v3709_v46 = vor.u32 %v4987_v41, %v3708_v40  ;;  %v3636_v49 = vld [vmem:[%s7849_s1 + $0xb0] sm:$0xf]  ;;  %v4969_v51 = vld [vmem:[%s7849_s1 + $0xb4] sm:$0xf0]  ;;  %v3573_v56 = vor.u32 %v4953_v48, %v3572_v47 }
  0x21   : > { %1045 = vmatpush.bf16.msra.mxu1 %v3653_v33  ;;  %v3773_v50 = vor.u32 %v5003_v43, %v3772_v42  ;;  %v3700_v52 = vld [vmem:[%s7849_s1 + $0x130] sm:$0xf]  ;;  %v4985_v53 = vld [vmem:[%s7849_s1 + $0x134] sm:$0xf0]  ;;  %v3637_v57 = vor.u32 %v4969_v51, %v3636_v49  ;;  %v3564_v59 = vld [vmem:[%s7849_s1 + $0x20] sm:$0xf] }
  0x22   : > { %1064 = vmatpush.bf16.msra.mxu2 %v3717_v34  ;;  %v3764_v54 = vld [vmem:[%s7849_s1 + $0x1b0] sm:$0xf]  ;;  %v5001_v55 = vld [vmem:[%s7849_s1 + $0x1b4] sm:$0xf0]  ;;  %v3701_v58 = vor.u32 %v4985_v53, %v3700_v52  ;;  %v4951_v60 = vld [vmem:[%s7849_s1 + $0x24] sm:$0xf0] }
  0x23   : > { %1083 = vmatpush.bf16.msra.mxu3 %v3781_v38  ;;  %v3628_v61 = vld [vmem:[%s7849_s1 + $0xa0] sm:$0xf]  ;;  %v3765_v62 = vor.u32 %v5001_v55, %v3764_v54  ;;  %v4967_v63 = vld [vmem:[%s7849_s1 + $0xa4] sm:$0xf0]  ;;  %v3565_v4 = vor.u32 %v4951_v60, %v3564_v59  ;;  %v3556_v5 = vld [vmem:[%s7849_s1 + $0x10] sm:$0xf] }
  0x24   : > { %1027 = vmatpush.bf16.msra.mxu0 %v3581_v44  ;;  %v3692_v0 = vld [vmem:[%s7849_s1 + $0x120] sm:$0xf]  ;;  %v4983_v1 = vld [vmem:[%s7849_s1 + $0x124] sm:$0xf0]  ;;  %v3629_v6 = vor.u32 %v4967_v63, %v3628_v61  ;;  %v4949_v8 = vld [vmem:[%s7849_s1 + $0x14] sm:$0xf0] }
  0x25   : > { %1046 = vmatpush.bf16.msra.mxu1 %v3645_v45  ;;  %v3756_v2 = vld [vmem:[%s7849_s1 + $0x1a0] sm:$0xf]  ;;  %v4999_v3 = vld [vmem:[%s7849_s1 + $0x1a4] sm:$0xf0]  ;;  %v3693_v7 = vor.u32 %v4983_v1, %v3692_v0  ;;  %v3620_v9 = vld [vmem:[%s7849_s1 + $0x90] sm:$0xf]  ;;  %v3557_v16 = vor.u32 %v4949_v8, %v3556_v5 }
  0x26   : > { %1065 = vmatpush.bf16.msra.mxu2 %v3709_v46  ;;  %v4965_v10 = vld [vmem:[%s7849_s1 + $0x94] sm:$0xf0]  ;;  %v3757_v11 = vor.u32 %v4999_v3, %v3756_v2  ;;  %v3684_v12 = vld [vmem:[%s7849_s1 + $0x110] sm:$0xf]  ;;  %v3548_v17 = vld [vmem:[%s7849_s1] sm:$0xf] }
  0x27   : > { %1084 = vmatpush.bf16.msra.mxu3 %v3773_v50  ;;  %v4981_v13 = vld [vmem:[%s7849_s1 + $0x114] sm:$0xf0]  ;;  %v3748_v14 = vld [vmem:[%s7849_s1 + $0x190] sm:$0xf]  ;;  %v4947_v18 = vld [vmem:[%s7849_s1 + $0x4] sm:$0xf0]  ;;  %v3621_v19 = vor.u32 %v4965_v10, %v3620_v9 }
  0x28   : > { %1028 = vmatpush.bf16.msra.mxu0 %v3573_v56  ;;  %v4997_v15 = vld [vmem:[%s7849_s1 + $0x194] sm:$0xf0]  ;;  %s326_s29 = scalar_select %p325_p10, %s5468_s13, 1  ;;  %v3685_v20 = vor.u32 %v4981_v13, %v3684_v12  ;;  %v3612_v21 = vld [vmem:[%s7849_s1 + $0x80] sm:$0xf]  ;;  %v3549_v30 = vor.u32 %v4947_v18, %v3548_v17  ;;  %vm1017_vm0 = vcmask 261120  }
  0x29   : > { %1047 = vmatpush.bf16.msra.mxu1 %v3637_v57  ;;  %v4963_v22 = vld [vmem:[%s7849_s1 + $0x84] sm:$0xf0]  ;;  %v3676_v23 = vld [vmem:[%s7849_s1 + $0x100] sm:$0xf]  ;;  %v3749_v24 = vor.u32 %v4997_v15, %v3748_v14  ;;  %v3860_v28 = vld [vmem:[%s7849_s1 + $0x270] sm:$0xf] }
  0x2a   : > { %1066 = vmatpush.bf16.msra.mxu2 %v3701_v58  ;;  %v4979_v25 = vld [vmem:[%s7849_s1 + $0x104] sm:$0xf0]  ;;  %v3740_v26 = vld [vmem:[%s7849_s1 + $0x180] sm:$0xf]  ;;  %s5286_s28 = smul.u32 112, %s326_s29  ;;  %v3613_v33 = vor.u32 %v4963_v22, %v3612_v21  ;;  %vm1342_vm1 = vcmask 1046528  }
  0x2b   : > { %1085 = vmatpush.bf16.msra.mxu3 %v3765_v62  ;;  %v4995_v27 = vld [vmem:[%s7849_s1 + $0x184] sm:$0xf0]  ;;  %v5025_v29 = vld [vmem:[%s7849_s1 + $0x274] sm:$0xf0]  ;;  %v3924_v31 = vld [vmem:[%s7849_s1 + $0x2f0] sm:$0xf]  ;;  %v3677_v34 = vor.u32 %v4979_v25, %v3676_v23 }
  0x2c   : > { %1029 = vmatpush.bf16.msra.mxu0 %v3565_v4  ;;  %s5698_s26 = scalar_lea.vmem %s7861_s0, %s5286_s28  ;;  %v5041_v32 = vld [vmem:[%s7849_s1 + $0x2f4] sm:$0xf0]  ;;  %v4960_v38 = vld [vmem:[%s7849_s1 + $0x74] sm:$0xf]  ;;  %v3606_v39 = vld [vmem:[%s7849_s1 + $0x78] sm:$0xf0]  ;;  %v3741_v41 = vor.u32 %v4995_v27, %v3740_v26  ;;  %v3861_v45 = vor.u32 %v5025_v29, %v3860_v28 }
  0x2d   : > { %1048 = vmatpush.bf16.msra.mxu1 %v3629_v6  ;;  %v3492_v35 = vld [vmem:[%s5698_s26] sm:$0xf]  ;;  %v4935_v36 = vld [vmem:[%s5698_s26 + $0x18] sm:$0xf0]  ;;  %v4932_v37 = vld [vmem:[%s5698_s26 + $0x4] sm:$0xf]  ;;  %v3925_v47 = vor.u32 %v5041_v32, %v3924_v31  ;;  %v3609_v56 = vor.u32 %v4960_v38, %v3606_v39 }
  0x2e   : > { %1067 = vmatpush.bf16.msra.mxu2 %v3693_v7  ;;  %v3852_v40 = vld [vmem:[%s7849_s1 + $0x260] sm:$0xf]  ;;  %v3500_v43 = vld [vmem:[%s5698_s26 + $0x8] sm:$0xf]  ;;  %v4936_v44 = vld [vmem:[%s5698_s26 + $0x20] sm:$0xf0]  ;;  %v5721_v46 = vor.u32 %v4935_v36, %v3492_v35 }
  0x2f   : > { %1086 = vmatpush.bf16.msra.mxu3 %v3757_v11  ;;  %v3494_v42 = vld [vmem:[%s5698_s26 + $0x1c] sm:$0xf0]  ;;  %v4933_v48 = vld [vmem:[%s5698_s26 + $0xc] sm:$0xf]  ;;  %v3502_v49 = vld [vmem:[%s5698_s26 + $0x24] sm:$0xf0]  ;;  %v5730_v52 = vor.u32 %v4936_v44, %v3500_v43 }
  0x30   : > { %1030 = vmatpush.bf16.msra.mxu0 %v3557_v16  ;;  %v5023_v50 = vld [vmem:[%s7849_s1 + $0x264] sm:$0xf0]  ;;  %v5728_v51 = vor.u32 %v4932_v37, %v3494_v42  ;;  %v3916_v53 = vld [vmem:[%s7849_s1 + $0x2e0] sm:$0xf]  ;;  %v5738_v55 = vor.u32 %v4933_v48, %v3502_v49  ;;  %v4958_v58 = vld [vmem:[%s7849_s1 + $0x64] sm:$0xf] }
  0x31   : > { %1049 = vmatpush.bf16.msra.mxu1 %v3621_v19  ;;  %v5039_v54 = vld [vmem:[%s7849_s1 + $0x2e4] sm:$0xf0]  ;;  %v3853_v57 = vor.u32 %v5023_v50, %v3852_v40  ;;  %v3598_v60 = vld [vmem:[%s7849_s1 + $0x68] sm:$0xf0]  ;;  %v3844_v61 = vld [vmem:[%s7849_s1 + $0x250] sm:$0xf] }
  0x32   : > { %1068 = vmatpush.bf16.msra.mxu2 %v3685_v20  ;;  %v3917_v59 = vor.u32 %v5039_v54, %v3916_v53  ;;  %v5021_v62 = vld [vmem:[%s7849_s1 + $0x254] sm:$0xf0]  ;;  %v3908_v63 = vld [vmem:[%s7849_s1 + $0x2d0] sm:$0xf]  ;;  %v3601_v1 = vor.u32 %v4958_v58, %v3598_v60  ;;  %v4956_v3 = vld [vmem:[%s7849_s1 + $0x54] sm:$0xf] }
  0x33   : > { %1087 = vmatpush.bf16.msra.mxu3 %v3749_v24  ;;  %v5037_v0 = vld [vmem:[%s7849_s1 + $0x2d4] sm:$0xf0]  ;;  %v3845_v2 = vor.u32 %v5021_v62, %v3844_v61  ;;  %v3590_v5 = vld [vmem:[%s7849_s1 + $0x58] sm:$0xf0]  ;;  %v3836_v6 = vld [vmem:[%s7849_s1 + $0x240] sm:$0xf] }
  0x34   : > { %1031 = vmatpush.bf16.msra.mxu0 %v3549_v30  ;;  %v3909_v4 = vor.u32 %v5037_v0, %v3908_v63  ;;  %v5019_v7 = vld [vmem:[%s7849_s1 + $0x244] sm:$0xf0]  ;;  %v3900_v8 = vld [vmem:[%s7849_s1 + $0x2c0] sm:$0xf]  ;;  %v4954_v10 = vld [vmem:[%s7849_s1 + $0x44] sm:$0xf]  ;;  %v3593_v12 = vor.u32 %v4956_v3, %v3590_v5 }
  0x35   : > { %1050 = vmatpush.bf16.msra.mxu1 %v3613_v33  ;;  %v5035_v9 = vld [vmem:[%s7849_s1 + $0x2c4] sm:$0xf0]  ;;  %v3582_v11 = vld [vmem:[%s7849_s1 + $0x48] sm:$0xf0]  ;;  %v3837_v13 = vor.u32 %v5019_v7, %v3836_v6  ;;  %v3520_v14 = vld [vmem:[%s5698_s26 + $0x38] sm:$0xf] }
  0x36   : > { %1069 = vmatpush.bf16.msra.mxu2 %v3677_v34  ;;  %v4942_v15 = vld [vmem:[%s5698_s26 + $0x50] sm:$0xf0]  ;;  %v3940_v16 = vld [vmem:[%s7849_s1 + $0x310] sm:$0xf]  ;;  %v5045_v17 = vld [vmem:[%s7849_s1 + $0x314] sm:$0xf0]  ;;  %v3901_v18 = vor.u32 %v5035_v9, %v3900_v8  ;;  %v3585_v30 = vor.u32 %v4954_v10, %v3582_v11 }
  0x37   : > { %1088 = vmatpush.bf16.msra.mxu3 %v3741_v41  ;;  %1032 = vmatmul.bf16.vlgmr.msra.gmra.mxu0 %v5721_v46  ;;  %v4939_v19 = vld [vmem:[%s5698_s26 + $0x3c] sm:$0xf]  ;;  %v3522_v20 = vld [vmem:[%s5698_s26 + $0x54] sm:$0xf0]  ;;  %v3828_v21 = vld [vmem:[%s7849_s1 + $0x230] sm:$0xf]  ;;  %v3941_v23 = vor.u32 %v5045_v17, %v3940_v16  ;;  %v5821_v36 = vor.u32 %v4942_v15, %v3520_v14 }
  0x38   : > { %1100 = vmatpush.bf16.msrb.mxu0 %v3861_v45  ;;  %1051 = vmatmul.bf16.vlgmr.msra.gmra.mxu1 %v5728_v51  ;;  %v5017_v22 = vld [vmem:[%s7849_s1 + $0x234] sm:$0xf0]  ;;  %v3892_v24 = vld [vmem:[%s7849_s1 + $0x2b0] sm:$0xf]  ;;  %v3932_v26 = vld [vmem:[%s7849_s1 + $0x300] sm:$0xf]  ;;  %v5832_v41 = vor.u32 %v4939_v19, %v3522_v20 }
  0x39   : > { %1119 = vmatpush.bf16.msrb.mxu1 %v3925_v47  ;;  %1070 = vmatmul.bf16.vlgmr.msra.gmra.mxu2 %v5730_v52  ;;  %v5033_v25 = vld [vmem:[%s7849_s1 + $0x2b4] sm:$0xf0]  ;;  %v3528_v27 = vld [vmem:[%s5698_s26 + $0x40] sm:$0xf]  ;;  %v4943_v28 = vld [vmem:[%s5698_s26 + $0x58] sm:$0xf0]  ;;  %v3829_v31 = vor.u32 %v5017_v22, %v3828_v21 }
  0x3a   : > { %1089 = vmatmul.bf16.vlgmr.msra.gmra.mxu3 %v5738_v55  ;;  %1144 = vmatpush.bf16.msrb.mxu2 %v3941_v23  ;;  %v5043_v29 = vld [vmem:[%s7849_s1 + $0x304] sm:$0xf0]  ;;  %v4940_v32 = vld [vmem:[%s5698_s26 + $0x44] sm:$0xf]  ;;  %v3530_v33 = vld [vmem:[%s5698_s26 + $0x5c] sm:$0xf0]  ;;  %v3893_v37 = vor.u32 %v5033_v25, %v3892_v24  ;;  %v5834_v42 = vor.u32 %v4943_v28, %v3528_v27 }
  0x3b   : > { %1157 = vmatpush.bf16.msrb.mxu3 %v3609_v56  ;;  %v4952_v34 = vld [vmem:[%s7849_s1 + $0x34] sm:$0xf]  ;;  %v3933_v35 = vor.u32 %v5043_v29, %v3932_v26  ;;  %v3574_v38 = vld [vmem:[%s7849_s1 + $0x38] sm:$0xf0]  ;;  %v3820_v39 = vld [vmem:[%s7849_s1 + $0x220] sm:$0xf]  ;;  %v5842_v45 = vor.u32 %v4940_v32, %v3530_v33 }
  0x3c   : > { %1101 = vmatpush.bf16.msrb.mxu0 %v3853_v57  ;;  %v5015_v40 = vld [vmem:[%s7849_s1 + $0x224] sm:$0xf0]  ;;  %v3884_v43 = vld [vmem:[%s7849_s1 + $0x2a0] sm:$0xf]  ;;  %v5008_v47 = vld [vmem:[%s7849_s1 + $0x1f4] sm:$0xf]  ;;  %v3577_v48 = vor.u32 %v4952_v34, %v3574_v38 }
  0x3d   : > { %1120 = vmatpush.bf16.msrb.mxu1 %v3917_v59  ;;  %v5031_v44 = vld [vmem:[%s7849_s1 + $0x2a4] sm:$0xf0]  ;;  %v3821_v49 = vor.u32 %v5015_v40, %v3820_v39  ;;  %v4950_v50 = vld [vmem:[%s7849_s1 + $0x24] sm:$0xf]  ;;  %v3566_v53 = vld [vmem:[%s7849_s1 + $0x28] sm:$0xf0] }
  0x3e   : > { %1145 = vmatpush.bf16.msrb.mxu2 %v3933_v35  ;;  %v3798_v54 = vld [vmem:[%s7849_s1 + $0x1f8] sm:$0xf0]  ;;  %v3885_v56 = vor.u32 %v5031_v44, %v3884_v43  ;;  %v3812_v57 = vld [vmem:[%s7849_s1 + $0x210] sm:$0xf]  ;;  %v5013_v58 = vld [vmem:[%s7849_s1 + $0x214] sm:$0xf0] }
  0x3f   : > { %1158 = vmatpush.bf16.msrb.mxu3 %v3601_v1  ;;  %v3876_v59 = vld [vmem:[%s7849_s1 + $0x290] sm:$0xf]  ;;  %v3801_v60 = vor.u32 %v5008_v47, %v3798_v54  ;;  %v5029_v61 = vld [vmem:[%s7849_s1 + $0x294] sm:$0xf0]  ;;  %v5006_v62 = vld [vmem:[%s7849_s1 + $0x1e4] sm:$0xf]  ;;  %v3813_v3 = vor.u32 %v5013_v58, %v3812_v57 }
  0x40   : > { %1102 = vmatpush.bf16.msrb.mxu0 %v3845_v2  ;;  %v3790_v63 = vld [vmem:[%s7849_s1 + $0x1e8] sm:$0xf0]  ;;  %v4948_v0 = vld [vmem:[%s7849_s1 + $0x14] sm:$0xf]  ;;  %v3569_v2 = vor.u32 %v4950_v50, %v3566_v53  ;;  %v3804_v5 = vld [vmem:[%s7849_s1 + $0x200] sm:$0xf]  ;;  %v3877_v7 = vor.u32 %v5029_v61, %v3876_v59 }
  0x41   : > { %1121 = vmatpush.bf16.msrb.mxu1 %v3909_v4  ;;  %v3793_v1 = vor.u32 %v5006_v62, %v3790_v63  ;;  %v3558_v4 = vld [vmem:[%s7849_s1 + $0x18] sm:$0xf0]  ;;  %v5011_v6 = vld [vmem:[%s7849_s1 + $0x204] sm:$0xf0]  ;;  %v3868_v8 = vld [vmem:[%s7849_s1 + $0x280] sm:$0xf] }
  0x42   : > { %1214 = vmatpush.bf16.msra.mxu2 %v3801_v60  ;;  %v5004_v9 = vld [vmem:[%s7849_s1 + $0x1d4] sm:$0xf]  ;;  %v3782_v10 = vld [vmem:[%s7849_s1 + $0x1d8] sm:$0xf0]  ;;  %v5027_v11 = vld [vmem:[%s7849_s1 + $0x284] sm:$0xf0]  ;;  %v3561_v17 = vor.u32 %v4948_v0, %v3558_v4 }
  0x43   : > { %1159 = vmatpush.bf16.msrb.mxu3 %v3593_v12  ;;  %v4976_v12 = vld [vmem:[%s7849_s1 + $0xf4] sm:$0xf]  ;;  %v3734_v15 = vld [vmem:[%s7849_s1 + $0x178] sm:$0xf0]  ;;  %v3785_v16 = vor.u32 %v5004_v9, %v3782_v10  ;;  %v4946_v19 = vld [vmem:[%s7849_s1 + $0x4] sm:$0xf]  ;;  %v3869_v22 = vor.u32 %v5027_v11, %v3868_v8 }
  0x44   : > { %1103 = vmatpush.bf16.msrb.mxu0 %v3837_v13  ;;  %v3670_v13 = vld [vmem:[%s7849_s1 + $0xf8] sm:$0xf0]  ;;  %v4992_v14 = vld [vmem:[%s7849_s1 + $0x174] sm:$0xf]  ;;  %v5002_v20 = vld [vmem:[%s7849_s1 + $0x1c4] sm:$0xf] }
  0x45   : > { %1122 = vmatpush.bf16.msrb.mxu1 %v3901_v18  ;;  %v3805_v18 = vor.u32 %v5011_v6, %v3804_v5  ;;  %v3774_v21 = vld [vmem:[%s7849_s1 + $0x1c8] sm:$0xf0]  ;;  %v3508_v24 = vld [vmem:[%s5698_s26 + $0x10] sm:$0xf]  ;;  %v3673_v26 = vor.u32 %v4976_v12, %v3670_v13  ;;  %v4934_v27 = vld [vmem:[%s5698_s26 + $0x14] sm:$0xf]  ;;  %v3737_v28 = vor.u32 %v4992_v14, %v3734_v15 }
  0x46   : > { %1215 = vmatpush.bf16.msra.mxu2 %v3793_v1  ;;  %v3550_v23 = vld [vmem:[%s7849_s1 + $0x8] sm:$0xf0]  ;;  %v5024_v29 = vld [vmem:[%s7849_s1 + $0x274] sm:$0xf]  ;;  %v3516_v32 = vld [vmem:[%s5698_s26 + $0x18] sm:$0xf]  ;;  %v3777_v34 = vor.u32 %v5002_v20, %v3774_v21 }
  0x47   : > { %1160 = vmatpush.bf16.msrb.mxu3 %v3585_v30  ;;  %1037 = vmatmul.bf16.gmra.mxu0 %v5821_v36  ;;  %v4937_v25 = vld [vmem:[%s5698_s26 + $0x28] sm:$0xf0]  ;;  %v3862_v30 = vld [vmem:[%s7849_s1 + $0x278] sm:$0xf0]  ;;  %v4938_v33 = vld [vmem:[%s5698_s26 + $0x30] sm:$0xf0]  ;;  %v3553_v35 = vor.u32 %v4946_v19, %v3550_v23 }
  0x48   : > { %1104 = vmatpush.bf16.msrb.mxu0 %v3829_v31  ;;  %1056 = vmatmul.bf16.gmra.mxu1 %v5832_v41  ;;  %v3510_v31 = vld [vmem:[%s5698_s26 + $0x2c] sm:$0xf0]  ;;  %v3662_v38 = vld [vmem:[%s7849_s1 + $0xe8] sm:$0xf0]  ;;  %v4990_v39 = vld [vmem:[%s7849_s1 + $0x164] sm:$0xf]  ;;  %v5947_v40 = vor.u32 %v4937_v25, %v3508_v24  ;;  %v3865_v43 = vor.u32 %v5024_v29, %v3862_v30  ;;  %v5960_v50 = vor.u32 %v4938_v33, %v3516_v32 }
  0x49   : > { %1123 = vmatpush.bf16.msrb.mxu1 %v3893_v37  ;;  %1075 = vmatmul.bf16.gmra.mxu2 %v5834_v42  ;;  %v4974_v37 = vld [vmem:[%s7849_s1 + $0xe4] sm:$0xf]  ;;  %v3726_v44 = vld [vmem:[%s7849_s1 + $0x168] sm:$0xf0]  ;;  %v5000_v47 = vld [vmem:[%s7849_s1 + $0x1b4] sm:$0xf] }
  0x4a   : > { %1094 = vmatmul.bf16.gmra.mxu3 %v5842_v45  ;;  %1216 = vmatpush.bf16.msra.mxu2 %v3785_v16  ;;  %v5022_v53 = vld [vmem:[%s7849_s1 + $0x264] sm:$0xf]  ;;  %v3854_v54 = vld [vmem:[%s7849_s1 + $0x268] sm:$0xf0]  ;;  %v3729_v57 = vor.u32 %v4990_v39, %v3726_v44  ;;  %v4972_v58 = vld [vmem:[%s7849_s1 + $0xd4] sm:$0xf] }
  0x4b   : > { %1161 = vmatpush.bf16.msrb.mxu3 %v3577_v48  ;;  %v3766_v48 = vld [vmem:[%s7849_s1 + $0x1b8] sm:$0xf0]  ;;  %v4988_v60 = vld [vmem:[%s7849_s1 + $0x154] sm:$0xf]  ;;  %v3857_v62 = vor.u32 %v5022_v53, %v3854_v54  ;;  %v4998_v0 = vld [vmem:[%s7849_s1 + $0x1a4] sm:$0xf] }
  0x4c   : > { %1105 = vmatpush.bf16.msrb.mxu0 %v3821_v49  ;;  %v5958_v49 = vor.u32 %v4934_v27, %v3510_v31  ;;  %v3654_v59 = vld [vmem:[%s7849_s1 + $0xd8] sm:$0xf0]  ;;  %v3769_v61 = vor.u32 %v5000_v47, %v3766_v48  ;;  %v3758_v1 = vld [vmem:[%s7849_s1 + $0x1a8] sm:$0xf0]  ;;  %v4970_v6 = vld [vmem:[%s7849_s1 + $0xc4] sm:$0xf] }
  0x4d   : > { %1124 = vmatpush.bf16.msrb.mxu1 %v3885_v56  ;;  %v3665_v56 = vor.u32 %v4974_v37, %v3662_v38  ;;  %v3718_v63 = vld [vmem:[%s7849_s1 + $0x158] sm:$0xf0]  ;;  %v3657_v4 = vor.u32 %v4972_v58, %v3654_v59  ;;  %v4986_v8 = vld [vmem:[%s7849_s1 + $0x144] sm:$0xf]  ;;  %v3710_v10 = vld [vmem:[%s7849_s1 + $0x148] sm:$0xf0] }
  0x4e   : > { %1217 = vmatpush.bf16.msra.mxu2 %v3777_v34  ;;  %v3721_v5 = vor.u32 %v4988_v60, %v3718_v63  ;;  %v4996_v11 = vld [vmem:[%s7849_s1 + $0x194] sm:$0xf]  ;;  %v3750_v12 = vld [vmem:[%s7849_s1 + $0x198] sm:$0xf0]  ;;  %v5018_v13 = vld [vmem:[%s7849_s1 + $0x244] sm:$0xf] }
  0x4f   : > { %1162 = vmatpush.bf16.msrb.mxu3 %v3569_v2  ;;  %v5020_v2 = vld [vmem:[%s7849_s1 + $0x254] sm:$0xf]  ;;  %v3838_v14 = vld [vmem:[%s7849_s1 + $0x248] sm:$0xf0]  ;;  %v4944_v19 = vld [vmem:[%s5698_s26 + $0x60] sm:$0xf0] }
  0x50   : > { %1106 = vmatpush.bf16.msrb.mxu0 %v3813_v3  ;;  %v3846_v3 = vld [vmem:[%s7849_s1 + $0x258] sm:$0xf0]  ;;  %v4968_v16 = vld [vmem:[%s7849_s1 + $0xb4] sm:$0xf]  ;;  %v3841_v23 = vor.u32 %v5018_v13, %v3838_v14  ;;  %v4994_v25 = vld [vmem:[%s7849_s1 + $0x184] sm:$0xf] }
  0x51   : > { %1125 = vmatpush.bf16.msrb.mxu1 %v3877_v7  ;;  %v3646_v7 = vld [vmem:[%s7849_s1 + $0xc8] sm:$0xf0]  ;;  %v3849_v9 = vor.u32 %v5020_v2, %v3846_v3  ;;  %v3638_v20 = vld [vmem:[%s7849_s1 + $0xb8] sm:$0xf0]  ;;  %v4984_v21 = vld [vmem:[%s7849_s1 + $0x134] sm:$0xf] }
  0x52   : > { %1218 = vmatpush.bf16.msra.mxu2 %v3769_v61  ;;  %v3649_v15 = vor.u32 %v4970_v6, %v3646_v7  ;;  %v3702_v24 = vld [vmem:[%s7849_s1 + $0x138] sm:$0xf0]  ;;  %v4941_v27 = vld [vmem:[%s5698_s26 + $0x4c] sm:$0xf]  ;;  %v3538_v30 = vld [vmem:[%s5698_s26 + $0x64] sm:$0xf0]  ;;  %v3641_v33 = vor.u32 %v4968_v16, %v3638_v20 }
  0x53   : > { %1163 = vmatpush.bf16.msrb.mxu3 %v3561_v17  ;;  %v3713_v17 = vor.u32 %v4986_v8, %v3710_v10  ;;  %v3830_v29 = vld [vmem:[%s7849_s1 + $0x238] sm:$0xf0]  ;;  %v3544_v31 = vld [vmem:[%s5698_s26 + $0x50] sm:$0xf]  ;;  %v4945_v32 = vld [vmem:[%s5698_s26 + $0x68] sm:$0xf0]  ;;  %v3705_v34 = vor.u32 %v4984_v21, %v3702_v24  ;;  %v6065_v48 = vor.u32 %v4941_v27, %v3538_v30 }
  0x54   : > { %1107 = vmatpush.bf16.msrb.mxu0 %v3805_v18  ;;  %v3536_v18 = vld [vmem:[%s5698_s26 + $0x48] sm:$0xf]  ;;  %v3630_v37 = vld [vmem:[%s7849_s1 + $0xa8] sm:$0xf0]  ;;  %v4982_v44 = vld [vmem:[%s7849_s1 + $0x124] sm:$0xf]  ;;  %v6067_v53 = vor.u32 %v4945_v32, %v3544_v31 }
  0x55   : > { %1126 = vmatpush.bf16.msrb.mxu1 %v3869_v22  ;;  %v3753_v22 = vor.u32 %v4996_v11, %v3750_v12  ;;  %v6057_v39 = vor.u32 %v4944_v19, %v3536_v18  ;;  %v3694_v47 = vld [vmem:[%s7849_s1 + $0x128] sm:$0xf0]  ;;  %v5014_v54 = vld [vmem:[%s7849_s1 + $0x224] sm:$0xf]  ;;  %v4964_v59 = vld [vmem:[%s7849_s1 + $0x94] sm:$0xf] }
  0x56   : > { %v3697_v58 = vor.u32 %v4982_v44, %v3694_v47  ;;  %v3622_v60 = vld [vmem:[%s7849_s1 + $0x98] sm:$0xf0]  ;;  %v4962_v3 = vld [vmem:[%s7849_s1 + $0x84] sm:$0xf]  ;;  %v3806_v10 = vld [vmem:[%s7849_s1 + $0x208] sm:$0xf0] }
  0x57   : > { %1164 = vmatpush.bf16.msrb.mxu3 %v3553_v35  ;;  %1108 = vmatmul.bf16.vlgmr.msrb.gmra.mxu0 %v5947_v40  ;;  %v4966_v35 = vld [vmem:[%s7849_s1 + $0xa4] sm:$0xf]  ;;  %v3686_v63 = vld [vmem:[%s7849_s1 + $0x118] sm:$0xf0]  ;;  %v3625_v2 = vor.u32 %v4964_v59, %v3622_v60  ;;  %v5044_v11 = vld [vmem:[%s7849_s1 + $0x314] sm:$0xf] }
  0x58   : > { %1176 = vmatpush.bf16.msra.mxu0 %v3673_v26  ;;  %1127 = vmatmul.bf16.vlgmr.msrb.gmra.mxu1 %v5958_v49  ;;  %v3742_v26 = vld [vmem:[%s7849_s1 + $0x188] sm:$0xf0]  ;;  %v4978_v6 = vld [vmem:[%s7849_s1 + $0x104] sm:$0xf]  ;;  %v3942_v12 = vld [vmem:[%s7849_s1 + $0x318] sm:$0xf0] }
  0x59   : > { %1195 = vmatpush.bf16.msra.mxu1 %v3737_v28  ;;  %3946 = vmatmul.msk.bf16.vlgmr.msrb.gmra.mxu2 %vm1017_vm0, %v5960_v50  ;;  %v5016_v28 = vld [vmem:[%s7849_s1 + $0x234] sm:$0xf]  ;;  %v3745_v38 = vor.u32 %v4994_v25, %v3742_v26  ;;  %v5010_v8 = vld [vmem:[%s7849_s1 + $0x204] sm:$0xf]  ;;  %v3918_v18 = vld [vmem:[%s7849_s1 + $0x2e8] sm:$0xf0]  ;;  %v3945_v19 = vor.u32 %v5044_v11, %v3942_v12 }
  0x5a   : > { %1165 = vmatmul.bf16.vlgmr.msrb.gmra.mxu3 %v5721_v46  ;;  %v3761_v46 = vor.u32 %v4998_v0, %v3758_v1  ;;  %v5012_v0 = vld [vmem:[%s7849_s1 + $0x214] sm:$0xf]  ;;  %v3814_v1 = vld [vmem:[%s7849_s1 + $0x218] sm:$0xf0]  ;;  %v3809_v16 = vor.u32 %v5010_v8, %v3806_v10  ;;  %v5042_v20 = vld [vmem:[%s7849_s1 + $0x304] sm:$0xf] }
  0x5b   : > { %1233 = vmatpush.bf16.msra.mxu3 %v3865_v43  ;;  %v3833_v43 = vor.u32 %v5016_v28, %v3830_v29  ;;  %v3817_v7 = vor.u32 %v5012_v0, %v3814_v1  ;;  %v3934_v21 = vld [vmem:[%s7849_s1 + $0x308] sm:$0xf0]  ;;  %v3910_v24 = vld [vmem:[%s7849_s1 + $0x2d8] sm:$0xf0]  ;;  %v5034_v27 = vld [vmem:[%s7849_s1 + $0x2c4] sm:$0xf] }
  0x5c   : > { %1177 = vmatpush.bf16.msra.mxu0 %v3665_v56  ;;  %1219 = vmatpush.bf16.msra.mxu2 %v3761_v46  ;;  %v3822_v56 = vld [vmem:[%s7849_s1 + $0x228] sm:$0xf0]  ;;  %v5040_v46 = vld [vmem:[%s7849_s1 + $0x2f4] sm:$0xf]  ;;  %v3937_v25 = vor.u32 %v5042_v20, %v3934_v21  ;;  %v3894_v30 = vld [vmem:[%s7849_s1 + $0x2b8] sm:$0xf0] }
  0x5d   : > { %1196 = vmatpush.bf16.msra.mxu1 %v3729_v57  ;;  %v3633_v57 = vor.u32 %v4966_v35, %v3630_v37  ;;  %v3825_v61 = vor.u32 %v5014_v54, %v3822_v56  ;;  %v3902_v28 = vld [vmem:[%s7849_s1 + $0x2c8] sm:$0xf0]  ;;  %v5028_v32 = vld [vmem:[%s7849_s1 + $0x294] sm:$0xf]  ;;  %v5026_v35 = vld [vmem:[%s7849_s1 + $0x284] sm:$0xf] }
  0x5e   : > { %v3905_v29 = vor.u32 %v5034_v27, %v3902_v28  ;;  %v3870_v37 = vld [vmem:[%s7849_s1 + $0x288] sm:$0xf0]  ;;  %v5059_v44 = vld [vmem:[%s7851_s3 + $0x64] sm:$0xf0]  ;;  %v5057_v59 = vld [vmem:[%s7851_s3 + $0x54] sm:$0xf0] }
  0x5f   : > { %1234 = vmatpush.bf16.msra.mxu3 %v3857_v62  ;;  %v4980_v62 = vld [vmem:[%s7849_s1 + $0x114] sm:$0xf]  ;;  %v5091_v54 = vld [vmem:[%s7851_s3 + $0x164] sm:$0xf0]  ;;  %v3984_v0 = vld [vmem:[%s7851_s3 + $0x40] sm:$0xf] }
  0x60   : > { %1178 = vmatpush.bf16.msra.mxu0 %v3657_v4  ;;  %1220 = vmatpush.bf16.msra.mxu2 %v3753_v22  ;;  %v3689_v4 = vor.u32 %v4980_v62, %v3686_v63  ;;  %v5089_v62 = vld [vmem:[%s7851_s3 + $0x154] sm:$0xf0]  ;;  %v5055_v1 = vld [vmem:[%s7851_s3 + $0x44] sm:$0xf0]  ;;  %v4104_v11 = vld [vmem:[%s7851_s3 + $0x130] sm:$0xf] }
  0x61   : > { %1197 = vmatpush.bf16.msra.mxu1 %v3721_v5  ;;  %v3614_v5 = vld [vmem:[%s7849_s1 + $0x88] sm:$0xf0]  ;;  %v5085_v12 = vld [vmem:[%s7851_s3 + $0x134] sm:$0xf0]  ;;  %v4096_v20 = vld [vmem:[%s7851_s3 + $0x120] sm:$0xf] }
  0x62   : > { %v3617_v13 = vor.u32 %v4962_v3, %v3614_v5  ;;  %v5083_v21 = vld [vmem:[%s7851_s3 + $0x124] sm:$0xf0]  ;;  %v4088_v27 = vld [vmem:[%s7851_s3 + $0x110] sm:$0xf]  ;;  %v5081_v28 = vld [vmem:[%s7851_s3 + $0x114] sm:$0xf0] }
  0x63   : > { %1235 = vmatpush.bf16.msra.mxu3 %v3849_v9  ;;  %v3926_v9 = vld [vmem:[%s7849_s1 + $0x2f8] sm:$0xf0]  ;;  %vm1355_vm2 = vcmask 1045504   ;;  %vm1368_vm3 = vcmask 1044480   ;;  %vm1381_vm4 = vcmask 1043456   ;;  %vm2623_vm5 = vcmask 1041408  }
  0x64   : > { %1179 = vmatpush.bf16.msra.mxu0 %v3649_v15  ;;  %1221 = vmatpush.bf16.msra.mxu2 %v3745_v38  ;;  %v3929_v15 = vor.u32 %v5040_v46, %v3926_v9  ;;  %v3873_v38 = vor.u32 %v5026_v35, %v3870_v37  ;;  %v3976_v46 = vld [vmem:[%s7851_s3 + $0x30] sm:$0xf]  ;;  %v5053_v9 = vld [vmem:[%s7851_s3 + $0x34] sm:$0xf0]  ;;  %v5079_v35 = vld [vmem:[%s7851_s3 + $0x104] sm:$0xf0] }
  0x65   : > { %1198 = vmatpush.bf16.msra.mxu1 %v3713_v17  ;;  %v5038_v17 = vld [vmem:[%s7849_s1 + $0x2e4] sm:$0xf]  ;;  %v3977_v10 = vor.u32 %v5053_v9, %v3976_v46  ;;  %v5151_v46 = vld [vmem:[%s7851_s3 + $0x344] sm:$0xf0]  ;;  %vm2625_vm6 = vcmask 1043458   ;;  %vm2628_vm7 = vcmask 1045508  }
  0x66   : > { %v3921_v22 = vor.u32 %v5038_v17, %v3918_v18  ;;  %vm2731_vm8 = vcmask 1041409   ;;  %vm2734_vm9 = vcmask 1042434   ;;  %vm2737_vm10 = vcmask 1043459   ;;  %s323_s0 = sand.u32 1, %s5384_s10   ;;  %s5344_s26 = sshra.s32 %s3431_s27, 4  ;;  %s5345_s26 = int_to_ptr.hbm [resolvable:$true] %s5344_s26 }
  0x67   : > { %1236 = vmatpush.bf16.msra.mxu3 %v3841_v23  ;;  %1113 = vmatmul.bf16.gmra.mxu0 %v6057_v39  ;;  %v5036_v23 = vld [vmem:[%s7849_s1 + $0x2d4] sm:$0xf]  ;;  %vm2745_vm11 = vcmask 1047556   ;;  %s324_s25 = scalar_lea.vmem [#allocation3], %s323_s0  ;;  %s3418_s14 = scalar_lea.sflag [#allocation4], %s323_s0 }
  0x68   : > { %1180 = vmatpush.bf16.msra.mxu0 %v3641_v33  ;;  %1132 = vmatmul.bf16.gmra.mxu1 %v6065_v48  ;;  %v3913_v26 = vor.u32 %v5036_v23, %v3910_v24  ;;  %v3878_v33 = vld [vmem:[%s7849_s1 + $0x298] sm:$0xf0]  ;;  %v4097_v23 = vor.u32 %v5083_v21, %v4096_v20  ;;  %v3960_v24 = vld [vmem:[%s7851_s3 + $0x10] sm:$0xf]  ;;  %v5149_v20 = vld [vmem:[%s7851_s3 + $0x334] sm:$0xf0]  ;;  %p5351_p0 = scmp.lt.s32.totalorder %s5345_s26, %s7857_s9 }
  0x69   : > { %1199 = vmatpush.bf16.msra.mxu1 %v3705_v34  ;;  %3947 = vmatmul.msk.bf16.gmra.mxu2 %vm1017_vm0, %v6067_v53  ;;  %v3881_v34 = vor.u32 %v5028_v32, %v3878_v33  ;;  %vm4846_vm12 = vmneg %vm2745_vm11  ;;  %s3428_s29 = sshll.u32 %s324_s25, 4  ;;  %s5346_s16 = scalar_lea.hbm %s5345_s26, 1  ;;  %s3429_s29 = int_to_ptr.vmem [resolvable:$true] %s3428_s29 }
  0x6a   : > { %1170 = vmatmul.bf16.gmra.mxu3 %v5821_v36  ;;  %v3678_v36 = vld [vmem:[%s7849_s1 + $0x108] sm:$0xf0]  ;;  %vm7753_vm13 = vmpackc.low %vm4846_vm12, %vm4846_vm12  ;;  %p5347_p11 = scmp.ne.s32.totalorder %s5345_s26, %s5346_s16  ;;  %p5352_p1 = scmp.lt.s32.totalorder %s5350_s17, %s5346_s16 }
  0x6b   : > { %1237 = vmatpush.bf16.msra.mxu3 %v3833_v43  ;;  %v3681_v14 = vor.u32 %v4978_v6, %v3678_v36  ;;  %v4000_v43 = vld [vmem:[%s7851_s3 + $0x60] sm:$0xf]  ;;  %v5087_v36 = vld [vmem:[%s7851_s3 + $0x144] sm:$0xf0] }
  0x6c   : > { %1181 = vmatpush.bf16.msra.mxu0 %v3633_v57  ;;  %v4001_v47 = vor.u32 %v5059_v44, %v4000_v43  ;;  %v4112_v6 = vld [vmem:[%s7851_s3 + $0x140] sm:$0xf]  ;;  %p5348_p12 = pnand %p5347_p11, %p5485_p5  ;;  %p5353_p2 = por %p5352_p1, %p5351_p0 }
  0x6d   : > { %1200 = vmatpush.bf16.msra.mxu1 %v3697_v58  ;;  %v3992_v58 = vld [vmem:[%s7851_s3 + $0x50] sm:$0xf]  ;;  %v4113_v8 = vor.u32 %v5087_v36, %v4112_v6  ;;  %v4384_v44 = vld [vmem:[%s7851_s3 + $0x360] sm:$0xf] }
  0x6e   : > { %v3993_v60 = vor.u32 %v5057_v59, %v3992_v58  ;;  %v5121_v58 = vld [vmem:[%s7851_s3 + $0x254] sm:$0xf0]  ;;  %p5349_p13 = pneg %p5348_p12 }
  0x6f   : > { %1238 = vmatpush.bf16.msra.mxu3 %v3825_v61  ;;  %v4120_v61 = vld [vmem:[%s7851_s3 + $0x150] sm:$0xf] }
  0x70   : > { %1182 = vmatpush.bf16.msra.mxu0 %v3625_v2  ;;  %v4121_v63 = vor.u32 %v5089_v62, %v4120_v61  ;;  %v3985_v2 = vor.u32 %v5055_v1, %v3984_v0  ;;  %v4376_v62 = vld [vmem:[%s7851_s3 + $0x350] sm:$0xf]  ;;  %v4240_v1 = vld [vmem:[%s7851_s3 + $0x240] sm:$0xf]  ;;  %p5354_p3 = pnand %p5353_p2, %p5349_p13 }
  0x71   : > { %1201 = vmatpush.bf16.msra.mxu1 %v3689_v4 }
  0x73   : > { %1239 = vmatpush.bf16.msra.mxu3 %v3817_v7 }
  0x74   : > { %1183 = vmatpush.bf16.msra.mxu0 %v3617_v13  ;;  %v4105_v13 = vor.u32 %v5085_v12, %v4104_v11  ;;  %v4232_v11 = vld [vmem:[%s7851_s3 + $0x230] sm:$0xf]  ;;  %v5117_v12 = vld [vmem:[%s7851_s3 + $0x234] sm:$0xf0] }
  0x75   : > { %1202 = vmatpush.bf16.msra.mxu1 %v3681_v14  ;;  %v3968_v14 = vld [vmem:[%s7851_s3 + $0x20] sm:$0xf] }
  0x77   : > { %1240 = vmatpush.bf16.msra.mxu3 %v3809_v16  ;;  %1184 = vmatmul.bf16.vlgmr.msra.gmra.mxu0 %v5728_v51  ;;  %v5032_v51 = vld [vmem:[%s7849_s1 + $0x2b4] sm:$0xf] }
  0x78   : > { %1252 = vmatpush.bf16.msrb.mxu0 %v3929_v15  ;;  %1203 = vmatmul.bf16.vlgmr.msra.gmra.mxu1 %v5730_v52  ;;  %v3897_v31 = vor.u32 %v5032_v51, %v3894_v30  ;;  %v5030_v52 = vld [vmem:[%s7849_s1 + $0x2a4] sm:$0xf]  ;;  %v5051_v15 = vld [vmem:[%s7851_s3 + $0x24] sm:$0xf0]  ;;  %v3952_v51 = vld [vmem:[%s7851_s3] sm:$0xf] }
  0x79   : > { %1277 = vmatpush.bf16.msrb.mxu1 %v3945_v19  ;;  %1222 = vmatmul.bf16.vlgmr.msra.gmra.mxu2 %v5738_v55  ;;  %v3886_v55 = vld [vmem:[%s7849_s1 + $0x2a8] sm:$0xf0]  ;;  %v3969_v16 = vor.u32 %v5051_v15, %v3968_v14  ;;  %v5047_v30 = vld [vmem:[%s7851_s3 + $0x4] sm:$0xf0]  ;;  %v4233_v14 = vor.u32 %v5117_v12, %v4232_v11 }
  0x7a   : > { %1241 = vmatmul.bf16.vlgmr.msra.gmra.mxu3 %v5947_v40  ;;  %v3889_v40 = vor.u32 %v5030_v52, %v3886_v55  ;;  %v4264_v52 = vld [vmem:[%s7851_s3 + $0x270] sm:$0xf]  ;;  %v5125_v55 = vld [vmem:[%s7851_s3 + $0x274] sm:$0xf0] }
  0x7b   : > { %v4265_v32 = vor.u32 %v5125_v55, %v4264_v52  ;;  %v5113_v52 = vld [vmem:[%s7851_s3 + $0x214] sm:$0xf0] }
  0x7c   : > { %1253 = vmatpush.bf16.msrb.mxu0 %v3921_v22 }
  0x7d   : > { %1278 = vmatpush.bf16.msrb.mxu1 %v3937_v25  ;;  %v5049_v25 = vld [vmem:[%s7851_s3 + $0x14] sm:$0xf0] }
  0x80   : > { %1254 = vmatpush.bf16.msrb.mxu0 %v3913_v26  ;;  %v3961_v26 = vor.u32 %v5049_v25, %v3960_v24  ;;  %v5115_v24 = vld [vmem:[%s7851_s3 + $0x224] sm:$0xf0] }
  0x84   : > { %1255 = vmatpush.bf16.msrb.mxu0 %v3905_v29  ;;  %v4089_v29 = vor.u32 %v5081_v28, %v4088_v27  ;;  %v4352_v28 = vld [vmem:[%s7851_s3 + $0x320] sm:$0xf] }
  0x87   : > { %1189 = vmatmul.bf16.gmra.mxu0 %v5832_v41  ;;  %v4008_v41 = vld [vmem:[%s7851_s3 + $0x70] sm:$0xf] }
  0x88   : > { %1256 = vmatpush.bf16.msrb.mxu0 %v3897_v31  ;;  %1208 = vmatmul.bf16.gmra.mxu1 %v5834_v42  ;;  %v5061_v42 = vld [vmem:[%s7851_s3 + $0x74] sm:$0xf0]  ;;  %v3953_v31 = vor.u32 %v5047_v30, %v3952_v51 }
  0x89   : > { %1227 = vmatmul.bf16.gmra.mxu2 %v5842_v45  ;;  %v4009_v45 = vor.u32 %v5061_v42, %v4008_v41  ;;  %v4392_v41 = vld [vmem:[%s7851_s3 + $0x370] sm:$0xf]  ;;  %v5157_v42 = vld [vmem:[%s7851_s3 + $0x374] sm:$0xf0] }
  0x8a   : > { %1246 = vmatmul.bf16.gmra.mxu3 %v6057_v39 }
  0x8b   : > { %2360 = vmatpush.bf16.msrb.mxu2 %v4009_v45 }
  0x8c   : > { %1257 = vmatpush.bf16.msrb.mxu0 %v3889_v40 }
  0x8f   : > { %2361 = vmatpush.bf16.msrb.mxu2 %v4001_v47  ;;  %v5155_v47 = vld [vmem:[%s7851_s3 + $0x364] sm:$0xf0] }
  0x90   : > { %1258 = vmatpush.bf16.msrb.mxu0 %v3881_v34  ;;  %v4080_v34 = vld [vmem:[%s7851_s3 + $0x100] sm:$0xf] }
  0x93   : > { %2362 = vmatpush.bf16.msrb.mxu2 %v3993_v60 }
  0x94   : > { %1259 = vmatpush.bf16.msrb.mxu0 %v3873_v38  ;;  %v4081_v38 = vor.u32 %v5079_v35, %v4080_v34 }
  0x97   : > { %1260 = vmatmul.bf16.vlgmr.msrb.gmra.mxu0 %v5958_v49  ;;  %v4136_v49 = vld [vmem:[%s7851_s3 + $0x170] sm:$0xf]  ;;  %2363 = vmatpush.bf16.msrb.mxu2 %v3985_v2  ;;  %v5119_v2 = vld [vmem:[%s7851_s3 + $0x244] sm:$0xf0] }
  0x98   : > { %3948 = vmatmul.msk.bf16.vlgmr.msrb.gmra.mxu1 %vm1017_vm0, %v5960_v50  ;;  %v5093_v50 = vld [vmem:[%s7851_s3 + $0x174] sm:$0xf0]  ;;  %v4241_v36 = vor.u32 %v5119_v2, %v4240_v1  ;;  %v4200_v2 = vld [vmem:[%s7851_s3 + $0x1f0] sm:$0xf] }
  0x99   : > { %v4137_v39 = vor.u32 %v5093_v50, %v4136_v49  ;;  %v4393_v49 = vor.u32 %v5157_v42, %v4392_v41  ;;  %v4256_v50 = vld [vmem:[%s7851_s3 + $0x260] sm:$0xf] }
  0x9b   : > { %2386 = vmatpush.bf16.msra.mxu0 %v4137_v39  ;;  %2364 = vmatpush.bf16.msrb.mxu2 %v3977_v10  ;;  %v5123_v39 = vld [vmem:[%s7851_s3 + $0x264] sm:$0xf0] }
  0x9c   : > { %v4257_v43 = vor.u32 %v5123_v39, %v4256_v50  ;;  %v5077_v39 = vld [vmem:[%s7851_s3 + $0xf4] sm:$0xf0] }
  0x9f   : > { %2365 = vmatpush.bf16.msrb.mxu2 %v3969_v16  ;;  %v4360_v16 = vld [vmem:[%s7851_s3 + $0x330] sm:$0xf] }
  0xa0   : > { %v4361_v21 = vor.u32 %v5149_v20, %v4360_v16  ;;  %v5107_v16 = vld [vmem:[%s7851_s3 + $0x1e4] sm:$0xf0] }
  0xa3   : > { %2366 = vmatpush.bf16.msrb.mxu2 %v3961_v26  ;;  %v5394_v26 = vmov 0.0  }
  0xa4   : > { %1306 = vst [vmem:[#allocation2 + $0x10] sm:$0x3] %v5394_v26 }
  0xa5   : > { %1307 = vst [vmem:[#allocation2] sm:$0x3] %v5394_v26 }
  0xa6   : > { %1308 = vst [vmem:[#allocation2 + $0x18] sm:$0xc] %v5394_v26 }
  0xa7   : > { %1265 = vmatmul.bf16.gmra.mxu0 %v6065_v48  ;;  %2367 = vmatpush.bf16.msrb.mxu2 %v3953_v31  ;;  %v4216_v31 = vld [vmem:[%s7851_s3 + $0x210] sm:$0xf]  ;;  %1309 = vst [vmem:[#allocation2 + $0x8] sm:$0xc] %v5394_v26 }
  0xa8   : > { %3949 = vmatmul.msk.bf16.gmra.mxu1 %vm1017_vm0, %v6067_v53  ;;  %v4128_v53 = vld [vmem:[%s7851_s3 + $0x160] sm:$0xf]  ;;  %v4217_v34 = vor.u32 %v5113_v52, %v4216_v31 }
  0xa9   : > { %v4129_v57 = vor.u32 %v5091_v54, %v4128_v53  ;;  %v4385_v54 = vor.u32 %v5155_v47, %v4384_v44 }
  0xab   : > { %2387 = vmatpush.bf16.msra.mxu0 %v4129_v57  ;;  %2412 = vmatpush.bf16.msra.mxu2 %v4265_v32  ;;  %v4248_v57 = vld [vmem:[%s7851_s3 + $0x250] sm:$0xf] }
  0xac   : > { %v4249_v60 = vor.u32 %v5121_v58, %v4248_v57 }
  0xaf   : > { %2388 = vmatpush.bf16.msra.mxu0 %v4121_v63  ;;  %2413 = vmatpush.bf16.msra.mxu2 %v4257_v43  ;;  %v5153_v63 = vld [vmem:[%s7851_s3 + $0x354] sm:$0xf0]  ;;  %v4336_v43 = vld [vmem:[%s7851_s3 + $0x300] sm:$0xf] }
  0xb0   : > { %v4377_v0 = vor.u32 %v5153_v63, %v4376_v62 }
  0xb3   : > { %2389 = vmatpush.bf16.msra.mxu0 %v4113_v8  ;;  %2414 = vmatpush.bf16.msra.mxu2 %v4249_v60  ;;  %v4368_v8 = vld [vmem:[%s7851_s3 + $0x340] sm:$0xf] }
  0xb4   : > { %v6208_v48 = vpop.f32.mrf.mxu0  ;;  %v4369_v10 = vor.u32 %v5151_v46, %v4368_v8 }
  0xb5   : > { %v6216_v56 = vpop.f32.mrf.mxu1 }
  0xb6   : > { %v1053_v35 = vadd.f32 %v6216_v56, %v6208_v48 }
  0xb7   : > { %2390 = vmatpush.bf16.msra.mxu0 %v4105_v13  ;;  %2415 = vmatpush.bf16.msra.mxu2 %v4241_v36  ;;  %v4064_v36 = vld [vmem:[%s7851_s3 + $0xe0] sm:$0xf] }
  0xbb   : > { %2391 = vmatpush.bf16.msra.mxu0 %v4097_v23  ;;  %2416 = vmatpush.bf16.msra.mxu2 %v4233_v14  ;;  %v4224_v23 = vld [vmem:[%s7851_s3 + $0x220] sm:$0xf] }
  0xbc   : > { %v6236_v3 = vpop.f32.mrf.mxu2  ;;  %v6238_v4 = vpop.f32.mrf.mxu0  ;;  %v4225_v25 = vor.u32 %v5115_v24, %v4224_v23  ;;  %v4192_v14 = vld [vmem:[%s7851_s3 + $0x1e0] sm:$0xf]  ;;  %v5073_v23 = vld [vmem:[%s7851_s3 + $0xd4] sm:$0xf0] }
  0xbd   : > { %v6240_v5 = vpop.f32.mrf.mxu3  ;;  %v6248_v7 = vpop.f32.mrf.mxu1  ;;  %v1072_v48 = vadd.f32 %v6236_v3, %v1053_v35  ;;  %v4072_v3 = vld [vmem:[%s7851_s3 + $0xf0] sm:$0xf]  ;;  %v4048_v35 = vld [vmem:[%s7851_s3 + $0xc0] sm:$0xf] }
  0xbe   : > { %v1055_v55 = vadd.f32 %v6248_v7, %v6238_v4  ;;  %v4344_v4 = vld [vmem:[%s7851_s3 + $0x310] sm:$0xf]  ;;  %v5145_v7 = vld [vmem:[%s7851_s3 + $0x314] sm:$0xf0]  ;;  %v4073_v47 = vor.u32 %v5077_v39, %v4072_v3 }
  0xbf   : > { %2392 = vmatpush.bf16.msra.mxu0 %v4089_v29  ;;  %2417 = vmatpush.bf16.msra.mxu2 %v4225_v25  ;;  %v5147_v29 = vld [vmem:[%s7851_s3 + $0x324] sm:$0xf0]  ;;  %v4345_v56 = vor.u32 %v5145_v7, %v4344_v4  ;;  %v4176_v4 = vld [vmem:[%s7851_s3 + $0x1c0] sm:$0xf]  ;;  %v4168_v3 = vld [vmem:[%s7851_s3 + $0x1b0] sm:$0xf] }
  0xc0   : > { %v4353_v30 = vor.u32 %v5147_v29, %v4352_v28  ;;  %2373 = vmatpush.bf16.msrb.mxu3 %v4073_v47  ;;  %v5103_v7 = vld [vmem:[%s7851_s3 + $0x1c4] sm:$0xf0]  ;;  %v5101_v39 = vld [vmem:[%s7851_s3 + $0x1b4] sm:$0xf0] }
  0xc3   : > { %2393 = vmatpush.bf16.msra.mxu0 %v4081_v38  ;;  %2418 = vmatpush.bf16.msra.mxu2 %v4217_v34 }
  0xc4   : > { %v6268_v17 = vpop.f32.mrf.mxu2  ;;  %v6270_v18 = vpop.f32.mrf.mxu0 }
  0xc5   : > { %v6272_v19 = vpop.f32.mrf.mxu3  ;;  %v6280_v22 = vpop.f32.mrf.mxu1  ;;  %v1074_v41 = vadd.f32 %v6268_v17, %v1055_v55  ;;  %v4208_v17 = vld [vmem:[%s7851_s3 + $0x200] sm:$0xf] }
  0xc6   : > { %v1058_v42 = vadd.f32 %v6280_v22, %v6270_v18  ;;  %v5111_v18 = vld [vmem:[%s7851_s3 + $0x204] sm:$0xf0] }
  0xc7   : > { %2438 = vmatpush.bf16.msrb.mxu0 %v4393_v49  ;;  %v1093_v50 = vadd.f32 %v6272_v19, %v1074_v41  ;;  %v5143_v19 = vld [vmem:[%s7851_s3 + $0x304] sm:$0xf0] }
  0xc8   : > { %v4337_v62 = vor.u32 %v5143_v19, %v4336_v43  ;;  %v4169_v43 = vor.u32 %v5101_v39, %v4168_v3  ;;  %v4496_v39 = vld [vmem:[%s7851_s3 + $0x440] sm:$0xf] }
  0xcb   : > { %2439 = vmatpush.bf16.msrb.mxu0 %v4385_v54 }
  0xcc   : > { %v6306_v40 = vpop.f32.mrf.mxu2  ;;  %v6308_v33 = vpop.f32.mrf.mxu0 }
  0xcd   : > { %v6316_v37 = vpop.f32.mrf.mxu1  ;;  %v6324_v45 = vpop.f32.mrf.mxu3  ;;  %v1077_v22 = vadd.f32 %v6306_v40, %v1058_v42  ;;  %v1091_v40 = vadd.f32 %v6240_v5, %v1072_v48  ;;  %v4177_v48 = vor.u32 %v5103_v7, %v4176_v4 }
  0xce   : > { %v1060_v49 = vadd.f32 %v6316_v37, %v6308_v33  ;;  %v4209_v37 = vor.u32 %v5111_v18, %v4208_v17  ;;  %v5069_v17 = vld [vmem:[%s7851_s3 + $0xb4] sm:$0xf0] }
  0xcf   : > { %2440 = vmatpush.bf16.msrb.mxu0 %v4377_v0 }
  0xd0   : > { %2419 = vmatpush.bf16.msra.mxu2 %v4209_v37 }
  0xd3   : > { %2441 = vmatpush.bf16.msrb.mxu0 %v4369_v10 }
  0xd4   : > { %v6338_v53 = vpop.f32.mrf.mxu2  ;;  %v6346_v59 = vpop.f32.mrf.mxu0 }
  0xd5   : > { %v6348_v61 = vpop.f32.mrf.mxu1  ;;  %v6362_v6 = vpop.f32.mrf.mxu3  ;;  %v1079_v33 = vadd.f32 %v6338_v53, %v1060_v49  ;;  %v1096_v53 = vadd.f32 %v6324_v45, %v1077_v22  ;;  %v1110_v0 = vadd.f32 %v6346_v59, %v1091_v40  ;;  %v5109_v45 = vld [vmem:[%s7851_s3 + $0x1f4] sm:$0xf0]  ;;  %v5075_v59 = vld [vmem:[%s7851_s3 + $0xe4] sm:$0xf0]  ;;  %v4032_v40 = vld [vmem:[%s7851_s3 + $0xa0] sm:$0xf] }
  0xd6   : > { %v4065_v46 = vor.u32 %v5075_v59, %v4064_v36  ;;  %v4010_v36 = vld [vmem:[%s7851_s3 + $0x78] sm:$0xf0]  ;;  %v4152_v59 = vld [vmem:[%s7851_s3 + $0x190] sm:$0xf] }
  0xd7   : > { %2442 = vmatpush.bf16.msrb.mxu0 %v4361_v21  ;;  %v1098_v54 = vadd.f32 %v6362_v6, %v1079_v33  ;;  %v4201_v6 = vor.u32 %v5109_v45, %v4200_v2  ;;  %v1129_v10 = vadd.f32 %v6348_v61, %v1110_v0  ;;  %v4193_v21 = vor.u32 %v5107_v16, %v4192_v14  ;;  %v4056_v61 = vld [vmem:[%s7851_s3 + $0xd0] sm:$0xf] }
  0xd8   : > { %2374 = vmatpush.bf16.msrb.mxu3 %v4065_v46  ;;  %v4057_v29 = vor.u32 %v5073_v23, %v4056_v61  ;;  %v4520_v0 = vld [vmem:[%s7851_s3 + $0x470] sm:$0xf] }
  0xd9   : > { %2399 = vmatpush.bf16.msra.mxu1 %v4201_v6  ;;  %v5060_v6 = vld [vmem:[%s7851_s3 + $0x74] sm:$0xf] }
  0xdb   : > { %2443 = vmatpush.bf16.msrb.mxu0 %v4353_v30 }
  0xdc   : > { %v6370_v9 = vpop.f32.mrf.mxu2  ;;  %v1111_v13 = vpop.f32.mrf.mxu0  ;;  %2375 = vmatpush.bf16.msrb.mxu3 %v4057_v29  ;;  %v4013_v29 = vor.u32 %v5060_v6, %v4010_v36  ;;  %v3986_v6 = vld [vmem:[%s7851_s3 + $0x48] sm:$0xf0] }
  0xdd   : > { %v6378_v15 = vpop.f32.mrf.mxu1  ;;  %v6392_v27 = vpop.f32.mrf.mxu3  ;;  %v1112_v57 = vadd.f32 %v1111_v13, %v1093_v50  ;;  %v1148_v24 = vadd.f32 %v6370_v9, %v1129_v10  ;;  %2400 = vmatpush.bf16.msra.mxu1 %v4193_v21  ;;  %v5105_v9 = vld [vmem:[%s7851_s3 + $0x1d4] sm:$0xf0]  ;;  %v5187_v21 = vld [vmem:[%s7851_s3 + $0x464] sm:$0xf0] }
  0xdf   : > { %2444 = vmatpush.bf16.msrb.mxu0 %v4345_v56  ;;  %v1131_v8 = vadd.f32 %v6378_v15, %v1112_v57  ;;  %v6472_v15 = vld [vmem:[%s7850_s2] sm:$0x3]  ;;  %v4040_v56 = vld [vmem:[%s7851_s3 + $0xb0] sm:$0xf] }
  0xe0   : > { %v1298_v55 = vperm.slane %v6472_v15, 0  ;;  %v4041_v33 = vor.u32 %v5069_v17, %v4040_v56  ;;  %v3994_v56 = vld [vmem:[%s7851_s3 + $0x58] sm:$0xf0] }
  0xe3   : > { %2445 = vmatpush.bf16.msrb.mxu0 %v4337_v62  ;;  %v5065_v62 = vld [vmem:[%s7851_s3 + $0x94] sm:$0xf0] }
  0xe4   : > { %v1149_v51 = vpop.f32.mrf.mxu2  ;;  %v1114_v32 = vpop.f32.mrf.mxu0 }
  0xe5   : > { %v1133_v38 = vpop.f32.mrf.mxu1  ;;  %v6446_v58 = vpop.f32.mrf.mxu3  ;;  %v1115_v5 = vadd.f32 %v1114_v32, %v1096_v53  ;;  %v1150_v11 = vadd.f32 %v1149_v51, %v1131_v8  ;;  %v4184_v32 = vld [vmem:[%s7851_s3 + $0x1d0] sm:$0xf]  ;;  %v4160_v53 = vld [vmem:[%s7851_s3 + $0x1a0] sm:$0xf]  ;;  %v5097_v8 = vld [vmem:[%s7851_s3 + $0x194] sm:$0xf0] }
  0xe6   : > { %v4185_v34 = vor.u32 %v5105_v9, %v4184_v32  ;;  %v5141_v32 = vld [vmem:[%s7851_s3 + $0x2f4] sm:$0xf0] }
  0xe7   : > { %v1134_v12 = vadd.f32 %v1133_v38, %v1115_v5  ;;  %v1290_v30 = vmax.f32 %v1148_v24, %v1150_v11  ;;  %v5071_v38 = vld [vmem:[%s7851_s3 + $0xc4] sm:$0xf0]  ;;  %v5189_v5 = vld [vmem:[%s7851_s3 + $0x474] sm:$0xf0]  ;;  %v5058_v24 = vld [vmem:[%s7851_s3 + $0x64] sm:$0xf] }
  0xe8   : > { %v4049_v42 = vor.u32 %v5071_v38, %v4048_v35  ;;  %2401 = vmatpush.bf16.msra.mxu1 %v4185_v34  ;;  %v4521_v10 = vor.u32 %v5189_v5, %v4520_v0  ;;  %v4002_v35 = vld [vmem:[%s7851_s3 + $0x68] sm:$0xf0]  ;;  %v4504_v38 = vld [vmem:[%s7851_s3 + $0x450] sm:$0xf] }
  0xea   : > { %2376 = vmatpush.bf16.msrb.mxu3 %v4049_v42 }
  0xec   : > { %v1152_v44 = vpop.f32.mrf.mxu2  ;;  %v1116_v60 = vpop.f32.mrf.mxu0  ;;  %2402 = vmatpush.bf16.msra.mxu1 %v4177_v48  ;;  %v5056_v48 = vld [vmem:[%s7851_s3 + $0x54] sm:$0xf] }
  0xed   : > { %v1135_v63 = vpop.f32.mrf.mxu1  ;;  %v1117_v1 = vadd.f32 %v1116_v60, %v1098_v54  ;;  %v1153_v25 = vadd.f32 %v1152_v44, %v1134_v12  ;;  %v6485_v31 = vpop.f32.mrf.mxu3  ;;  %v5067_v44 = vld [vmem:[%s7851_s3 + $0xa4] sm:$0xf0]  ;;  %v4024_v60 = vld [vmem:[%s7851_s3 + $0x90] sm:$0xf]  ;;  %v4512_v12 = vld [vmem:[%s7851_s3 + $0x460] sm:$0xf] }
  0xee   : > { %2377 = vmatpush.bf16.msrb.mxu3 %v4041_v33  ;;  %v4033_v19 = vor.u32 %v5067_v44, %v4032_v40  ;;  %v5099_v54 = vld [vmem:[%s7851_s3 + $0x1a4] sm:$0xf0]  ;;  %v4456_v44 = vld [vmem:[%s7851_s3 + $0x3f0] sm:$0xf] }
  0xef   : > { %v1136_v13 = vadd.f32 %v1135_v63, %v1117_v1  ;;  %v4161_v57 = vor.u32 %v5099_v54, %v4160_v53  ;;  %v4025_v1 = vor.u32 %v5065_v62, %v4024_v60  ;;  %v5095_v33 = vld [vmem:[%s7851_s3 + $0x184] sm:$0xf0]  ;;  %v5173_v53 = vld [vmem:[%s7851_s3 + $0x3f4] sm:$0xf0]  ;;  %v4320_v54 = vld [vmem:[%s7851_s3 + $0x2e0] sm:$0xf] }
  0xf0   : > { %2403 = vmatpush.bf16.msra.mxu1 %v4169_v43  ;;  %v5183_v43 = vld [vmem:[%s7851_s3 + $0x444] sm:$0xf0]  ;;  %v4457_v0 = vor.u32 %v5173_v53, %v4456_v44  ;;  %v4472_v53 = vld [vmem:[%s7851_s3 + $0x410] sm:$0xf] }
  0xf2   : > { %2378 = vmatpush.bf16.msrb.mxu3 %v4033_v19 }
  0xf4   : > { %v1154_v20 = vpop.f32.mrf.mxu2  ;;  %v6481_v28 = vpop.f32.mrf.mxu0  ;;  %2404 = vmatpush.bf16.msra.mxu1 %v4161_v57  ;;  %v5139_v57 = vld [vmem:[%s7851_s3 + $0x2e4] sm:$0xf0] }
  0xf5   : > { %v1155_v26 = vadd.f32 %v1154_v20, %v1136_v13  ;;  %v6483_v51 = vpop.f32.mrf.mxu1  ;;  %v6528_v47 = vpop.f32.mrf.mxu3  ;;  %v4153_v13 = vor.u32 %v5097_v8, %v4152_v59  ;;  %v4321_v5 = vor.u32 %v5139_v57, %v4320_v54  ;;  %v3997_v8 = vor.u32 %v5056_v48, %v3994_v56  ;;  %v5179_v48 = vld [vmem:[%s7851_s3 + $0x424] sm:$0xf0]  ;;  %v4432_v54 = vld [vmem:[%s7851_s3 + $0x3c0] sm:$0xf] }
  0xf6   : > { %2379 = vmatpush.bf16.msrb.mxu3 %v4025_v1  ;;  %v5054_v1 = vld [vmem:[%s7851_s3 + $0x44] sm:$0xf]  ;;  %v5167_v57 = vld [vmem:[%s7851_s3 + $0x3c4] sm:$0xf0] }
  0xf7   : > { %v1292_v52 = vmax.f32 %v1153_v25, %v1155_v26  ;;  %v4016_v25 = vld [vmem:[%s7851_s3 + $0x80] sm:$0xf] }
  0xf8   : > { %2405 = vmatpush.bf16.msra.mxu1 %v4153_v13 }
  0xf9   : > { %v1294_v41 = vmax.f32 %v1290_v30, %v1292_v52  ;;  %v4513_v30 = vor.u32 %v5187_v21, %v4512_v12  ;;  %v5063_v52 = vld [vmem:[%s7851_s3 + $0x84] sm:$0xf0] }
  0xfa   : > { %v4017_v4 = vor.u32 %v5063_v52, %v4016_v25  ;;  %v5171_v12 = vld [vmem:[%s7851_s3 + $0x3e4] sm:$0xf0] }
  0xfb   : > { %v1302_v49 = vadd.f32 %v1298_v55, %v1294_v41  ;;  %v4328_v55 = vld [vmem:[%s7851_s3 + $0x2f0] sm:$0xf]  ;;  %v5185_v41 = vld [vmem:[%s7851_s3 + $0x454] sm:$0xf0] }
  0xfc   : > { %v6512_v22 = vpop.f32.mrf.mxu0  ;;  %v6552_v45 = vpop.f32.mrf.mxu2  ;;  %v4329_v7 = vor.u32 %v5141_v32, %v4328_v55  ;;  %v4505_v3 = vor.u32 %v5185_v41, %v4504_v38  ;;  %2380 = vmatpush.bf16.msrb.mxu3 %v4017_v4  ;;  %v5052_v55 = vld [vmem:[%s7851_s3 + $0x34] sm:$0xf]  ;;  %v3978_v32 = vld [vmem:[%s7851_s3 + $0x38] sm:$0xf0]  ;;  %v4480_v41 = vld [vmem:[%s7851_s3 + $0x420] sm:$0xf] }
  0xfd   : > { %v1304_v18 = vmax.f32 %v1302_v49, 0.0  ;;  %v6514_v37 = vpop.f32.mrf.mxu1  ;;  %v6574_v23 = vpop.f32.mrf.mxu3  ;;  %v5169_v4 = vld [vmem:[%s7851_s3 + $0x3d4] sm:$0xf0]  ;;  %v4481_v44 = vor.u32 %v5179_v48, %v4480_v41  ;;  %v4416_v41 = vld [vmem:[%s7851_s3 + $0x3a0] sm:$0xf] }
  0xff   : > { %v1312_v50 = vrot.slane %v1304_v18, 6  ;;  %v4144_v18 = vld [vmem:[%s7851_s3 + $0x180] sm:$0xf] }
 0x100   : > { %v4145_v40 = vor.u32 %v5095_v33, %v4144_v18  ;;  %2425 = vmatpush.bf16.msra.mxu3 %v4329_v7  ;;  %v5135_v18 = vld [vmem:[%s7851_s3 + $0x2c4] sm:$0xf0] }
 0x101   : > { %1316 = vst [vmem:[#allocation2 + $0x10] sm:$0xfc] %v1312_v50 }
 0x102   : > { %1318 = vst [vmem:[#allocation2 + $0x18] sm:$0x3] %v1312_v50  ;;  %v4005_v50 = vor.u32 %v5058_v24, %v4002_v35  ;;  %2406 = vmatpush.bf16.msra.mxu1 %v4145_v40  ;;  %v5137_v24 = vld [vmem:[%s7851_s3 + $0x2d4] sm:$0xf0]  ;;  %v3989_v35 = vor.u32 %v5054_v1, %v3986_v6  ;;  %v3981_v40 = vor.u32 %v5052_v55, %v3978_v32  ;;  %v4138_v55 = vld [vmem:[%s7851_s3 + $0x178] sm:$0xf0] }
 0x103   : > { %v5177_v1 = vld [vmem:[%s7851_s3 + $0x414] sm:$0xf0]  ;;  %v4433_v6 = vor.u32 %v5167_v57, %v4432_v54 }
 0x104   : > { %v6542_v63 = vpop.f32.mrf.mxu0  ;;  %v6630_v19 = vpop.f32.mrf.mxu2  ;;  %2426 = vmatpush.bf16.msra.mxu3 %v4321_v5 }
 0x105   : > { %v6550_v2 = vpop.f32.mrf.mxu1  ;;  %v6656_v13 = vpop.f32.mrf.mxu3 }
 0x106   : > { %2451 = vmatpush.bf16.msrb.mxu1 %v4457_v0 }
 0x108   : > { %v1320_v46 = vld [vmem:[#allocation2 + $0x10] sm:$0xff] }
 0x109   : > { %v1322_v11 = vld [vmem:[#allocation2 + $0x10] sm:$0xfe]  ;;  %v6569_v14 = vpack.c.bf16 %v1320_v46, %v1320_v46  ;;  %v1324_v16 = vld [vmem:[#allocation2 + $0x18] sm:$0x1]  ;;  %v4497_v46 = vor.u32 %v5183_v43, %v4496_v39  ;;  %v5050_v39 = vld [vmem:[%s7851_s3 + $0x24] sm:$0xf] }
 0x10a   : > { %v1343_v20 = vrot.slane %v1322_v11, 1  ;;  %v1344_v61 = vrot.slane %v1324_v16, 1  ;;  %v1326_v49 = vld [vmem:[#allocation2 + $0x10] sm:$0xfc]  ;;  %v1328_v17 = vld [vmem:[#allocation2 + $0x18] sm:$0x3] }
 0x10b   : > { %2368 = vmatmul.bf16.vlgmr.msrb.gmra.mxu2 %v6569_v14  ;;  %v1356_v60 = vrot.slane %v1326_v49, 2  ;;  %v1357_v62 = vrot.slane %v1328_v17, 2  ;;  %v1330_v36 = vld [vmem:[#allocation2 + $0x10] sm:$0xf8]  ;;  %v1332_v59 = vld [vmem:[#allocation2 + $0x18] sm:$0x7] }
 0x10c   : > { %2464 = vmatpush.bf16.msrb.mxu2 %v4521_v10  ;;  %v1345_v26 = vsel %vm1342_vm1, %v1343_v20, %v1344_v61  ;;  %v6593_v9 = vpop.f32.mrf.mxu0  ;;  %v4488_v10 = vld [vmem:[%s7851_s3 + $0x430] sm:$0xf]  ;;  %v4448_v11 = vld [vmem:[%s7851_s3 + $0x3e0] sm:$0xf]  ;;  %v5181_v20 = vld [vmem:[%s7851_s3 + $0x434] sm:$0xf0] }
 0x10d   : > { %v6595_v34 = vpack.c.bf16 %v1345_v26, %v1345_v26  ;;  %v6606_v42 = vpop.f32.mrf.mxu1  ;;  %v4449_v21 = vor.u32 %v5171_v12, %v4448_v11  ;;  %v4312_v61 = vld [vmem:[%s7851_s3 + $0x2d0] sm:$0xf]  ;;  %v1358_v26 = vsel %vm1355_vm2, %v1356_v60, %v1357_v62  ;;  %v4489_v38 = vor.u32 %v5181_v20, %v4488_v10  ;;  %v4304_v17 = vld [vmem:[%s7851_s3 + $0x2c0] sm:$0xf]  ;;  %v3970_v43 = vld [vmem:[%s7851_s3 + $0x28] sm:$0xf0] }
 0x10e   : > { %v4313_v52 = vor.u32 %v5137_v24, %v4312_v61  ;;  %v4440_v49 = vld [vmem:[%s7851_s3 + $0x3d0] sm:$0xf]  ;;  %v6687_v7 = vpack.c.bf16 %v1358_v26, %v1358_v26  ;;  %v1186_v60 = vadd.f32 %v6481_v28, %v6392_v27  ;;  %v1188_v62 = vadd.f32 %v6512_v22, %v6446_v58  ;;  %v5133_v27 = vld [vmem:[%s7851_s3 + $0x2b4] sm:$0xf0]  ;;  %v1334_v58 = vld [vmem:[#allocation2 + $0x10] sm:$0xf0] }
 0x10f   : > { %2394 = vmatmul.bf16.vlgmr.msra.gmra.mxu0 %v6595_v34  ;;  %2452 = vmatpush.bf16.msrb.mxu1 %v4449_v21  ;;  %v4441_v56 = vor.u32 %v5169_v4, %v4440_v49  ;;  %v1336_v22 = vld [vmem:[#allocation2 + $0x18] sm:$0xf]  ;;  %v4424_v10 = vld [vmem:[%s7851_s3 + $0x3b0] sm:$0xf]  ;;  %v5165_v11 = vld [vmem:[%s7851_s3 + $0x3b4] sm:$0xf0]  ;;  %v1191_v20 = vadd.f32 %v6542_v63, %v6485_v31  ;;  %v3973_v21 = vor.u32 %v5050_v39, %v3970_v43 }
 0x110   : > { %2490 = vmatpush.bf16.msra.mxu0 %v4013_v29  ;;  %2465 = vmatpush.bf16.msrb.mxu2 %v4513_v30  ;;  %v1369_v29 = vrot.slane %v1330_v36, 3  ;;  %v1370_v30 = vrot.slane %v1332_v59, 3  ;;  %v4296_v36 = vld [vmem:[%s7851_s3 + $0x2b0] sm:$0xf]  ;;  %v4288_v12 = vld [vmem:[%s7851_s3 + $0x2a0] sm:$0xf]  ;;  %v4473_v61 = vor.u32 %v5177_v1, %v4472_v53  ;;  %v1207_v31 = vadd.f32 %v6514_v37, %v1188_v62 }
 0x111   : > { %2427 = vmatpush.bf16.msra.mxu3 %v4313_v52  ;;  %v4297_v59 = vor.u32 %v5133_v27, %v4296_v36  ;;  %v3962_v24 = vld [vmem:[%s7851_s3 + $0x18] sm:$0xf0]  ;;  %v4464_v26 = vld [vmem:[%s7851_s3 + $0x400] sm:$0xf]  ;;  %v5175_v63 = vld [vmem:[%s7851_s3 + $0x404] sm:$0xf0]  ;;  %v4425_v32 = vor.u32 %v5165_v11, %v4424_v10 }
 0x112   : > { %v1371_v33 = vsel %vm1368_vm3, %v1369_v29, %v1370_v30  ;;  %v5131_v29 = vld [vmem:[%s7851_s3 + $0x2a4] sm:$0xf0]  ;;  %v1205_v30 = vadd.f32 %v6483_v51, %v1186_v60  ;;  %v5092_v52 = vld [vmem:[%s7851_s3 + $0x174] sm:$0xf]  ;;  %v1382_v51 = vrot.slane %v1334_v58, 4  ;;  %v1226_v48 = vadd.f32 %v6630_v19, %v1207_v31 }
 0x113   : > { %v6723_v5 = vpack.c.bf16 %v1371_v33, %v1371_v33  ;;  %2453 = vmatpush.bf16.msrb.mxu1 %v4441_v56  ;;  %v4289_v37 = vor.u32 %v5131_v29, %v4288_v12  ;;  %v5163_v49 = vld [vmem:[%s7851_s3 + $0x3a4] sm:$0xf0]  ;;  %v1210_v56 = vadd.f32 %v6550_v2, %v1191_v20  ;;  %v3954_v39 = vld [vmem:[%s7851_s3 + $0x8] sm:$0xf0]  ;;  %v5124_v43 = vld [vmem:[%s7851_s3 + $0x274] sm:$0xf] }
 0x114   : > { %2491 = vmatpush.bf16.msra.mxu0 %v4005_v50  ;;  %2466 = vmatpush.bf16.msrb.mxu2 %v4505_v3  ;;  %v6658_v16 = vpop.f32.mrf.mxu0  ;;  %v4305_v50 = vor.u32 %v5135_v18, %v4304_v17  ;;  %v6699_v3 = vpop.f32.mrf.mxu2  ;;  %v1224_v4 = vadd.f32 %v6552_v45, %v1205_v30  ;;  %v4465_v18 = vor.u32 %v5175_v63, %v4464_v26  ;;  %v5046_v45 = vld [vmem:[%s7851_s3 + $0x4] sm:$0xf]  ;;  %v4266_v2 = vld [vmem:[%s7851_s3 + $0x278] sm:$0xf0]  ;;  %v4130_v62 = vld [vmem:[%s7851_s3 + $0x168] sm:$0xf0] }
 0x115   : > { %v6669_v25 = vpop.f32.mrf.mxu1  ;;  %v5090_v60 = vld [vmem:[%s7851_s3 + $0x164] sm:$0xf]  ;;  %v4272_v36 = vld [vmem:[%s7851_s3 + $0x280] sm:$0xf]  ;;  %v5127_v27 = vld [vmem:[%s7851_s3 + $0x284] sm:$0xf0]  ;;  %v1245_v58 = vadd.f32 %v6656_v13, %v1226_v48  ;;  %v4269_v10 = vor.u32 %v5124_v43, %v4266_v2 }
 0x116   : > { %2428 = vmatpush.bf16.msra.mxu3 %v4305_v50  ;;  %v4141_v50 = vor.u32 %v5092_v52, %v4138_v55  ;;  %v4133_v11 = vor.u32 %v5090_v60, %v4130_v62  ;;  %v5122_v12 = vld [vmem:[%s7851_s3 + $0x264] sm:$0xf]  ;;  %v4258_v13 = vld [vmem:[%s7851_s3 + $0x268] sm:$0xf0]  ;;  %v4273_v29 = vor.u32 %v5127_v27, %v4272_v36  ;;  %v5116_v43 = vld [vmem:[%s7851_s3 + $0x234] sm:$0xf] }
 0x117   : > { %2454 = vmatpush.bf16.msrb.mxu1 %v4433_v6  ;;  %v4408_v6 = vld [vmem:[%s7851_s3 + $0x390] sm:$0xf]  ;;  %v4261_v55 = vor.u32 %v5122_v12, %v4258_v13  ;;  %v5114_v62 = vld [vmem:[%s7851_s3 + $0x224] sm:$0xf] }
 0x118   : > { %2492 = vmatpush.bf16.msra.mxu0 %v3997_v8  ;;  %2467 = vmatpush.bf16.msrb.mxu2 %v4497_v46  ;;  %v6736_v8 = vpop.f32.mrf.mxu3  ;;  %v5048_v46 = vld [vmem:[%s7851_s3 + $0x14] sm:$0xf]  ;;  %v4584_v12 = vld [vmem:[%s7851_s3 + $0x4f0] sm:$0xf] }
 0x119   : > { %v3965_v17 = vor.u32 %v5048_v46, %v3962_v24  ;;  %v4122_v24 = vld [vmem:[%s7851_s3 + $0x158] sm:$0xf0] }
 0x11a   : > { %2429 = vmatpush.bf16.msra.mxu3 %v4297_v59  ;;  %v3957_v59 = vor.u32 %v5046_v45, %v3954_v39 }
 0x11b   : > { %2420 = vmatmul.bf16.vlgmr.msra.gmra.mxu2 %v6687_v7  ;;  %2455 = vmatpush.bf16.msrb.mxu1 %v4425_v32 }
 0x11c   : > { %2493 = vmatpush.bf16.msra.mxu0 %v3989_v35  ;;  %2468 = vmatpush.bf16.msrb.mxu2 %v4489_v38  ;;  %v6721_v0 = vpop.f32.mrf.mxu0  ;;  %v1193_v35 = vadd.f32 %v6593_v9, %v6528_v47  ;;  %v1383_v38 = vrot.slane %v1336_v22, 4  ;;  %v4280_v47 = vld [vmem:[%s7851_s3 + $0x290] sm:$0xf]  ;;  %v5129_v9 = vld [vmem:[%s7851_s3 + $0x294] sm:$0xf0]  ;;  %v1230_v19 = vpop.f32.mrf.mxu2 }
 0x11d   : > { %v6734_v28 = vpop.f32.mrf.mxu1  ;;  %v4281_v1 = vor.u32 %v5129_v9, %v4280_v47  ;;  %v1299_v9 = vperm.slane %v6472_v15, 1  ;;  %v4106_v15 = vld [vmem:[%s7851_s3 + $0x138] sm:$0xf0] }
 0x11e   : > { %v1212_v53 = vadd.f32 %v6606_v42, %v1193_v35  ;;  %v1384_v57 = vsel %vm1381_vm4, %v1382_v51, %v1383_v38  ;;  %2430 = vmatpush.bf16.msra.mxu3 %v4289_v37  ;;  %v5161_v42 = vld [vmem:[%s7851_s3 + $0x394] sm:$0xf0]  ;;  %v5120_v35 = vld [vmem:[%s7851_s3 + $0x254] sm:$0xf]  ;;  %v4250_v37 = vld [vmem:[%s7851_s3 + $0x258] sm:$0xf0] }
 0x11f   : > { %2446 = vmatmul.bf16.vlgmr.msrb.gmra.mxu0 %v6723_v5  ;;  %v4409_v26 = vor.u32 %v5161_v42, %v4408_v6  ;;  %v4090_v42 = vld [vmem:[%s7851_s3 + $0x118] sm:$0xf0] }
 0x120   : > { %2494 = vmatpush.bf16.msra.mxu0 %v3981_v40  ;;  %2469 = vmatpush.bf16.msrb.mxu2 %v4481_v44  ;;  %v4417_v40 = vor.u32 %v5163_v49, %v4416_v41  ;;  %v1229_v44 = vadd.f32 %v6699_v3, %v1210_v56  ;;  %v1243_v3 = vadd.f32 %v6574_v23, %v1224_v4  ;;  %v1249_v46 = vpop.f32.mrf.mxu3  ;;  %v4114_v41 = vld [vmem:[%s7851_s3 + $0x148] sm:$0xf0] }
 0x121   : > { %v1231_v22 = vadd.f32 %v1230_v19, %v1212_v53  ;;  %v6825_v23 = vpack.c.bf16 %v1384_v57, %v1384_v57  ;;  %v4253_v56 = vor.u32 %v5120_v35, %v4250_v37  ;;  %v4098_v53 = vld [vmem:[%s7851_s3 + $0x128] sm:$0xf0] }
 0x122   : > { %2456 = vmatpush.bf16.msrb.mxu1 %v4417_v40  ;;  %v1248_v20 = vadd.f32 %v6736_v8, %v1229_v44  ;;  %2431 = vmatpush.bf16.msra.mxu3 %v4281_v1  ;;  %v5159_v8 = vld [vmem:[%s7851_s3 + $0x384] sm:$0xf0]  ;;  %v1262_v31 = vadd.f32 %v6658_v16, %v1243_v3  ;;  %v5086_v16 = vld [vmem:[%s7851_s3 + $0x144] sm:$0xf]  ;;  %v4234_v40 = vld [vmem:[%s7851_s3 + $0x238] sm:$0xf0] }
 0x123   : > { %v1250_v30 = vadd.f32 %v1249_v46, %v1231_v22  ;;  %v5082_v44 = vld [vmem:[%s7851_s3 + $0x124] sm:$0xf]  ;;  %v4237_v57 = vor.u32 %v5116_v43, %v4234_v40  ;;  %v4226_v1 = vld [vmem:[%s7851_s3 + $0x228] sm:$0xf0]  ;;  %v5080_v3 = vld [vmem:[%s7851_s3 + $0x114] sm:$0xf] }
 0x124   : > { %2495 = vmatpush.bf16.msra.mxu0 %v3973_v21  ;;  %2470 = vmatpush.bf16.msrb.mxu2 %v4473_v61  ;;  %v1266_v33 = vpop.f32.mrf.mxu0  ;;  %v1264_v21 = vadd.f32 %v6721_v0, %v1245_v58  ;;  %v5088_v61 = vld [vmem:[%s7851_s3 + $0x154] sm:$0xf]  ;;  %v4400_v0 = vld [vmem:[%s7851_s3 + $0x380] sm:$0xf]  ;;  %v4101_v60 = vor.u32 %v5082_v44, %v4098_v53  ;;  %v4229_v36 = vor.u32 %v5114_v62, %v4226_v1  ;;  %v4218_v22 = vld [vmem:[%s7851_s3 + $0x218] sm:$0xf0] }
 0x125   : > { %v1285_v54 = vpop.f32.mrf.mxu1  ;;  %v1267_v63 = vadd.f32 %v1266_v33, %v1248_v20  ;;  %v4125_v32 = vor.u32 %v5088_v61, %v4122_v24  ;;  %v4401_v49 = vor.u32 %v5159_v8, %v4400_v0  ;;  %v4093_v27 = vor.u32 %v5080_v3, %v4090_v42  ;;  %v5112_v58 = vld [vmem:[%s7851_s3 + $0x214] sm:$0xf]  ;;  %v4082_v46 = vld [vmem:[%s7851_s3 + $0x108] sm:$0xf0]  ;;  %v5205_v20 = vld [vmem:[%s7851_s3 + $0x4f4] sm:$0xf0] }
 0x126   : > { %v1283_v51 = vadd.f32 %v6734_v28, %v1264_v21  ;;  %2457 = vmatpush.bf16.msrb.mxu1 %v4409_v26  ;;  %2432 = vmatpush.bf16.msra.mxu3 %v4273_v29  ;;  %v1281_v28 = vadd.f32 %v6669_v25, %v1262_v31  ;;  %v5084_v25 = vld [vmem:[%s7851_s3 + $0x134] sm:$0xf]  ;;  %v4221_v21 = vor.u32 %v5112_v58, %v4218_v22  ;;  %v5110_v61 = vld [vmem:[%s7851_s3 + $0x204] sm:$0xf]  ;;  %v4210_v24 = vld [vmem:[%s7851_s3 + $0x208] sm:$0xf0] }
 0x127   : > { %v1286_v48 = vadd.f32 %v1285_v54, %v1267_v63  ;;  %v4109_v39 = vor.u32 %v5084_v25, %v4106_v15  ;;  %v5188_v26 = vld [vmem:[%s7851_s3 + $0x474] sm:$0xf]  ;;  %v4522_v0 = vld [vmem:[%s7851_s3 + $0x478] sm:$0xf0]  ;;  %v5154_v8 = vld [vmem:[%s7851_s3 + $0x364] sm:$0xf]  ;;  %v4585_v63 = vor.u32 %v5205_v20, %v4584_v12  ;;  %v4213_v37 = vor.u32 %v5110_v61, %v4210_v24 }
 0x128   : > { %2496 = vmatpush.bf16.msra.mxu0 %v3965_v17  ;;  %2471 = vmatpush.bf16.msrb.mxu2 %v4465_v18  ;;  %v4117_v17 = vor.u32 %v5086_v16, %v4114_v41  ;;  %v5118_v18 = vld [vmem:[%s7851_s3 + $0x244] sm:$0xf]  ;;  %v1291_v45 = vmax.f32 %v1281_v28, %v1283_v51  ;;  %v5076_v41 = vld [vmem:[%s7851_s3 + $0xf4] sm:$0xf]  ;;  %v5201_v25 = vld [vmem:[%s7851_s3 + $0x4d4] sm:$0xf0] }
 0x129   : > { %v5074_v15 = vld [vmem:[%s7851_s3 + $0xe4] sm:$0xf]  ;;  %v4506_v43 = vld [vmem:[%s7851_s3 + $0x458] sm:$0xf0]  ;;  %v4370_v44 = vld [vmem:[%s7851_s3 + $0x348] sm:$0xf0] }
 0x12a   : > { %2458 = vmatpush.bf16.msrb.mxu1 %v4401_v49  ;;  %v4074_v49 = vld [vmem:[%s7851_s3 + $0xf8] sm:$0xf0]  ;;  %v5199_v62 = vld [vmem:[%s7851_s3 + $0x4c4] sm:$0xf0]  ;;  %v5072_v1 = vld [vmem:[%s7851_s3 + $0xd4] sm:$0xf] }
 0x12b   : > { %2472 = vmatmul.bf16.vlgmr.msrb.gmra.mxu2 %v6825_v23  ;;  %v5070_v20 = vld [vmem:[%s7851_s3 + $0xc4] sm:$0xf]  ;;  %v4552_v61 = vld [vmem:[%s7851_s3 + $0x4b0] sm:$0xf]  ;;  %v5197_v24 = vld [vmem:[%s7851_s3 + $0x4b4] sm:$0xf0] }
 0x12c   : > { %2516 = vmatpush.bf16.msra.mxu2 %v4141_v50  ;;  %2497 = vmatpush.bf16.msra.mxu0 %v3957_v59  ;;  %v1268_v52 = vpop.f32.mrf.mxu0  ;;  %v5078_v59 = vld [vmem:[%s7851_s3 + $0x104] sm:$0xf] }
 0x12d   : > { %v1269_v38 = vadd.f32 %v1268_v52, %v1250_v30  ;;  %v1287_v4 = vpop.f32.mrf.mxu1  ;;  %v4085_v13 = vor.u32 %v5078_v59, %v4082_v46  ;;  %v4386_v30 = vld [vmem:[%s7851_s3 + $0x368] sm:$0xf0]  ;;  %v4362_v46 = vld [vmem:[%s7851_s3 + $0x338] sm:$0xf0] }
 0x12e   : > { %v4389_v28 = vor.u32 %v5154_v8, %v4386_v30 }
 0x12f   : > { %2498 = vmatmul.bf16.vlgmr.msra.gmra.mxu0 %v6569_v14  ;;  %v1288_v47 = vadd.f32 %v1287_v4, %v1269_v38  ;;  %v4242_v14 = vld [vmem:[%s7851_s3 + $0x248] sm:$0xf0]  ;;  %v5203_v38 = vld [vmem:[%s7851_s3 + $0x4e4] sm:$0xf0]  ;;  %v4525_v4 = vor.u32 %v5188_v26, %v4522_v0  ;;  %v5180_v0 = vld [vmem:[%s7851_s3 + $0x434] sm:$0xf] }
 0x130   : > { %2542 = vmatpush.bf16.msrb.mxu0 %v4269_v10  ;;  %2517 = vmatpush.bf16.msra.mxu2 %v4133_v11  ;;  %v4245_v50 = vor.u32 %v5118_v18, %v4242_v14  ;;  %v5156_v10 = vld [vmem:[%s7851_s3 + $0x374] sm:$0xf]  ;;  %v4394_v11 = vld [vmem:[%s7851_s3 + $0x378] sm:$0xf0]  ;;  %v4568_v14 = vld [vmem:[%s7851_s3 + $0x4d0] sm:$0xf] }
 0x131   : > { %v1293_v19 = vmax.f32 %v1286_v48, %v1288_v47  ;;  %v4397_v29 = vor.u32 %v5156_v10, %v4394_v11  ;;  %v5186_v48 = vld [vmem:[%s7851_s3 + $0x464] sm:$0xf]  ;;  %v4378_v18 = vld [vmem:[%s7851_s3 + $0x358] sm:$0xf0]  ;;  %v4569_v40 = vor.u32 %v5201_v25, %v4568_v14  ;;  %v4034_v25 = vld [vmem:[%s7851_s3 + $0xa8] sm:$0xf0] }
 0x133   : > { %v1295_v33 = vmax.f32 %v1291_v45, %v1293_v19  ;;  %v4077_v19 = vor.u32 %v5076_v41, %v4074_v49  ;;  %v5195_v41 = vld [vmem:[%s7851_s3 + $0x4a4] sm:$0xf0] }
 0x134   : > { %2543 = vmatpush.bf16.msrb.mxu0 %v4261_v55  ;;  %2518 = vmatpush.bf16.msra.mxu2 %v4125_v32  ;;  %v4576_v55 = vld [vmem:[%s7851_s3 + $0x4e0] sm:$0xf] }
 0x135   : > { %v1303_v2 = vadd.f32 %v1299_v9, %v1295_v33  ;;  %v4577_v9 = vor.u32 %v5203_v38, %v4576_v55 }
 0x137   : > { %v1305_v54 = vmax.f32 %v1303_v2, 0.0  ;;  %v5150_v2 = vld [vmem:[%s7851_s3 + $0x344] sm:$0xf] }
 0x138   : > { %2544 = vmatpush.bf16.msrb.mxu0 %v4253_v56  ;;  %2519 = vmatpush.bf16.msra.mxu2 %v4117_v17  ;;  %v4514_v56 = vld [vmem:[%s7851_s3 + $0x468] sm:$0xf0]  ;;  %v5152_v17 = vld [vmem:[%s7851_s3 + $0x354] sm:$0xf]  ;;  %v4373_v42 = vor.u32 %v5150_v2, %v4370_v44  ;;  %v5142_v2 = vld [vmem:[%s7851_s3 + $0x304] sm:$0xf] }
 0x139   : > { %v1313_v6 = vrot.slane %v1305_v54, 6  ;;  %v4517_v33 = vor.u32 %v5186_v48, %v4514_v56  ;;  %v5178_v48 = vld [vmem:[%s7851_s3 + $0x424] sm:$0xf]  ;;  %v4346_v56 = vld [vmem:[%s7851_s3 + $0x318] sm:$0xf0] }
 0x13b   : > { %1317 = vst [vmem:[#allocation2] sm:$0xfc] %v1313_v6 }
 0x13c   : > { %2545 = vmatpush.bf16.msrb.mxu0 %v4245_v50  ;;  %2520 = vmatpush.bf16.msra.mxu2 %v4109_v39  ;;  %1319 = vst [vmem:[#allocation2 + $0x8] sm:$0x3] %v1313_v6  ;;  %v4381_v50 = vor.u32 %v5152_v17, %v4378_v18  ;;  %v5184_v39 = vld [vmem:[%s7851_s3 + $0x454] sm:$0xf]  ;;  %v4058_v6 = vld [vmem:[%s7851_s3 + $0xd8] sm:$0xf0] }
 0x13d   : > { %v4509_v3 = vor.u32 %v5184_v39, %v4506_v43  ;;  %v4061_v12 = vor.u32 %v5072_v1, %v4058_v6  ;;  %v5176_v39 = vld [vmem:[%s7851_s3 + $0x414] sm:$0xf]  ;;  %v4474_v43 = vld [vmem:[%s7851_s3 + $0x418] sm:$0xf0]  ;;  %v4528_v1 = vld [vmem:[%s7851_s3 + $0x480] sm:$0xf] }
 0x13e   : > { %v5191_v6 = vld [vmem:[%s7851_s3 + $0x484] sm:$0xf0] }
 0x140   : > { %2546 = vmatpush.bf16.msrb.mxu0 %v4237_v57  ;;  %2521 = vmatpush.bf16.msra.mxu2 %v4101_v60  ;;  %v4560_v60 = vld [vmem:[%s7851_s3 + $0x4c0] sm:$0xf] }
 0x141   : > { %v4561_v59 = vor.u32 %v5199_v62, %v4560_v60  ;;  %v5064_v60 = vld [vmem:[%s7851_s3 + $0x94] sm:$0xf]  ;;  %v4026_v62 = vld [vmem:[%s7851_s3 + $0x98] sm:$0xf0] }
 0x142   : > { %v1321_v31 = vld [vmem:[#allocation2] sm:$0xff] }
 0x143   : > { %v1323_v52 = vld [vmem:[#allocation2] sm:$0xfe]  ;;  %v6946_v32 = vpack.c.bf16 %v1321_v31, %v1321_v31  ;;  %v1325_v35 = vld [vmem:[#allocation2 + $0x8] sm:$0x1]  ;;  %v4490_v31 = vld [vmem:[%s7851_s3 + $0x438] sm:$0xf0] }
 0x144   : > { %2547 = vmatpush.bf16.msrb.mxu0 %v4229_v36  ;;  %2522 = vmatpush.bf16.msra.mxu2 %v4093_v27  ;;  %v1346_v51 = vrot.slane %v1323_v52, 1  ;;  %v1347_v16 = vrot.slane %v1325_v35, 1  ;;  %v1327_v53 = vld [vmem:[#allocation2] sm:$0xfc]  ;;  %v1329_v54 = vld [vmem:[#allocation2 + $0x8] sm:$0x3]  ;;  %v4553_v35 = vor.u32 %v5197_v24, %v4552_v61  ;;  %v4493_v49 = vor.u32 %v5180_v0, %v4490_v31 }
 0x145   : > { %2381 = vmatmul.bf16.vlgmr.msrb.gmra.mxu3 %v6946_v32  ;;  %v4498_v36 = vld [vmem:[%s7851_s3 + $0x448] sm:$0xf0]  ;;  %v5148_v27 = vld [vmem:[%s7851_s3 + $0x334] sm:$0xf]  ;;  %v1359_v58 = vrot.slane %v1327_v53, 2  ;;  %v1360_v22 = vrot.slane %v1329_v54, 2 }
 0x146   : > { %2477 = vmatpush.bf16.msrb.mxu3 %v4585_v63  ;;  %v1348_v47 = vsel %vm1342_vm1, %v1346_v51, %v1347_v16  ;;  %v1331_v10 = vld [vmem:[#allocation2] sm:$0xf8]  ;;  %v1333_v11 = vld [vmem:[#allocation2 + $0x8] sm:$0x7]  ;;  %v4365_v26 = vor.u32 %v5148_v27, %v4362_v46  ;;  %v5146_v63 = vld [vmem:[%s7851_s3 + $0x324] sm:$0xf]  ;;  %v4029_v46 = vor.u32 %v5064_v60, %v4026_v62 }
 0x147   : > { %v6972_v45 = vpack.c.bf16 %v1348_v47, %v1348_v47  ;;  %v1372_v8 = vrot.slane %v1331_v10, 3  ;;  %v1373_v30 = vrot.slane %v1333_v11, 3  ;;  %v4354_v52 = vld [vmem:[%s7851_s3 + $0x328] sm:$0xf0]  ;;  %v5068_v51 = vld [vmem:[%s7851_s3 + $0xb4] sm:$0xf]  ;;  %v4529_v10 = vor.u32 %v5191_v6, %v4528_v1 }
 0x148   : > { %2548 = vmatpush.bf16.msrb.mxu0 %v4221_v21  ;;  %2523 = vmatpush.bf16.msra.mxu2 %v4085_v13  ;;  %v4050_v13 = vld [vmem:[%s7851_s3 + $0xc8] sm:$0xf0]  ;;  %v4544_v16 = vld [vmem:[%s7851_s3 + $0x4a0] sm:$0xf]  ;;  %v1337_v53 = vld [vmem:[#allocation2 + $0x8] sm:$0xf] }
 0x149   : > { %2407 = vmatmul.bf16.vlgmr.msra.gmra.mxu1 %v6972_v45  ;;  %v4053_v55 = vor.u32 %v5070_v20, %v4050_v13  ;;  %v4482_v47 = vld [vmem:[%s7851_s3 + $0x428] sm:$0xf0]  ;;  %v4545_v18 = vor.u32 %v5195_v41, %v4544_v16  ;;  %v5140_v61 = vld [vmem:[%s7851_s3 + $0x2f4] sm:$0xf]  ;;  %v4330_v24 = vld [vmem:[%s7851_s3 + $0x2f8] sm:$0xf0] }
 0x14a   : > { %2478 = vmatpush.bf16.msrb.mxu3 %v4577_v9  ;;  %2503 = vmatpush.bf16.msra.mxu1 %v4077_v19  ;;  %v5144_v9 = vld [vmem:[%s7851_s3 + $0x314] sm:$0xf]  ;;  %v5066_v19 = vld [vmem:[%s7851_s3 + $0xa4] sm:$0xf]  ;;  %v1335_v44 = vld [vmem:[#allocation2] sm:$0xf0] }
 0x14b   : > { %2524 = vmatmul.bf16.vlgmr.msra.gmra.mxu2 %v6595_v34  ;;  %v4066_v34 = vld [vmem:[%s7851_s3 + $0xe8] sm:$0xf0]  ;;  %v4037_v54 = vor.u32 %v5066_v19, %v4034_v25  ;;  %v1385_v27 = vrot.slane %v1335_v44, 4  ;;  %v4314_v16 = vld [vmem:[%s7851_s3 + $0x2d8] sm:$0xf0] }
 0x14c   : > { %2568 = vmatpush.bf16.msrb.mxu2 %v4397_v29  ;;  %2549 = vmatpush.bf16.msrb.mxu0 %v4213_v37  ;;  %v4069_v57 = vor.u32 %v5074_v15, %v4066_v34  ;;  %v1361_v29 = vsel %vm1355_vm2, %v1359_v58, %v1360_v22  ;;  %v4042_v37 = vld [vmem:[%s7851_s3 + $0xb8] sm:$0xf0]  ;;  %v4536_v15 = vld [vmem:[%s7851_s3 + $0x490] sm:$0xf]  ;;  %v5193_v34 = vld [vmem:[%s7851_s3 + $0x494] sm:$0xf0] }
 0x14d   : > { %v7052_v38 = vpack.c.bf16 %v1361_v29, %v1361_v29  ;;  %v4045_v17 = vor.u32 %v5068_v51, %v4042_v37  ;;  %v1386_v58 = vrot.slane %v1337_v53, 4  ;;  %v5174_v22 = vld [vmem:[%s7851_s3 + $0x404] sm:$0xf]  ;;  %v4018_v20 = vld [vmem:[%s7851_s3 + $0x88] sm:$0xf0] }
 0x14e   : > { %2479 = vmatpush.bf16.msrb.mxu3 %v4569_v40  ;;  %2504 = vmatpush.bf16.msra.mxu1 %v4069_v57  ;;  %v4338_v40 = vld [vmem:[%s7851_s3 + $0x308] sm:$0xf0]  ;;  %v4537_v57 = vor.u32 %v5193_v34, %v4536_v15  ;;  %v5136_v37 = vld [vmem:[%s7851_s3 + $0x2d4] sm:$0xf]  ;;  %v5102_v41 = vld [vmem:[%s7851_s3 + $0x1c4] sm:$0xf] }
 0x14f   : > { %2550 = vmatmul.bf16.vlgmr.msrb.gmra.mxu0 %v6687_v7  ;;  %v5182_v7 = vld [vmem:[%s7851_s3 + $0x444] sm:$0xf]  ;;  %v1387_v13 = vsel %vm1381_vm4, %v1385_v27, %v1386_v58  ;;  %v4194_v29 = vld [vmem:[%s7851_s3 + $0x1e8] sm:$0xf0]  ;;  %v5128_v44 = vld [vmem:[%s7851_s3 + $0x294] sm:$0xf] }
 0x150   : > { %2594 = vmatpush.bf16.msra.mxu0 %v4525_v4  ;;  %2569 = vmatpush.bf16.msrb.mxu2 %v4389_v28  ;;  %v4501_v21 = vor.u32 %v5182_v7, %v4498_v36  ;;  %v4357_v4 = vor.u32 %v5146_v63, %v4354_v52  ;;  %v1374_v28 = vsel %vm1368_vm3, %v1372_v8, %v1373_v30  ;;  %v4202_v36 = vld [vmem:[%s7851_s3 + $0x1f8] sm:$0xf0]  ;;  %v5138_v63 = vld [vmem:[%s7851_s3 + $0x2e4] sm:$0xf]  ;;  %v4322_v52 = vld [vmem:[%s7851_s3 + $0x2e8] sm:$0xf0] }
 0x151   : > { %v7080_v14 = vpack.c.bf16 %v1374_v28, %v1374_v28  ;;  %v4477_v7 = vor.u32 %v5176_v39, %v4474_v43  ;;  %v7148_v8 = vpack.c.bf16 %v1387_v13, %v1387_v13  ;;  %v4333_v30 = vor.u32 %v5140_v61, %v4330_v24  ;;  %v5134_v28 = vld [vmem:[%s7851_s3 + $0x2c4] sm:$0xf]  ;;  %v4162_v25 = vld [vmem:[%s7851_s3 + $0x1a8] sm:$0xf0]  ;;  %v5096_v39 = vld [vmem:[%s7851_s3 + $0x194] sm:$0xf] }
 0x152   : > { %2480 = vmatpush.bf16.msrb.mxu3 %v4561_v59  ;;  %2505 = vmatpush.bf16.msra.mxu1 %v4061_v12  ;;  %v4466_v59 = vld [vmem:[%s7851_s3 + $0x408] sm:$0xf0]  ;;  %v5062_v12 = vld [vmem:[%s7851_s3 + $0x84] sm:$0xf]  ;;  %v4154_v43 = vld [vmem:[%s7851_s3 + $0x198] sm:$0xf0] }
 0x153   : > { %v4021_v0 = vor.u32 %v5062_v12, %v4018_v20  ;;  %v5098_v19 = vld [vmem:[%s7851_s3 + $0x1a4] sm:$0xf]  ;;  %v4282_v53 = vld [vmem:[%s7851_s3 + $0x298] sm:$0xf0]  ;;  %v5172_v60 = vld [vmem:[%s7851_s3 + $0x3f4] sm:$0xf] }
 0x154   : > { %2595 = vmatpush.bf16.msra.mxu0 %v4517_v33  ;;  %2570 = vmatpush.bf16.msrb.mxu2 %v4381_v50  ;;  %v4485_v33 = vor.u32 %v5178_v48, %v4482_v47  ;;  %v4349_v50 = vor.u32 %v5144_v9, %v4346_v56  ;;  %v5100_v48 = vld [vmem:[%s7851_s3 + $0x1b4] sm:$0xf]  ;;  %v4170_v47 = vld [vmem:[%s7851_s3 + $0x1b8] sm:$0xf0]  ;;  %v4165_v34 = vor.u32 %v5098_v19, %v4162_v25  ;;  %v5170_v58 = vld [vmem:[%s7851_s3 + $0x3e4] sm:$0xf] }
 0x155   : > { %2433 = vmatmul.bf16.vlgmr.msra.gmra.mxu3 %v7052_v38  ;;  %v4173_v56 = vor.u32 %v5100_v48, %v4170_v47  ;;  %v4458_v62 = vld [vmem:[%s7851_s3 + $0x3f8] sm:$0xf0]  ;;  %v4285_v1 = vor.u32 %v5128_v44, %v4282_v53  ;;  %v4578_v12 = vld [vmem:[%s7851_s3 + $0x4e8] sm:$0xf0]  ;;  %v5168_v20 = vld [vmem:[%s7851_s3 + $0x3d4] sm:$0xf] }
 0x156   : > { %2506 = vmatpush.bf16.msra.mxu1 %v4053_v55  ;;  %2481 = vmatpush.bf16.msrb.mxu3 %v4553_v35  ;;  %v5104_v55 = vld [vmem:[%s7851_s3 + $0x1d4] sm:$0xf]  ;;  %v4325_v35 = vor.u32 %v5138_v63, %v4322_v52  ;;  %v4586_v27 = vld [vmem:[%s7851_s3 + $0x4f8] sm:$0xf0] }
 0x157   : > { %v5200_v24 = vld [vmem:[%s7851_s3 + $0x4d4] sm:$0xf]  ;;  %v4538_v25 = vld [vmem:[%s7851_s3 + $0x498] sm:$0xf0] }
 0x158   : > { %2596 = vmatpush.bf16.msra.mxu0 %v4509_v3  ;;  %2571 = vmatpush.bf16.msrb.mxu2 %v4373_v42  ;;  %v4341_v3 = vor.u32 %v5142_v2, %v4338_v40  ;;  %v5108_v42 = vld [vmem:[%s7851_s3 + $0x1f4] sm:$0xf]  ;;  %v4157_v40 = vor.u32 %v5096_v39, %v4154_v43  ;;  %v5190_v39 = vld [vmem:[%s7851_s3 + $0x484] sm:$0xf]  ;;  %v4530_v43 = vld [vmem:[%s7851_s3 + $0x488] sm:$0xf0] }
 0x159   : > { %2459 = vmatmul.bf16.vlgmr.msrb.gmra.mxu1 %v7080_v14  ;;  %v4205_v11 = vor.u32 %v5108_v42, %v4202_v36  ;;  %v4461_v42 = vor.u32 %v5172_v60, %v4458_v62  ;;  %v5204_v36 = vld [vmem:[%s7851_s3 + $0x4f4] sm:$0xf]  ;;  %v4533_v44 = vor.u32 %v5190_v39, %v4530_v43  ;;  %v5235_v39 = vld [vmem:[%s7853_s5 + $0xe4] sm:$0xf0] }
 0x15a   : > { %2507 = vmatpush.bf16.msra.mxu1 %v4045_v17  ;;  %2482 = vmatpush.bf16.msrb.mxu3 %v4545_v18  ;;  %v5132_v17 = vld [vmem:[%s7851_s3 + $0x2b4] sm:$0xf]  ;;  %v4298_v18 = vld [vmem:[%s7851_s3 + $0x2b8] sm:$0xf0] }
 0x15b   : > { %v4301_v15 = vor.u32 %v5132_v17, %v4298_v18  ;;  %v5164_v52 = vld [vmem:[%s7851_s3 + $0x3b4] sm:$0xf] }
 0x15c   : > { %2597 = vmatpush.bf16.msra.mxu0 %v4501_v21  ;;  %2572 = vmatpush.bf16.msrb.mxu2 %v4365_v26  ;;  %v4469_v21 = vor.u32 %v5174_v22, %v4466_v59  ;;  %v5106_v26 = vld [vmem:[%s7851_s3 + $0x1e4] sm:$0xf]  ;;  %v4450_v22 = vld [vmem:[%s7851_s3 + $0x3e8] sm:$0xf0]  ;;  %v5160_v47 = vld [vmem:[%s7851_s3 + $0x394] sm:$0xf] }
 0x15d   : > { %v4197_v31 = vor.u32 %v5106_v26, %v4194_v29  ;;  %v4570_v26 = vld [vmem:[%s7851_s3 + $0x4d8] sm:$0xf0]  ;;  %v5166_v29 = vld [vmem:[%s7851_s3 + $0x3c4] sm:$0xf]  ;;  %v5192_v19 = vld [vmem:[%s7851_s3 + $0x494] sm:$0xf] }
 0x15e   : > { %2508 = vmatpush.bf16.msra.mxu1 %v4037_v54  ;;  %2483 = vmatpush.bf16.msrb.mxu3 %v4537_v57  ;;  %v5094_v54 = vld [vmem:[%s7851_s3 + $0x184] sm:$0xf]  ;;  %v4146_v57 = vld [vmem:[%s7851_s3 + $0x188] sm:$0xf0] }
 0x15f   : > { %v4149_v6 = vor.u32 %v5094_v54, %v4146_v57 }
 0x160   : > { %2598 = vmatpush.bf16.msra.mxu0 %v4493_v49  ;;  %2573 = vmatpush.bf16.msrb.mxu2 %v4357_v4  ;;  %v4317_v49 = vor.u32 %v5136_v37, %v4314_v16  ;;  %v5196_v37 = vld [vmem:[%s7851_s3 + $0x4b4] sm:$0xf]  ;;  %v4554_v16 = vld [vmem:[%s7851_s3 + $0x4b8] sm:$0xf0] }
 0x162   : > { %2509 = vmatpush.bf16.msra.mxu1 %v4029_v46  ;;  %2484 = vmatpush.bf16.msrb.mxu3 %v4529_v10  ;;  %v4589_v46 = vor.u32 %v5204_v36, %v4586_v27  ;;  %v4453_v10 = vor.u32 %v5170_v58, %v4450_v22 }
 0x164   : > { %2599 = vmatpush.bf16.msra.mxu0 %v4485_v33  ;;  %2574 = vmatpush.bf16.msrb.mxu2 %v4349_v50  ;;  %v5130_v33 = vld [vmem:[%s7851_s3 + $0x2a4] sm:$0xf]  ;;  %v4290_v50 = vld [vmem:[%s7851_s3 + $0x2a8] sm:$0xf0] }
 0x165   : > { %2485 = vmatmul.bf16.vlgmr.msrb.gmra.mxu3 %v7148_v8  ;;  %v4293_v2 = vor.u32 %v5130_v33, %v4290_v50  ;;  %v4541_v33 = vor.u32 %v5192_v19, %v4538_v25  ;;  %v5219_v19 = vld [vmem:[%s7853_s5 + $0x64] sm:$0xf0] }
 0x166   : > { %2529 = vmatpush.bf16.msra.mxu3 %v4205_v11  ;;  %2510 = vmatpush.bf16.msra.mxu1 %v4021_v0  ;;  %v5202_v11 = vld [vmem:[%s7851_s3 + $0x4e4] sm:$0xf]  ;;  %v4573_v0 = vor.u32 %v5200_v24, %v4570_v26 }
 0x167   : > { %v4581_v13 = vor.u32 %v5202_v11, %v4578_v12 }
 0x168   : > { %2600 = vmatpush.bf16.msra.mxu0 %v4477_v7  ;;  %2575 = vmatpush.bf16.msrb.mxu2 %v4341_v3  ;;  %v5126_v7 = vld [vmem:[%s7851_s3 + $0x284] sm:$0xf]  ;;  %v4274_v3 = vld [vmem:[%s7851_s3 + $0x288] sm:$0xf0] }
 0x169   : > { %2511 = vmatmul.bf16.vlgmr.msra.gmra.mxu1 %v6946_v32  ;;  %v4306_v32 = vld [vmem:[%s7851_s3 + $0x2c8] sm:$0xf0]  ;;  %v4277_v59 = vor.u32 %v5126_v7, %v4274_v3 }
 0x16a   : > { %2555 = vmatpush.bf16.msrb.mxu1 %v4333_v30  ;;  %2530 = vmatpush.bf16.msra.mxu3 %v4197_v31  ;;  %v4309_v9 = vor.u32 %v5134_v28, %v4306_v32  ;;  %v5198_v31 = vld [vmem:[%s7851_s3 + $0x4c4] sm:$0xf]  ;;  %v4546_v32 = vld [vmem:[%s7851_s3 + $0x4a8] sm:$0xf0] }
 0x16b   : > { %2576 = vmatmul.bf16.vlgmr.msrb.gmra.mxu2 %v6723_v5  ;;  %v4186_v5 = vld [vmem:[%s7851_s3 + $0x1d8] sm:$0xf0]  ;;  %v5194_v28 = vld [vmem:[%s7851_s3 + $0x4a4] sm:$0xf] }
 0x16c   : > { %2601 = vmatpush.bf16.msra.mxu0 %v4469_v21  ;;  %v4189_v51 = vor.u32 %v5104_v55, %v4186_v5  ;;  %v4442_v21 = vld [vmem:[%s7851_s3 + $0x3d8] sm:$0xf0]  ;;  %v4549_v17 = vor.u32 %v5194_v28, %v4546_v32  ;;  %v4712_v32 = vld [vmem:[%s7853_s5 + $0xf0] sm:$0xf] }
 0x16d   : > { %v4445_v61 = vor.u32 %v5168_v20, %v4442_v21  ;;  %v4426_v55 = vld [vmem:[%s7851_s3 + $0x3b8] sm:$0xf0] }
 0x16e   : > { %2556 = vmatpush.bf16.msrb.mxu1 %v4325_v35  ;;  %2531 = vmatpush.bf16.msra.mxu3 %v4189_v51  ;;  %v4429_v51 = vor.u32 %v5164_v52, %v4426_v55 }
 0x16f   : > { %2602 = vmatmul.bf16.vlgmr.msra.gmra.mxu0 %v6825_v23  ;;  %v4178_v23 = vld [vmem:[%s7851_s3 + $0x1c8] sm:$0xf0] }
 0x170   : > { %v4181_v4 = vor.u32 %v5102_v41, %v4178_v23  ;;  %v5162_v41 = vld [vmem:[%s7851_s3 + $0x3a4] sm:$0xf]  ;;  %v4418_v23 = vld [vmem:[%s7851_s3 + $0x3a8] sm:$0xf0] }
 0x172   : > { %2557 = vmatpush.bf16.msrb.mxu1 %v4317_v49  ;;  %2532 = vmatpush.bf16.msra.mxu3 %v4181_v4  ;;  %v4557_v49 = vor.u32 %v5196_v37, %v4554_v16  ;;  %v4421_v4 = vor.u32 %v5162_v41, %v4418_v23 }
 0x176   : > { %2558 = vmatpush.bf16.msrb.mxu1 %v4309_v9  ;;  %2533 = vmatpush.bf16.msra.mxu3 %v4173_v56  ;;  %v4410_v9 = vld [vmem:[%s7851_s3 + $0x398] sm:$0xf0] }
 0x177   : > { %v4413_v18 = vor.u32 %v5160_v47, %v4410_v9  ;;  %v4776_v9 = vld [vmem:[%s7853_s5 + $0x170] sm:$0xf] }
 0x17a   : > { %2559 = vmatpush.bf16.msrb.mxu1 %v4301_v15  ;;  %2534 = vmatpush.bf16.msra.mxu3 %v4165_v34  ;;  %v5158_v15 = vld [vmem:[%s7851_s3 + $0x384] sm:$0xf]  ;;  %v4402_v34 = vld [vmem:[%s7851_s3 + $0x388] sm:$0xf0] }
 0x17b   : > { %v4405_v50 = vor.u32 %v5158_v15, %v4402_v34  ;;  %v4840_v15 = vld [vmem:[%s7853_s5 + $0x1f0] sm:$0xf]  ;;  %v5269_v34 = vld [vmem:[%s7853_s5 + $0x1f4] sm:$0xf0] }
 0x17e   : > { %2560 = vmatpush.bf16.msrb.mxu1 %v4293_v2  ;;  %2535 = vmatpush.bf16.msra.mxu3 %v4157_v40 }
 0x182   : > { %2561 = vmatpush.bf16.msrb.mxu1 %v4285_v1  ;;  %2536 = vmatpush.bf16.msra.mxu3 %v4149_v6 }
 0x185   : > { %2537 = vmatmul.bf16.vlgmr.msra.gmra.mxu3 %v6972_v45  ;;  %v4434_v45 = vld [vmem:[%s7851_s3 + $0x3c8] sm:$0xf0] }
 0x186   : > { %2581 = vmatpush.bf16.msrb.mxu3 %v4461_v42  ;;  %2562 = vmatpush.bf16.msrb.mxu1 %v4277_v59  ;;  %v4437_v30 = vor.u32 %v5166_v29, %v4434_v45 }
 0x189   : > { %2563 = vmatmul.bf16.vlgmr.msrb.gmra.mxu1 %v7052_v38  ;;  %v4562_v38 = vld [vmem:[%s7851_s3 + $0x4c8] sm:$0xf0] }
 0x18a   : > { %2607 = vmatpush.bf16.msra.mxu1 %v4589_v46  ;;  %2582 = vmatpush.bf16.msrb.mxu3 %v4453_v10  ;;  %v4565_v35 = vor.u32 %v5198_v31, %v4562_v38 }
 0x18c   : > { %v2395_v63 = vpop.f32.mrf.mxu0 }
 0x18e   : > { %2608 = vmatpush.bf16.msra.mxu1 %v4581_v13  ;;  %2583 = vmatpush.bf16.msrb.mxu3 %v4445_v61  ;;  %v2369_v5 = vpop.f32.mrf.mxu2 }
 0x192   : > { %2609 = vmatpush.bf16.msra.mxu1 %v4573_v0  ;;  %2584 = vmatpush.bf16.msrb.mxu3 %v4437_v30 }
 0x194   : > { %v2397_v48 = vpop.f32.mrf.mxu0 }
 0x195   : > { %v5237_v48 = vld [vmem:[%s7853_s5 + $0xf4] sm:$0xf0] }
 0x196   : > { %2610 = vmatpush.bf16.msra.mxu1 %v4565_v35  ;;  %2585 = vmatpush.bf16.msrb.mxu3 %v4429_v51  ;;  %v2371_v56 = vpop.f32.mrf.mxu2  ;;  %v4713_v47 = vor.u32 %v5237_v48, %v4712_v32 }
 0x197   : > { %v5253_v56 = vld [vmem:[%s7853_s5 + $0x174] sm:$0xf0] }
 0x19a   : > { %2611 = vmatpush.bf16.msra.mxu1 %v4557_v49  ;;  %2586 = vmatpush.bf16.msrb.mxu3 %v4421_v4  ;;  %v4648_v49 = vld [vmem:[%s7853_s5 + $0x70] sm:$0xf]  ;;  %v5221_v4 = vld [vmem:[%s7853_s5 + $0x74] sm:$0xf0] }
 0x19b   : > { %v4649_v28 = vor.u32 %v5221_v4, %v4648_v49  ;;  %v4808_v4 = vld [vmem:[%s7853_s5 + $0x1b0] sm:$0xf] }
 0x19c   : > { %v2447_v2 = vpop.f32.mrf.mxu0 }
 0x19d   : > { %3153 = vmatpush.bf16.msra.mxu2 %v4649_v28  ;;  %v5261_v28 = vld [vmem:[%s7853_s5 + $0x1b4] sm:$0xf0] }
 0x19e   : > { %2612 = vmatpush.bf16.msra.mxu1 %v4549_v17  ;;  %2587 = vmatpush.bf16.msrb.mxu3 %v4413_v18  ;;  %v2421_v40 = vpop.f32.mrf.mxu2  ;;  %v4777_v17 = vor.u32 %v5253_v56, %v4776_v9  ;;  %v4640_v18 = vld [vmem:[%s7853_s5 + $0x60] sm:$0xf]  ;;  %v5227_v56 = vld [vmem:[%s7853_s5 + $0xa4] sm:$0xf0] }
 0x19f   : > { %v4641_v25 = vor.u32 %v5219_v19, %v4640_v18  ;;  %v4672_v9 = vld [vmem:[%s7853_s5 + $0xa0] sm:$0xf]  ;;  %v5243_v19 = vld [vmem:[%s7853_s5 + $0x124] sm:$0xf0] }
 0x1a0   : > { %3179 = vmatpush.bf16.msrb.mxu0 %v4777_v17  ;;  %v4736_v17 = vld [vmem:[%s7853_s5 + $0x120] sm:$0xf]  ;;  %v4673_v18 = vor.u32 %v5227_v56, %v4672_v9  ;;  %v5216_v9 = vld [vmem:[%s7853_s5 + $0x54] sm:$0xf] }
 0x1a1   : > { %3154 = vmatpush.bf16.msra.mxu2 %v4641_v25  ;;  %v4600_v25 = vld [vmem:[%s7853_s5 + $0x10] sm:$0xf] }
 0x1a2   : > { %2613 = vmatpush.bf16.msra.mxu1 %v4541_v33  ;;  %2588 = vmatpush.bf16.msrb.mxu3 %v4405_v50  ;;  %v4841_v33 = vor.u32 %v5269_v34, %v4840_v15  ;;  %v4704_v50 = vld [vmem:[%s7853_s5 + $0xe0] sm:$0xf]  ;;  %v5209_v15 = vld [vmem:[%s7853_s5 + $0x14] sm:$0xf0] }
 0x1a3   : > { %v4705_v43 = vor.u32 %v5235_v39, %v4704_v50  ;;  %v4800_v50 = vld [vmem:[%s7853_s5 + $0x1a0] sm:$0xf]  ;;  %v5259_v39 = vld [vmem:[%s7853_s5 + $0x1a4] sm:$0xf0] }
 0x1a4   : > { %v2449_v53 = vpop.f32.mrf.mxu0 }
 0x1a5   : > { %2589 = vmatmul.bf16.vlgmr.msrb.gmra.mxu3 %v7080_v14  ;;  %v4632_v53 = vld [vmem:[%s7853_s5 + $0x50] sm:$0xf] }
 0x1a6   : > { %2614 = vmatpush.bf16.msra.mxu1 %v4533_v44  ;;  %v2423_v54 = vpop.f32.mrf.mxu2  ;;  %3166 = vmatpush.bf16.msra.mxu3 %v4713_v47  ;;  %v4809_v47 = vor.u32 %v5261_v28, %v4808_v4  ;;  %v5234_v4 = vld [vmem:[%s7853_s5 + $0xe4] sm:$0xf]  ;;  %v4706_v28 = vld [vmem:[%s7853_s5 + $0xe8] sm:$0xf0] }
 0x1a7   : > { %v5217_v54 = vld [vmem:[%s7853_s5 + $0x54] sm:$0xf0]  ;;  %v4709_v56 = vor.u32 %v5234_v4, %v4706_v28 }
 0x1a9   : > { %2615 = vmatmul.bf16.vlgmr.msra.gmra.mxu1 %v7148_v8 }
 0x1aa   : > { %3192 = vmatpush.bf16.msrb.mxu1 %v4841_v33  ;;  %3167 = vmatpush.bf16.msra.mxu3 %v4705_v43  ;;  %v4737_v33 = vor.u32 %v5243_v19, %v4736_v17  ;;  %v4664_v43 = vld [vmem:[%s7853_s5 + $0x90] sm:$0xf]  ;;  %v4634_v17 = vld [vmem:[%s7853_s5 + $0x58] sm:$0xf0]  ;;  %v4834_v19 = vld [vmem:[%s7853_s5 + $0x1e8] sm:$0xf0] }
 0x1ac   : > { %v2499_v57 = vpop.f32.mrf.mxu0 }
 0x1ae   : > { %v2473_v60 = vpop.f32.mrf.mxu2 }
 0x1b4   : > { %v2501_v62 = vpop.f32.mrf.mxu0 }
 0x1b5   : > { %v5267_v62 = vld [vmem:[%s7853_s5 + $0x1e4] sm:$0xf0] }
 0x1b6   : > { %v2475_v1 = vpop.f32.mrf.mxu2 }
 0x1c6   : > { %v2408_v6 = vpop.f32.mrf.mxu1 }
 0x1c8   : > { %v2382_v3 = vpop.f32.mrf.mxu3 }
 0x1c9   : > { %v2383_v42 = vadd.f32 %v2382_v3, %v2369_v5 }
 0x1cb   : > { %v2396_v27 = vadd.f32 %v2395_v63, %v2383_v42  ;;  %v4760_v42 = vld [vmem:[%s7853_s5 + $0x150] sm:$0xf] }
 0x1cc   : > { %v2551_v7 = vpop.f32.mrf.mxu0 }
 0x1cd   : > { %v2409_v58 = vadd.f32 %v2408_v6, %v2396_v27  ;;  %v4696_v6 = vld [vmem:[%s7853_s5 + $0xd0] sm:$0xf] }
 0x1ce   : > { %v2525_v36 = vpop.f32.mrf.mxu2  ;;  %v2410_v22 = vpop.f32.mrf.mxu1 }
 0x1cf   : > { %v2422_v59 = vadd.f32 %v2421_v40, %v2409_v58  ;;  %v5251_v40 = vld [vmem:[%s7853_s5 + $0x164] sm:$0xf0]  ;;  %v4624_v58 = vld [vmem:[%s7853_s5 + $0x40] sm:$0xf] }
 0x1d0   : > { %v2384_v14 = vpop.f32.mrf.mxu3  ;;  %v5215_v22 = vld [vmem:[%s7853_s5 + $0x44] sm:$0xf0] }
 0x1d1   : > { %v5265_v14 = vld [vmem:[%s7853_s5 + $0x1d4] sm:$0xf0] }
 0x1d4   : > { %v2553_v46 = vpop.f32.mrf.mxu0 }
 0x1d5   : > { %v4824_v46 = vld [vmem:[%s7853_s5 + $0x1d0] sm:$0xf] }
 0x1d6   : > { %v2527_v10 = vpop.f32.mrf.mxu2  ;;  %v2460_v11 = vpop.f32.mrf.mxu1 }
 0x1d8   : > { %v2434_v12 = vpop.f32.mrf.mxu3 }
 0x1d9   : > { %v2435_v8 = vadd.f32 %v2434_v12, %v2422_v59  ;;  %v4625_v59 = vor.u32 %v5215_v22, %v4624_v58  ;;  %v4688_v12 = vld [vmem:[%s7853_s5 + $0xc0] sm:$0xf]  ;;  %v5223_v22 = vld [vmem:[%s7853_s5 + $0x84] sm:$0xf0] }
 0x1da   : > { %v4656_v58 = vld [vmem:[%s7853_s5 + $0x80] sm:$0xf] }
 0x1db   : > { %v2448_v20 = vadd.f32 %v2447_v2, %v2435_v8  ;;  %v4768_v2 = vld [vmem:[%s7853_s5 + $0x160] sm:$0xf]  ;;  %v5231_v8 = vld [vmem:[%s7853_s5 + $0xc4] sm:$0xf0] }
 0x1dc   : > { %v4769_v44 = vor.u32 %v5251_v40, %v4768_v2  ;;  %v4601_v2 = vor.u32 %v5209_v15, %v4600_v25  ;;  %v4728_v40 = vld [vmem:[%s7853_s5 + $0x110] sm:$0xf]  ;;  %v5232_v15 = vld [vmem:[%s7853_s5 + $0xd4] sm:$0xf] }
 0x1dd   : > { %v2461_v21 = vadd.f32 %v2460_v11, %v2448_v20  ;;  %v4825_v11 = vor.u32 %v5265_v14, %v4824_v46  ;;  %v4689_v20 = vor.u32 %v5231_v8, %v4688_v12  ;;  %v5239_v12 = vld [vmem:[%s7853_s5 + $0x104] sm:$0xf0]  ;;  %v5236_v8 = vld [vmem:[%s7853_s5 + $0xf4] sm:$0xf] }
 0x1de   : > { %v2462_v13 = vpop.f32.mrf.mxu1  ;;  %3180 = vmatpush.bf16.msrb.mxu0 %v4769_v44  ;;  %v5241_v44 = vld [vmem:[%s7853_s5 + $0x114] sm:$0xf0] }
 0x1df   : > { %v2474_v61 = vadd.f32 %v2473_v60, %v2461_v21  ;;  %v4832_v60 = vld [vmem:[%s7853_s5 + $0x1e0] sm:$0xf]  ;;  %v5247_v13 = vld [vmem:[%s7853_s5 + $0x144] sm:$0xf0] }
 0x1e0   : > { %v2436_v24 = vpop.f32.mrf.mxu3  ;;  %v4833_v1 = vor.u32 %v5267_v62, %v4832_v60  ;;  %v4752_v21 = vld [vmem:[%s7853_s5 + $0x140] sm:$0xf]  ;;  %v5207_v62 = vld [vmem:[%s7853_s5 + $0x4] sm:$0xf0] }
 0x1e1   : > { %v4753_v24 = vor.u32 %v5247_v13, %v4752_v21  ;;  %v4592_v60 = vld [vmem:[%s7853_s5] sm:$0xf] }
 0x1e2   : > { %3193 = vmatpush.bf16.msrb.mxu1 %v4833_v1  ;;  %v4792_v1 = vld [vmem:[%s7853_s5 + $0x190] sm:$0xf]  ;;  %v4593_v46 = vor.u32 %v5207_v62, %v4592_v60 }
 0x1e6   : > { %v2512_v29 = vpop.f32.mrf.mxu1  ;;  %3194 = vmatpush.bf16.msrb.mxu1 %v4825_v11  ;;  %v4720_v11 = vld [vmem:[%s7853_s5 + $0x100] sm:$0xf] }
 0x1e7   : > { %v2513_v0 = vadd.f32 %v2512_v29, %v2499_v57  ;;  %v4633_v57 = vor.u32 %v5217_v54, %v4632_v53  ;;  %v4616_v29 = vld [vmem:[%s7853_s5 + $0x30] sm:$0xf] }
 0x1e8   : > { %v2486_v30 = vpop.f32.mrf.mxu3 }
 0x1e9   : > { %v7335_v31 = vadd.f32 %v2486_v30, %v2474_v61  ;;  %v2526_v38 = vadd.f32 %v2525_v36, %v2513_v0  ;;  %3155 = vmatpush.bf16.msra.mxu2 %v4633_v57  ;;  %v5249_v36 = vld [vmem:[%s7853_s5 + $0x154] sm:$0xf0]  ;;  %v4816_v30 = vld [vmem:[%s7853_s5 + $0x1c0] sm:$0xf]  ;;  %v4801_v57 = vor.u32 %v5259_v39, %v4800_v50 }
 0x1ea   : > { %v4761_v27 = vor.u32 %v5249_v36, %v4760_v42  ;;  %v5213_v0 = vld [vmem:[%s7853_s5 + $0x34] sm:$0xf0]  ;;  %v4650_v42 = vld [vmem:[%s7853_s5 + $0x78] sm:$0xf0] }
 0x1ec   : > { %v7331_v26 = vpop.f32.mrf.mxu0  ;;  %3181 = vmatpush.bf16.msrb.mxu0 %v4761_v27  ;;  %v4729_v27 = vor.u32 %v5241_v44, %v4728_v40  ;;  %v4762_v44 = vld [vmem:[%s7853_s5 + $0x158] sm:$0xf0] }
 0x1ed   : > { %3156 = vmatpush.bf16.msra.mxu2 %v4625_v59 }
 0x1ee   : > { %v7333_v45 = vpop.f32.mrf.mxu2  ;;  %v2514_v52 = vpop.f32.mrf.mxu1 }
 0x1ef   : > { %v4680_v52 = vld [vmem:[%s7853_s5 + $0xb0] sm:$0xf] }
 0x1f0   : > { %v2488_v5 = vpop.f32.mrf.mxu3  ;;  %3182 = vmatpush.bf16.msrb.mxu0 %v4753_v24  ;;  %v4714_v24 = vld [vmem:[%s7853_s5 + $0xf8] sm:$0xf0] }
 0x1f4   : > { %v2605_v63 = vpop.f32.mrf.mxu0 }
 0x1f5   : > { %v5263_v63 = vld [vmem:[%s7853_s5 + $0x1c4] sm:$0xf0] }
 0x1f6   : > { %v2579_v55 = vpop.f32.mrf.mxu2 }
 0x1f7   : > { %v5229_v55 = vld [vmem:[%s7853_s5 + $0xb4] sm:$0xf0] }
 0x206   : > { %v2564_v35 = vpop.f32.mrf.mxu1 }
 0x208   : > { %v2538_v51 = vpop.f32.mrf.mxu3 }
 0x209   : > { %v2539_v37 = vadd.f32 %v2538_v51, %v2526_v38  ;;  %v4617_v38 = vor.u32 %v5213_v0, %v4616_v29  ;;  %v4681_v51 = vor.u32 %v5229_v55, %v4680_v52  ;;  %v5252_v29 = vld [vmem:[%s7853_s5 + $0x174] sm:$0xf]  ;;  %v4778_v0 = vld [vmem:[%s7853_s5 + $0x178] sm:$0xf0]  ;;  %v4657_v52 = vor.u32 %v5223_v22, %v4656_v58 }
 0x20a   : > { %v4717_v55 = vor.u32 %v5236_v8, %v4714_v24 }
 0x20b   : > { %v2552_v16 = vadd.f32 %v2551_v7, %v2539_v37  ;;  %v5233_v7 = vld [vmem:[%s7853_s5 + $0xd4] sm:$0xf0]  ;;  %v4744_v37 = vld [vmem:[%s7853_s5 + $0x130] sm:$0xf]  ;;  %3157 = vmatpush.bf16.msra.mxu2 %v4617_v38 }
 0x20c   : > { %v4697_v3 = vor.u32 %v5233_v7, %v4696_v6  ;;  %v5257_v7 = vld [vmem:[%s7853_s5 + $0x194] sm:$0xf0] }
 0x20d   : > { %v2565_v10 = vadd.f32 %v2564_v35, %v2552_v16  ;;  %v4817_v35 = vor.u32 %v5263_v63, %v4816_v30  ;;  %v5245_v16 = vld [vmem:[%s7853_s5 + $0x134] sm:$0xf0]  ;;  %v4793_v14 = vor.u32 %v5257_v7, %v4792_v1 }
 0x20e   : > { %v2566_v41 = vpop.f32.mrf.mxu1  ;;  %3168 = vmatpush.bf16.msra.mxu3 %v4697_v3  ;;  %v4745_v49 = vor.u32 %v5245_v16, %v4744_v37  ;;  %v5220_v3 = vld [vmem:[%s7853_s5 + $0x74] sm:$0xf]  ;;  %v4781_v37 = vor.u32 %v5252_v29, %v4778_v0  ;;  %v4642_v16 = vld [vmem:[%s7853_s5 + $0x68] sm:$0xf0] }
 0x20f   : > { %v2578_v5 = vadd.f32 %v7333_v45, %v2565_v10  ;;  %v4608_v41 = vld [vmem:[%s7853_s5 + $0x20] sm:$0xf]  ;;  %v5211_v45 = vld [vmem:[%s7853_s5 + $0x24] sm:$0xf0]  ;;  %3195 = vmatpush.bf16.msrb.mxu1 %v4817_v35  ;;  %v4653_v10 = vor.u32 %v5220_v3, %v4650_v42 }
 0x210   : > { %v2540_v23 = vpop.f32.mrf.mxu3  ;;  %v4609_v48 = vor.u32 %v5211_v45, %v4608_v41  ;;  %3183 = vmatpush.bf16.msrb.mxu0 %v4745_v49  ;;  %v5255_v35 = vld [vmem:[%s7853_s5 + $0x184] sm:$0xf0]  ;;  %v5268_v41 = vld [vmem:[%s7853_s5 + $0x1f4] sm:$0xf]  ;;  %v4842_v45 = vld [vmem:[%s7853_s5 + $0x1f8] sm:$0xf0] }
 0x212   : > { %3169 = vmatpush.bf16.msra.mxu3 %v4689_v20  ;;  %3158 = vmatpush.bf16.msra.mxu2 %v4609_v48  ;;  %v5250_v48 = vld [vmem:[%s7853_s5 + $0x164] sm:$0xf] }
 0x213   : > { %3196 = vmatpush.bf16.msrb.mxu1 %v4809_v47  ;;  %v4770_v47 = vld [vmem:[%s7853_s5 + $0x168] sm:$0xf0] }
 0x214   : > { %3184 = vmatpush.bf16.msrb.mxu0 %v4737_v33  ;;  %v4773_v25 = vor.u32 %v5250_v48, %v4770_v47  ;;  %v5248_v33 = vld [vmem:[%s7853_s5 + $0x154] sm:$0xf] }
 0x215   : > { %v4765_v60 = vor.u32 %v5248_v33, %v4762_v44 }
 0x216   : > { %3170 = vmatpush.bf16.msra.mxu3 %v4681_v51  ;;  %3159 = vmatpush.bf16.msra.mxu2 %v4601_v2  ;;  %v5218_v51 = vld [vmem:[%s7853_s5 + $0x64] sm:$0xf] }
 0x217   : > { %3197 = vmatpush.bf16.msrb.mxu1 %v4801_v57  ;;  %v4645_v49 = vor.u32 %v5218_v51, %v4642_v16 }
 0x218   : > { %3185 = vmatpush.bf16.msrb.mxu0 %v4729_v27  ;;  %v4626_v27 = vld [vmem:[%s7853_s5 + $0x48] sm:$0xf0] }
 0x21a   : > { %3171 = vmatpush.bf16.msra.mxu3 %v4673_v18  ;;  %3160 = vmatpush.bf16.msra.mxu2 %v4593_v46  ;;  %v5266_v18 = vld [vmem:[%s7853_s5 + $0x1e4] sm:$0xf]  ;;  %v5264_v46 = vld [vmem:[%s7853_s5 + $0x1d4] sm:$0xf] }
 0x21b   : > { %3198 = vmatpush.bf16.msrb.mxu1 %v4793_v14  ;;  %v4837_v40 = vor.u32 %v5266_v18, %v4834_v19  ;;  %v4826_v14 = vld [vmem:[%s7853_s5 + $0x1d8] sm:$0xf0] }
 0x21c   : > { %v4829_v8 = vor.u32 %v5264_v46, %v4826_v14 }
 0x21e   : > { %3205 = vmatpush.bf16.msrb.mxu2 %v4653_v10  ;;  %v5230_v10 = vld [vmem:[%s7853_s5 + $0xc4] sm:$0xf] }
 0x222   : > { %3206 = vmatpush.bf16.msrb.mxu2 %v4645_v49 }
 0x226   : > { %v2616_v61 = vpop.f32.mrf.mxu1 }
 0x228   : > { %v2590_v23 = vpop.f32.mrf.mxu3 }
 0x229   : > { %v2591_v32 = vadd.f32 %v2590_v23, %v2578_v5  ;;  %v4784_v5 = vld [vmem:[%s7853_s5 + $0x180] sm:$0xf] }
 0x22a   : > { %v4785_v23 = vor.u32 %v5255_v35, %v4784_v5 }
 0x22b   : > { %v2604_v34 = vadd.f32 %v7331_v26, %v2591_v32  ;;  %v5225_v26 = vld [vmem:[%s7853_s5 + $0x94] sm:$0xf0]  ;;  %v4845_v32 = vor.u32 %v5268_v41, %v4842_v45 }
 0x22c   : > { %v4665_v6 = vor.u32 %v5225_v26, %v4664_v43  ;;  %3199 = vmatpush.bf16.msrb.mxu1 %v4785_v23  ;;  %v4637_v43 = vor.u32 %v5216_v9, %v4634_v17  ;;  %v7634_v17 = vld [vmem:[%s7852_s4] ss:$0 sm:$0xff] }
 0x22d   : > { %v2617_v53 = vadd.f32 %v2616_v61, %v2604_v34  ;;  %v4698_v34 = vld [vmem:[%s7853_s5 + $0xd8] sm:$0xf0] }
 0x22e   : > { %v2618_v54 = vpop.f32.mrf.mxu1  ;;  %3172 = vmatpush.bf16.msra.mxu3 %v4665_v6  ;;  %v4701_v57 = vor.u32 %v5232_v15, %v4698_v34  ;;  %3207 = vmatpush.bf16.msrb.mxu2 %v4637_v43  ;;  %v5246_v15 = vld [vmem:[%s7853_s5 + $0x144] sm:$0xf]  ;;  %v4754_v34 = vld [vmem:[%s7853_s5 + $0x148] sm:$0xf0] }
 0x22f   : > { %v2622_v36 = vrot.slane %v2617_v53, 6 }
 0x230   : > { %v2592_v59 = vpop.f32.mrf.mxu3  ;;  %3244 = vmatpush.bf16.msra.mxu1 %v4845_v32 }
 0x231   : > { %v2624_v20 = vsel %vm2623_vm5, %v7335_v31, %v2622_v36  ;;  %v2626_v21 = vsel %vm2625_vm6, %v7335_v31, %v2622_v36  ;;  %v2629_v13 = vsel %vm2628_vm7, %v7335_v31, %v2622_v36  ;;  %v2631_v61 = vsel %vm1355_vm2, %v2622_v36, %v7335_v31  ;;  %v5214_v36 = vld [vmem:[%s7853_s5 + $0x44] sm:$0xf] }
 0x232   : > { %v2627_v30 = vrot.slane %v2626_v21, 2  ;;  %v2630_v38 = vrot.slane %v2629_v13, 4  ;;  %v2632_v63 = vrot.slane %v2631_v61, 6  ;;  %2633 = vst [vmem:[#allocation1] ss:$4 sm:$0xff] %v2624_v20  ;;  %v4721_v31 = vor.u32 %v5239_v12, %v4720_v11  ;;  %3173 = vmatpush.bf16.msra.mxu3 %v4657_v52 }
 0x233   : > { %v4629_v59 = vor.u32 %v5214_v36, %v4626_v27  ;;  %v4690_v20 = vld [vmem:[%s7853_s5 + $0xc8] sm:$0xf0] }
 0x234   : > { %2637 = vst [vmem:[#allocation1 + $0x20] ss:$4 sm:$0xff] %v2627_v30  ;;  %3186 = vmatpush.bf16.msrb.mxu0 %v4721_v31  ;;  %3245 = vmatpush.bf16.msra.mxu1 %v4837_v40  ;;  %v4693_v61 = vor.u32 %v5230_v10, %v4690_v20  ;;  %v4610_v10 = vld [vmem:[%s7853_s5 + $0x28] sm:$0xf0] }
 0x235   : > { %3208 = vmatpush.bf16.msrb.mxu2 %v4629_v59 }
 0x236   : > { %3218 = vmatpush.bf16.msrb.mxu3 %v4717_v55 }
 0x238   : > { %3231 = vmatpush.bf16.msra.mxu0 %v4781_v37  ;;  %3246 = vmatpush.bf16.msra.mxu1 %v4829_v8 }
 0x239   : > { %v2634_v50 = vld.sshfl [vmem:[#allocation1] sm:$0xff pattern:$0x73625140]  ;;  %v2635_v39 = vld.sshfl [vmem:[#allocation1 + $0x8] sm:$0xff pattern:$0x73625140] }
 0x23a   : > { %2640 = vst [vmem:[#allocation1] ss:$4 sm:$0xff] %v2630_v38  ;;  %v2654_v2 = vsel %vm2623_vm5, %v2634_v50, -inf  ;;  %v2661_v26 = vsel %vm2623_vm5, %v2635_v39, -inf  ;;  %3219 = vmatpush.bf16.msrb.mxu3 %v4709_v56 }
 0x23b   : > { %v2638_v53 = vld.sshfl [vmem:[#allocation1 + $0x20] sm:$0xff pattern:$0x73625140]  ;;  %v2639_v54 = vld.sshfl [vmem:[#allocation1 + $0x28] sm:$0xff pattern:$0x73625140] }
 0x23c   : > { %2643 = vst [vmem:[#allocation1 + $0x20] ss:$4 sm:$0xff] %v2632_v63  ;;  %v2655_v62 = vrot.slane %v2654_v2, 4  ;;  %v2662_v1 = vrot.slane %v2661_v26, 4  ;;  %v2668_v6 = vsel %vm2623_vm5, %v2638_v53, -inf  ;;  %v2675_v7 = vsel %vm2623_vm5, %v2639_v54, -inf  ;;  %3232 = vmatpush.bf16.msra.mxu0 %v4773_v25 }
 0x23d   : > { %v2669_v3 = vrot.slane %v2668_v6, 4  ;;  %v2676_v42 = vrot.slane %v2675_v7, 4  ;;  %v5262_v54 = vld [vmem:[%s7853_s5 + $0x1c4] sm:$0xf] }
 0x23e   : > { %v2656_v58 = vmax.f32 %v2654_v2, %v2655_v62  ;;  %v2663_v22 = vmax.f32 %v2661_v26, %v2662_v1  ;;  %3220 = vmatpush.bf16.msrb.mxu3 %v4701_v57  ;;  %v5212_v2 = vld [vmem:[%s7853_s5 + $0x34] sm:$0xf]  ;;  %v4618_v26 = vld [vmem:[%s7853_s5 + $0x38] sm:$0xf0]  ;;  %v4818_v57 = vld [vmem:[%s7853_s5 + $0x1c8] sm:$0xf0]  ;;  %v4757_v1 = vor.u32 %v5246_v15, %v4754_v34 }
 0x23f   : > { %v2670_v11 = vmax.f32 %v2668_v6, %v2669_v3  ;;  %v2677_v12 = vmax.f32 %v2675_v7, %v2676_v42  ;;  %v5228_v6 = vld [vmem:[%s7853_s5 + $0xb4] sm:$0xf]  ;;  %v4682_v7 = vld [vmem:[%s7853_s5 + $0xb8] sm:$0xf0]  ;;  %v4621_v14 = vor.u32 %v5212_v2, %v4618_v26  ;;  %v5395_v15 = vmov 1983009808  }
 0x240   : > { %v2657_v21 = vrot.slane %v2656_v58, 2  ;;  %v2664_v13 = vrot.slane %v2663_v22, 2  ;;  %3233 = vmatpush.bf16.msra.mxu0 %v4765_v60  ;;  %v5244_v3 = vld [vmem:[%s7853_s5 + $0x134] sm:$0xf]  ;;  %v2741_v34 = vunpack.c.l.s4 %v5395_v15 }
 0x241   : > { %v2671_v24 = vrot.slane %v2670_v11, 2  ;;  %v2678_v29 = vrot.slane %v2677_v12, 2  ;;  %v2641_v0 = vld.sshfl [vmem:[#allocation1] sm:$0xff pattern:$0x73625140]  ;;  %3209 = vmatpush.bf16.msrb.mxu2 %v4621_v14 }
 0x242   : > { %v2658_v30 = vmax.f32 %v2656_v58, %v2657_v21  ;;  %v2665_v38 = vmax.f32 %v2663_v22, %v2664_v13  ;;  %v2642_v63 = vld.sshfl [vmem:[#allocation1 + $0x8] sm:$0xff pattern:$0x73625140]  ;;  %v2682_v52 = vsel %vm2623_vm5, %v2641_v0, -inf  ;;  %3221 = vmatpush.bf16.msrb.mxu3 %v4693_v61  ;;  %v4746_v58 = vld [vmem:[%s7853_s5 + $0x138] sm:$0xf0]  ;;  %v4685_v0 = vor.u32 %v5228_v6, %v4682_v7 }
 0x243   : > { %v2672_v31 = vmax.f32 %v2670_v11, %v2671_v24  ;;  %v2679_v55 = vmax.f32 %v2677_v12, %v2678_v29  ;;  %v2644_v5 = vld.sshfl [vmem:[#allocation1 + $0x20] sm:$0xff pattern:$0x73625140]  ;;  %v2645_v35 = vld.sshfl [vmem:[#allocation1 + $0x28] sm:$0xff pattern:$0x73625140]  ;;  %v4821_v29 = vor.u32 %v5262_v54, %v4818_v57 }
 0x244   : > { %v2659_v51 = vrot.slane %v2658_v30, 1  ;;  %v2666_v37 = vrot.slane %v2665_v38, 1  ;;  %v2683_v16 = vrot.slane %v2682_v52, 4  ;;  %v2689_v41 = vsel %vm2623_vm5, %v2642_v63, -inf  ;;  %v5210_v22 = vld [vmem:[%s7853_s5 + $0x24] sm:$0xf]  ;;  %3234 = vmatpush.bf16.msra.mxu0 %v4757_v1 }
 0x245   : > { %v2673_v23 = vrot.slane %v2672_v31, 1  ;;  %v2680_v49 = vrot.slane %v2679_v55, 1  ;;  %v2690_v45 = vrot.slane %v2689_v41, 4  ;;  %v2696_v4 = vsel %vm2623_vm5, %v2644_v5, -inf  ;;  %v5260_v11 = vld [vmem:[%s7853_s5 + $0x1b4] sm:$0xf]  ;;  %3247 = vmatpush.bf16.msra.mxu1 %v4821_v29 }
 0x246   : > { %v2684_v28 = vmax.f32 %v2682_v52, %v2683_v16  ;;  %v2697_v32 = vrot.slane %v2696_v4, 4  ;;  %v2703_v56 = vsel %vm2623_vm5, %v2645_v35, -inf  ;;  %v2660_v33 = vmax.f32 %v2658_v30, %v2659_v51  ;;  %v4810_v13 = vld [vmem:[%s7853_s5 + $0x1b8] sm:$0xf0]  ;;  %v5226_v61 = vld [vmem:[%s7853_s5 + $0xa4] sm:$0xf]  ;;  %3222 = vmatpush.bf16.msrb.mxu3 %v4685_v0 }
 0x247   : > { %v2674_v48 = vmax.f32 %v2672_v31, %v2673_v23  ;;  %v2681_v47 = vmax.f32 %v2679_v55, %v2680_v49  ;;  %v2691_v9 = vmax.f32 %v2689_v41, %v2690_v45  ;;  %v2704_v25 = vrot.slane %v2703_v56, 4  ;;  %v4674_v30 = vld [vmem:[%s7853_s5 + $0xa8] sm:$0xf0]  ;;  %v5208_v35 = vld [vmem:[%s7853_s5 + $0x14] sm:$0xf] }
 0x248   : > { %v2685_v18 = vrot.slane %v2684_v28, 2  ;;  %v2698_v19 = vmax.f32 %v2696_v4, %v2697_v32  ;;  %v2667_v50 = vmax.f32 %v2665_v38, %v2666_v37  ;;  %v5242_v38 = vld [vmem:[%s7853_s5 + $0x124] sm:$0xf]  ;;  %v4738_v63 = vld [vmem:[%s7853_s5 + $0x128] sm:$0xf0]  ;;  %v4749_v55 = vor.u32 %v5244_v3, %v4746_v58 }
 0x249   : > { %v2692_v39 = vrot.slane %v2691_v9, 2  ;;  %v2711_v43 = vmax.f32 %v2674_v48, %v2681_v47  ;;  %v2705_v53 = vmax.f32 %v2703_v56, %v2704_v25  ;;  %v4613_v5 = vor.u32 %v5210_v22, %v4610_v10  ;;  %v4602_v51 = vld [vmem:[%s7853_s5 + $0x18] sm:$0xf0]  ;;  %v5258_v23 = vld [vmem:[%s7853_s5 + $0x1a4] sm:$0xf] }
 0x24a   : > { %v2686_v40 = vmax.f32 %v2684_v28, %v2685_v18  ;;  %v2699_v44 = vrot.slane %v2698_v19, 2  ;;  %v2710_v46 = vmax.f32 %v2660_v33, %v2667_v50  ;;  %v4813_v41 = vor.u32 %v5260_v11, %v4810_v13  ;;  %3235 = vmatpush.bf16.msra.mxu0 %v4749_v55  ;;  %v4802_v28 = vld [vmem:[%s7853_s5 + $0x1a8] sm:$0xf0]  ;;  %v5224_v32 = vld [vmem:[%s7853_s5 + $0x94] sm:$0xf] }
 0x24b   : > { %v2693_v60 = vmax.f32 %v2691_v9, %v2692_v39  ;;  %v2719_v62 = vadd.f32 %v7634_v17, %v2711_v43  ;;  %v2706_v27 = vrot.slane %v2705_v53, 2  ;;  %v4677_v45 = vor.u32 %v5226_v61, %v4674_v30  ;;  %v4666_v48 = vld [vmem:[%s7853_s5 + $0x98] sm:$0xf0]  ;;  %3210 = vmatpush.bf16.msrb.mxu2 %v4613_v5  ;;  %v5240_v56 = vld [vmem:[%s7853_s5 + $0x114] sm:$0xf] }
 0x24c   : > { %v2687_v42 = vrot.slane %v2686_v40, 1  ;;  %v2700_v36 = vmax.f32 %v2698_v19, %v2699_v44  ;;  %v2718_v16 = vadd.f32 %v7634_v17, %v2710_v46  ;;  %v4741_v4 = vor.u32 %v5242_v38, %v4738_v63  ;;  %v4730_v18 = vld [vmem:[%s7853_s5 + $0x118] sm:$0xf0]  ;;  %v5206_v33 = vld [vmem:[%s7853_s5 + $0x4] sm:$0xf]  ;;  %3248 = vmatpush.bf16.msra.mxu1 %v4813_v41  ;;  %v5276_v5 = vld [vmem:[%s7855_s7 + $0x30] sm:$0xff] }
 0x24d   : > { %v2694_v59 = vrot.slane %v2693_v60, 1  ;;  %v2707_v20 = vmax.f32 %v2705_v53, %v2706_v27  ;;  %v2723_v21 = vmax.f32 %v2719_v62, 0.0  ;;  %v4605_v9 = vor.u32 %v5208_v35, %v4602_v51  ;;  %v4594_v50 = vld [vmem:[%s7853_s5 + $0x8] sm:$0xf0]  ;;  %3223 = vmatpush.bf16.msrb.mxu3 %v4677_v45  ;;  %v4794_v54 = vld [vmem:[%s7853_s5 + $0x198] sm:$0xf0] }
 0x24e   : > { %v2688_v12 = vmax.f32 %v2686_v40, %v2687_v42  ;;  %v2701_v8 = vrot.slane %v2700_v36, 1  ;;  %v2722_v39 = vmax.f32 %v2718_v16, 0.0  ;;  %v4805_v2 = vor.u32 %v5258_v23, %v4802_v28  ;;  %v5256_v40 = vld [vmem:[%s7853_s5 + $0x194] sm:$0xf]  ;;  %3236 = vmatpush.bf16.msra.mxu0 %v4741_v4  ;;  %v5222_v57 = vld [vmem:[%s7853_s5 + $0x84] sm:$0xf] }
 0x24f   : > { %v2695_v24 = vmax.f32 %v2693_v60, %v2694_v59  ;;  %v2708_v31 = vrot.slane %v2707_v20, 1  ;;  %v2730_v25 = vrot.slane %v2723_v21, 7  ;;  %v4669_v26 = vor.u32 %v5224_v32, %v4666_v48  ;;  %v4658_v60 = vld [vmem:[%s7853_s5 + $0x88] sm:$0xf0]  ;;  %3211 = vmatpush.bf16.msrb.mxu2 %v4605_v9  ;;  %v5254_v10 = vld [vmem:[%s7853_s5 + $0x184] sm:$0xf] }
 0x250   : > { %v2702_v52 = vmax.f32 %v2700_v36, %v2701_v8  ;;  %v4733_v53 = vor.u32 %v5240_v56, %v4730_v18  ;;  %v5396_v1 = vmov 1934713408   ;;  %v4597_v7 = vor.u32 %v5206_v33, %v4594_v50  ;;  %v4722_v3 = vld [vmem:[%s7853_s5 + $0x108] sm:$0xf0]  ;;  %3249 = vmatpush.bf16.msra.mxu1 %v4805_v2  ;;  %v5273_v16 = vld [vmem:[%s7855_s7 + $0x18] sm:$0xff]  ;;  %v5272_v23 = vld [vmem:[%s7855_s7 + $0x10] sm:$0xff] }
 0x251   : > { %v2712_v37 = vmax.f32 %v2688_v12, %v2695_v24  ;;  %v2709_v49 = vmax.f32 %v2707_v20, %v2708_v31  ;;  %v2748_v6 = vunpack.c.l.s4 %v5396_v1  ;;  %v2732_v36 = vsel %vm2731_vm8, %v2730_v25, %v2722_v39  ;;  %3224 = vmatpush.bf16.msrb.mxu3 %v4669_v26  ;;  %v4786_v11 = vld [vmem:[%s7853_s5 + $0x188] sm:$0xf0]  ;;  %v5277_v24 = vld [vmem:[%s7855_s7 + $0x38] sm:$0xff]  ;;  %v5270_v28 = vld [vmem:[%s7855_s7] sm:$0xff] }
 0x252   : > { %v2742_v58 = vunpack.c.0.s8 %v2741_v34  ;;  %v4797_v22 = vor.u32 %v5256_v40, %v4794_v54  ;;  %v4661_v59 = vor.u32 %v5222_v57, %v4658_v60  ;;  %3237 = vmatpush.bf16.msra.mxu0 %v4733_v53  ;;  %v4789_v21 = vor.u32 %v5254_v10, %v4786_v11  ;;  %v5275_v51 = vld [vmem:[%s7855_s7 + $0x28] sm:$0xff]  ;;  %v5285_v41 = vld [vmem:[%s7855_s7 + $0x78] sm:$0xff]  ;;  %v5282_v32 = vld [vmem:[%s7855_s7 + $0x60] sm:$0xff] }
 0x253   : > { %v2720_v47 = vadd.f32 %v7634_v17, %v2712_v37  ;;  %v2713_v19 = vmax.f32 %v2702_v52, %v2709_v49  ;;  %v2749_v12 = vunpack.c.0.s8 %v2748_v6  ;;  %3212 = vmatpush.bf16.msrb.mxu2 %v4597_v7  ;;  %v5274_v37 = vld [vmem:[%s7855_s7 + $0x20] sm:$0xff]  ;;  %v5284_v49 = vld [vmem:[%s7855_s7 + $0x70] sm:$0xff]  ;;  %v5271_v45 = vld [vmem:[%s7855_s7 + $0x8] sm:$0xff] }
 0x254   : > { %3250 = vmatpush.bf16.msra.mxu1 %v4797_v22  ;;  %v5283_v4 = vld [vmem:[%s7855_s7 + $0x68] sm:$0xff]  ;;  %v5281_v48 = vld [vmem:[%s7855_s7 + $0x58] sm:$0xff]  ;;  %v5278_v56 = vld [vmem:[%s7855_s7 + $0x40] sm:$0xff] }
 0x255   : > { %v2724_v43 = vmax.f32 %v2720_v47, 0.0  ;;  %v2721_v44 = vadd.f32 %v7634_v17, %v2713_v19  ;;  %v5238_v17 = vld [vmem:[%s7853_s5 + $0x104] sm:$0xf]  ;;  %3225 = vmatpush.bf16.msrb.mxu3 %v4661_v59  ;;  %v5280_v47 = vld [vmem:[%s7855_s7 + $0x50] sm:$0xff]  ;;  %v5279_v9 = vld [vmem:[%s7855_s7 + $0x48] sm:$0xff] }
 0x256   : > { %v4725_v14 = vor.u32 %v5238_v17, %v4722_v3  ;;  %v2827_v18 = vld [vmem:[%s7854_s6] sm:$0x3] }
 0x257   : > { %v2733_v62 = vrot.slane %v2724_v43, 6  ;;  %v2725_v42 = vmax.f32 %v2721_v44, 0.0  ;;  %v3149_v25 = vperm.slane %v2827_v18, 0 }
 0x258   : > { %3238 = vmatpush.bf16.msra.mxu0 %v4725_v14  ;;  %3251 = vmatpush.bf16.msra.mxu1 %v4789_v21 }
 0x259   : > { %v2735_v27 = vsel %vm2734_vm9, %v2733_v62, %v2732_v36  ;;  %v2736_v46 = vrot.slane %v2725_v42, 5  ;;  %v3150_v62 = vperm.slane %v2827_v18, 1 }
 0x25b   : > { %v2738_v8 = vsel %vm2737_vm10, %v2736_v46, %v2735_v27 }
 0x25c   : > { %v2743_v20 = vperm.slane %v2738_v8, %v2742_v58 }
 0x25e   : > { %v2750_v13 = vperm.slane %v2743_v20, %v2749_v12  ;;  %v2744_v61 = vrot.slane %v2743_v20, 4 }
 0x260   : > { %v2755_v29 = vrot.slane %v2750_v13, 4  ;;  %v2759_v0 = vpack.c.bf16 %v2750_v13, %v2750_v13  ;;  %v2746_v30 = vsel %vm2745_vm11, 0.0, %v2744_v61 }
 0x261   : > { %v2754_v38 = vperm.slane %v2746_v30, %v2749_v12  ;;  %v3293_v12 = vld [vmem:[%s7856_s8] sm:$0x1] }
 0x262   : > { %3161 = vmatmul.bf16.vlgmr.msra.gmra.mxu2 %v2759_v0  ;;  %v4849_v52 = vpack.c.bf16 %v2755_v29, %v2755_v29 }
 0x263   : > { %v2757_v31 = vrot.slane %v2754_v38, 4  ;;  %v2761_v55 = vpack.c.bf16 %v2754_v38, %v2754_v38  ;;  %3390 = vmatpush.bf16.msra.mxu2 %v5277_v24 }
 0x264   : > { %4850 = vmatmul.msk.bf16.vlgmr.msra.gmra.mxu3 %vm7753_vm13, %v4849_v52 }
 0x265   : > { %v4854_v35 = vpack.c.bf16 %v2757_v31, %v2757_v31  ;;  %3187 = vmatmul.bf16.vlgmr.msrb.gmra.mxu0 %v2761_v55  ;;  %3403 = vmatpush.bf16.msra.mxu3 %v5285_v41 }
 0x267   : > { %4855 = vmatmul.msk.bf16.vlgmr.msrb.gmra.mxu1 %vm7753_vm13, %v4854_v35  ;;  %3391 = vmatpush.bf16.msra.mxu2 %v5276_v5 }
 0x269   : > { %3404 = vmatpush.bf16.msra.mxu3 %v5284_v49 }
 0x26b   : > { %3392 = vmatpush.bf16.msra.mxu2 %v5275_v51 }
 0x26d   : > { %3405 = vmatpush.bf16.msra.mxu3 %v5283_v4 }
 0x26f   : > { %3393 = vmatpush.bf16.msra.mxu2 %v5274_v37 }
 0x271   : > { %3406 = vmatpush.bf16.msra.mxu3 %v5282_v32 }
 0x272   : > { %3213 = vmatmul.bf16.vlgmr.msrb.gmra.mxu2 %v2759_v0 }
 0x273   : > { %3394 = vmatpush.bf16.msra.mxu2 %v5273_v16 }
 0x274   : > { %4860 = vmatmul.msk.bf16.vlgmr.msrb.gmra.mxu3 %vm7753_vm13, %v4849_v52 }
 0x275   : > { %3239 = vmatmul.bf16.vlgmr.msra.gmra.mxu0 %v2761_v55  ;;  %3407 = vmatpush.bf16.msra.mxu3 %v5281_v48 }
 0x277   : > { %4865 = vmatmul.msk.bf16.vlgmr.msra.gmra.mxu1 %vm7753_vm13, %v4854_v35  ;;  %3395 = vmatpush.bf16.msra.mxu2 %v5272_v23 }
 0x279   : > { %3408 = vmatpush.bf16.msra.mxu3 %v5280_v47 }
 0x27b   : > { %3396 = vmatpush.bf16.msra.mxu2 %v5271_v45 }
 0x27d   : > { %3409 = vmatpush.bf16.msra.mxu3 %v5279_v9 }
 0x27f   : > { %3397 = vmatpush.bf16.msra.mxu2 %v5270_v28 }
 0x281   : > { %3410 = vmatpush.bf16.msra.mxu3 %v5278_v56 }
 0x2e2   : > { %v3188_v19 = vpop.f32.mrf.mxu0 }
 0x2e4   : > { %v3201_v15 = vpop.f32.mrf.mxu1 }
 0x2e5   : > { %v3162_v34 = vpop.f32.mrf.mxu2 }
 0x2e6   : > { %v3163_v33 = vadd.f32 %v3162_v34, %v3149_v25 }
 0x2e7   : > { %v3175_v50 = vpop.f32.mrf.mxu3 }
 0x2e8   : > { %v3176_v39 = vadd.f32 %v3175_v50, %v3163_v33 }
 0x2ea   : > { %v3189_v43 = vadd.f32 %v3188_v19, %v3176_v39  ;;  %v3190_v2 = vpop.f32.mrf.mxu0 }
 0x2ec   : > { %v3202_v26 = vadd.f32 %v3201_v15, %v3189_v43  ;;  %v3203_v40 = vpop.f32.mrf.mxu1 }
 0x2ed   : > { %v3164_v44 = vpop.f32.mrf.mxu2 }
 0x2ee   : > { %v3257_v53 = vmax.f32 %v3202_v26, 0.0 }
 0x2ef   : > { %v3177_v54 = vpop.f32.mrf.mxu3 }
 0x2f0   : > { %v3259_v57 = vpack.c.bf16 %v3257_v53, %v3257_v53 }
 0x2f2   : > { %v3240_v60 = vpop.f32.mrf.mxu0  ;;  %3398 = vmatmul.bf16.vlgmr.msra.gmra.mxu2 %v3259_v57 }
 0x2f4   : > { %v3253_v1 = vpop.f32.mrf.mxu1 }
 0x2f5   : > { %v3214_v6 = vpop.f32.mrf.mxu2 }
 0x2f6   : > { %v3215_v7 = vadd.f32 %v3214_v6, %v3150_v62 }
 0x2f7   : > { %v3227_v17 = vpop.f32.mrf.mxu3 }
 0x2f8   : > { %v3228_v3 = vadd.f32 %v3227_v17, %v3215_v7 }
 0x2fa   : > { %v3241_v42 = vadd.f32 %v3240_v60, %v3228_v3  ;;  %v3242_v36 = vpop.f32.mrf.mxu0 }
 0x2fc   : > { %v3254_v27 = vadd.f32 %v3253_v1, %v3241_v42  ;;  %v3255_v58 = vpop.f32.mrf.mxu1 }
 0x2fd   : > { %v3216_v22 = vpop.f32.mrf.mxu2 }
 0x2fe   : > { %v3258_v59 = vmax.f32 %v3254_v27, 0.0 }
 0x2ff   : > { %v3229_v46 = vpop.f32.mrf.mxu3 }
 0x300   : > { %v3260_v14 = vpack.c.bf16 %v3258_v59, %v3258_v59 }
 0x302   : > { %3411 = vmatmul.bf16.vlgmr.msra.gmra.mxu3 %v3260_v14 }
 0x375   : > { %v3399_v10 = vpop.f32.mrf.mxu2 }
 0x376   : > { %v3400_v8 = vadd.f32 %v3399_v10, %v3293_v12 }
 0x37d   : > { %v3401_v11 = vpop.f32.mrf.mxu2 }
 0x385   : > { %v3412_v20 = vpop.f32.mrf.mxu3 }
 0x386   : > { %v3413_v21 = vadd.f32 %v3412_v20, %v3400_v8 }
 0x388   : > { %3416 = vst [vmem:[%s324_s25] sm:$0x1] %v3413_v21 }
 0x389   : > { %5357 = shalt.err (!%p5354_p3)
}
 0x38a   : > { %5287 = dma.vmem_to_hbm [thread:$0]  (%p5485_p5), %s3429_s29, 16, %s3431_s27, %s3418_s14  }
 0x38d   : > { %v3414_v13 = vpop.f32.mrf.mxu3 }
 0x38e PF: > { %p5293_p4 = scmp.ge.s32.totalorder %s5392_s12, 2  ;;  %s3442_s0 = sand.u32 1, %s5380_s30  }
 0x38f   : > { %s3443_s23 = scalar_lea.sflag [#allocation4], %s3442_s0 }
 0x390   : > { %p5290_p7 = pnand %p5293_p4, %p5489_p6 }
 0x392   : > { %p5291_p8 = pneg %p5290_p7 }
 0x394   : > { %5375 = dma.done.wait (%p5291_p8), %s3443_s23, 16  }
 0x395   : > { %5377 = vsyncadd (%p5291_p8), %s3443_s23, 4294967280  ;;  %p19_p9 = scmp.ge.s32.totalorder %s5472_s15, 4   ;;  %s7864_s30 = smov %s5384_s10 }
 0x396   : > { %s7865_s10 = smov %s5388_s11  ;;  %s7866_s11 = smov %s5483_s18 }
 0x397   : > { %s7867_s12 = smov %s5472_s15  ;;  %21 = sbr.rel (!%p19_p9) target bundleno = 5 (0x5), region = 92 }
 0x39c   :  { %3448 = vsyncpa [#allocation4], 1 }
 0x39d   :  { %3450 = vsyncpa [#allocation4 + $0x1], 1 }

</bundles_post_ra>
